<compile_context>
chip_gen: v7x
topology: tpu7x:2x2x1
jax: 0.10.0
libtpu: 0.0.40
codegen_flags: <defaults>
</compile_context>

<pallas_src>
import jax
import jax.numpy as jnp
from jax.experimental import pallas as pl
from jax.experimental.pallas import tpu as pltpu


def _round_up(x, m):
    return (x + m - 1) // m * m


def _disc_kernel(z_ref, w1_ref, b1_ref, w2_ref, b2_ref, w3_ref, b3_ref, out_ref):
    # --- Linear 1 (+ eval-mode Dropout = identity) + LeakyReLU(0.2) ---
    h = jnp.dot(z_ref[...], w1_ref[...], preferred_element_type=jnp.float32)
    h = h + b1_ref[...]                       # (1, Np) broadcasts over batch tile
    h = jnp.maximum(h, 0.2 * h)               # LeakyReLU, single VALU op

    # --- Linear 2 + LeakyReLU(0.2) ---
    h = jnp.dot(h, w2_ref[...], preferred_element_type=jnp.float32)
    h = h + b2_ref[...]
    h = jnp.maximum(h, 0.2 * h)

    # --- Linear 3 (output width 1) as a lane reduction + Sigmoid ---
    logit = jnp.sum(h * w3_ref[...], axis=-1, keepdims=True) + b3_ref[0, 0]
    out_ref[...] = pl.reciprocal(1.0 + jnp.exp(-logit), approx=True)


def discriminator_forward(z, params, *, block_b=512):
    """z: (B, z_dim) float32 -> (B, 1) float32 probability."""
    w1, b1, w2, b2, w3, b3 = params
    z_dim, n = w1.shape
    assert z.shape[1] == z_dim

    # Pad feature dims to multiples of 128 (zero padding is exact here).
    zp = _round_up(z_dim, 128)
    np_ = _round_up(n, 128)
    w1p = jnp.pad(w1, ((0, zp - z_dim), (0, np_ - n)))
    b1p = jnp.pad(b1, ((0, 0), (0, np_ - n)))
    w2p = jnp.pad(w2, ((0, np_ - n), (0, np_ - n)))
    b2p = jnp.pad(b2, ((0, 0), (0, np_ - n)))
    w3row = jnp.pad(w3.reshape(1, n), ((0, 0), (0, np_ - n)))
    b3s = b3.reshape(1, 1)

    # Batch tiling: TB multiple of 8, batch padded to a multiple of TB.
    batch = z.shape[0]
    tb = min(block_b, _round_up(batch, 8))
    b_pad = _round_up(batch, tb)
    z_pad = jnp.pad(z, ((0, b_pad - batch), (0, zp - z_dim)))
    grid = (b_pad // tb,)

    # VMEM budget: resident (double-buffered) weights + streamed activations.
    weights_bytes = 4 * (w1p.size + b1p.size + w2p.size + b2p.size + w3row.size)
    act_bytes = 4 * tb * (2 * zp + 4 * np_ + 2 * 128)
    vmem_limit = int(min(max(32 << 20, 2 * weights_bytes + act_bytes + (8 << 20)),
                         100 << 20))

    cost = pl.CostEstimate(
        flops=int(2 * batch * (z_dim * n + n * n + n)),
        transcendentals=int(2 * batch),
        bytes_accessed=int(weights_bytes + 4 * z_pad.size + 4 * b_pad),
    )

    out = pl.pallas_call(
        _disc_kernel,
        out_shape=jax.ShapeDtypeStruct((b_pad, 1), jnp.float32),
        grid=grid,
        in_specs=[
            pl.BlockSpec((tb, zp), lambda i: (i, 0)),                    # z tile
            pl.BlockSpec((zp, np_), lambda i: (0, 0)),                   # w1 (resident)
            pl.BlockSpec((1, np_), lambda i: (0, 0)),                    # b1
            pl.BlockSpec((np_, np_), lambda i: (0, 0)),                  # w2 (resident)
            pl.BlockSpec((1, np_), lambda i: (0, 0)),                    # b2
            pl.BlockSpec((1, np_), lambda i: (0, 0)),                    # w3 row
            pl.BlockSpec((1, 1), lambda i: (0, 0),
                         memory_space=pltpu.SMEM),                       # b3 scalar
        ],
        out_specs=pl.BlockSpec((tb, 1), lambda i: (i, 0)),
        compiler_params=pltpu.CompilerParams(
            dimension_semantics=("parallel",),
            vmem_limit_bytes=vmem_limit,
        ),
        cost_estimate=cost,
    )(z_pad, w1p, b1p, w2p, b2p, w3row, b3s)

    return out[:batch]


def discriminator_reference(z, params):
    """Pure-JAX reference (eval-mode dropout = identity)."""
    w1, b1, w2, b2, w3, b3 = params
    h = z @ w1 + b1
    h = jnp.where(h > 0, h, 0.2 * h)
    h = h @ w2 + b2
    h = jnp.where(h > 0, h, 0.2 * h)
    logit = h @ w3 + b3
    return jax.nn.sigmoid(logit)


def init_params(key, z_dim, N):
    """Parameter init matching nn.Linear shapes (weights pre-transposed)."""
    k1, k2, k3, k4, k5, k6 = jax.random.split(key, 6)

    def linear(kw, kb, fan_in, fan_out):
        bound = 1.0 / jnp.sqrt(jnp.float32(fan_in))
        w = jax.random.uniform(kw, (fan_in, fan_out), jnp.float32, -bound, bound)
        b = jax.random.uniform(kb, (1, fan_out), jnp.float32, -bound, bound)
        return w, b

    w1, b1 = linear(k1, k2, z_dim, N)
    w2, b2 = linear(k3, k4, N, N)
    w3, b3 = linear(k5, k6, N, 1)
    return (w1, b1, w2, b2, w3, b3)


if __name__ == "__main__":
    # Module defaults: discriminator(N=1000, z_dim=120); small batch.
    B, Z_DIM, N = 64, 120, 1000

    key = jax.random.PRNGKey(0)
    k_params, k_z = jax.random.split(key)
    params = init_params(k_params, Z_DIM, N)
    z = jax.random.normal(k_z, (B, Z_DIM), dtype=jnp.float32)

    out = discriminator_forward(z, params)
    out = jax.block_until_ready(out)

    ref = discriminator_reference(z, params)

    assert out.shape == (B, 1), out.shape
    # approx EUP reciprocal can deviate ~1e-3; allow a small tolerance.
    assert bool(jnp.all((out >= -1e-3) & (out <= 1.0 + 1e-3))), "sigmoid range"
    assert bool(jnp.allclose(out, ref, atol=1e-2, rtol=1e-2)), "mismatch vs reference"
    print("KERNEL_OK")
</pallas_src>

<mosaic_0001>
module attributes {stable_mosaic.version = 11 : i64} {
  func.func @_disc_kernel(%arg0: i32, %arg1: memref<64x128xf32, #tpu.memory_space<vmem>>, %arg2: memref<128x1024xf32, #tpu.memory_space<vmem>>, %arg3: memref<1x1024xf32, #tpu.memory_space<vmem>>, %arg4: memref<1024x1024xf32, #tpu.memory_space<vmem>>, %arg5: memref<1x1024xf32, #tpu.memory_space<vmem>>, %arg6: memref<1x1024xf32, #tpu.memory_space<vmem>>, %arg7: memref<1x1xf32, #tpu.memory_space<smem>>, %arg8: memref<64x1xf32, #tpu.memory_space<vmem>>) attributes {dimension_semantics = [#tpu.dimension_semantics<parallel>], iteration_bounds = array<i64: 1>, scalar_prefetch = 0 : i64, scratch_operands = 0 : i64, tpu.core_type = #tpu.core_type<tc>, window_params = [{transform_indices = @transform_0, window_bounds = array<i64: 64, 128>}, {pipeline_mode = #tpu.pipeline_mode<synchronous>, transform_indices = @transform_1, window_bounds = array<i64: 128, 1024>}, {pipeline_mode = #tpu.pipeline_mode<synchronous>, transform_indices = @transform_2, window_bounds = array<i64: 1, 1024>}, {pipeline_mode = #tpu.pipeline_mode<synchronous>, transform_indices = @transform_3, window_bounds = array<i64: 1024, 1024>}, {pipeline_mode = #tpu.pipeline_mode<synchronous>, transform_indices = @transform_4, window_bounds = array<i64: 1, 1024>}, {pipeline_mode = #tpu.pipeline_mode<synchronous>, transform_indices = @transform_5, window_bounds = array<i64: 1, 1024>}, {transform_indices = @transform_6, window_bounds = array<i64: 1, 1>}, {transform_indices = @transform_7, window_bounds = array<i64: 64, 1>}]} {
    %c0 = arith.constant 0 : index
    %c0_0 = arith.constant 0 : index
    %0 = vector.load %arg1[%c0, %c0_0] : memref<64x128xf32, #tpu.memory_space<vmem>>, vector<64x128xf32>
    %c0_1 = arith.constant 0 : index
    %c0_2 = arith.constant 0 : index
    %1 = vector.load %arg2[%c0_1, %c0_2] : memref<128x1024xf32, #tpu.memory_space<vmem>>, vector<128x1024xf32>
    %cst = arith.constant dense<0.000000e+00> : vector<64x1024xf32>
    %2 = tpu.matmul %0, %1, %cst {dimension_numbers = #tpu.dot_dimension_numbers<[1], [0], [0], [1], [0, 0, 1, 1], [], []>} : vector<64x128xf32>, vector<128x1024xf32>, vector<64x1024xf32> -> vector<64x1024xf32>
    %c0_3 = arith.constant 0 : index
    %c0_4 = arith.constant 0 : index
    %3 = vector.load %arg3[%c0_3, %c0_4] : memref<1x1024xf32, #tpu.memory_space<vmem>>, vector<1x1024xf32>
    %4 = vector.broadcast %3 : vector<1x1024xf32> to vector<64x1024xf32>
    %5 = arith.addf %2, %4 : vector<64x1024xf32>
    %cst_5 = arith.constant 2.000000e-01 : f32
    %6 = vector.broadcast %cst_5 : f32 to vector<64x1024xf32>
    %7 = arith.mulf %6, %5 : vector<64x1024xf32>
    %8 = arith.maximumf %5, %7 : vector<64x1024xf32>
    %c0_6 = arith.constant 0 : index
    %c0_7 = arith.constant 0 : index
    %9 = vector.load %arg4[%c0_6, %c0_7] : memref<1024x1024xf32, #tpu.memory_space<vmem>>, vector<1024x1024xf32>
    %cst_8 = arith.constant dense<0.000000e+00> : vector<64x1024xf32>
    %10 = tpu.matmul %8, %9, %cst_8 {dimension_numbers = #tpu.dot_dimension_numbers<[1], [0], [0], [1], [0, 0, 1, 1], [], []>} : vector<64x1024xf32>, vector<1024x1024xf32>, vector<64x1024xf32> -> vector<64x1024xf32>
    %c0_9 = arith.constant 0 : index
    %c0_10 = arith.constant 0 : index
    %11 = vector.load %arg5[%c0_9, %c0_10] : memref<1x1024xf32, #tpu.memory_space<vmem>>, vector<1x1024xf32>
    %12 = vector.broadcast %11 : vector<1x1024xf32> to vector<64x1024xf32>
    %13 = arith.addf %10, %12 : vector<64x1024xf32>
    %cst_11 = arith.constant 2.000000e-01 : f32
    %14 = vector.broadcast %cst_11 : f32 to vector<64x1024xf32>
    %15 = arith.mulf %14, %13 : vector<64x1024xf32>
    %16 = arith.maximumf %13, %15 : vector<64x1024xf32>
    %c0_12 = arith.constant 0 : index
    %c0_13 = arith.constant 0 : index
    %17 = vector.load %arg6[%c0_12, %c0_13] : memref<1x1024xf32, #tpu.memory_space<vmem>>, vector<1x1024xf32>
    %18 = vector.broadcast %17 : vector<1x1024xf32> to vector<64x1024xf32>
    %19 = arith.mulf %16, %18 : vector<64x1024xf32>
    %cst_14 = arith.constant dense<0.000000e+00> : vector<64xf32>
    %20 = vector.multi_reduction <add>, %19, %cst_14 [1] : vector<64x1024xf32> to vector<64xf32>
    %21 = vector.shape_cast %20 : vector<64xf32> to vector<64x1xf32>
    %c0_15 = arith.constant 0 : index
    %c0_16 = arith.constant 0 : index
    %22 = memref.load %arg7[%c0_15, %c0_16] : memref<1x1xf32, #tpu.memory_space<smem>>
    %23 = vector.broadcast %22 : f32 to vector<64x1xf32>
    %24 = arith.addf %21, %23 : vector<64x1xf32>
    %cst_17 = arith.constant 0.000000e+00 : f32
    %25 = vector.broadcast %cst_17 : f32 to vector<64x1xf32>
    %26 = arith.subf %25, %24 : vector<64x1xf32>
    %27 = math.exp %26 : vector<64x1xf32>
    %cst_18 = arith.constant 1.000000e+00 : f32
    %28 = vector.broadcast %cst_18 : f32 to vector<64x1xf32>
    %29 = arith.addf %28, %27 : vector<64x1xf32>
    %30 = tpu.reciprocal %29 {approx = true} : vector<64x1xf32> -> vector<64x1xf32>
    %c0_19 = arith.constant 0 : index
    %c0_20 = arith.constant 0 : index
    %31 = vector.load %arg8[%c0_19, %c0_20] : memref<64x1xf32, #tpu.memory_space<vmem>>, vector<64x1xf32>
    tpu.vector_store %arg8[%c0_19, %c0_20], %30 {strides = array<i32>} : memref<64x1xf32, #tpu.memory_space<vmem>>, vector<64x1xf32>,
    return
  }
  func.func @transform_0(%arg0: i32) -> (i32, i32) {
    %c0_i32 = arith.constant 0 : i32
    %c0_i32_0 = arith.constant 0 : i32
    return %arg0, %c0_i32 : i32, i32
  }
  func.func @transform_1(%arg0: i32) -> (i32, i32) {
    %c0_i32 = arith.constant 0 : i32
    %c0_i32_0 = arith.constant 0 : i32
    %c0_i32_1 = arith.constant 0 : i32
    return %c0_i32, %c0_i32_0 : i32, i32
  }
  func.func @transform_2(%arg0: i32) -> (i32, i32) {
    %c0_i32 = arith.constant 0 : i32
    %c0_i32_0 = arith.constant 0 : i32
    %c0_i32_1 = arith.constant 0 : i32
    return %c0_i32, %c0_i32_0 : i32, i32
  }
  func.func @transform_3(%arg0: i32) -> (i32, i32) {
    %c0_i32 = arith.constant 0 : i32
    %c0_i32_0 = arith.constant 0 : i32
    %c0_i32_1 = arith.constant 0 : i32
    return %c0_i32, %c0_i32_0 : i32, i32
  }
  func.func @transform_4(%arg0: i32) -> (i32, i32) {
    %c0_i32 = arith.constant 0 : i32
    %c0_i32_0 = arith.constant 0 : i32
    %c0_i32_1 = arith.constant 0 : i32
    return %c0_i32, %c0_i32_0 : i32, i32
  }
  func.func @transform_5(%arg0: i32) -> (i32, i32) {
    %c0_i32 = arith.constant 0 : i32
    %c0_i32_0 = arith.constant 0 : i32
    %c0_i32_1 = arith.constant 0 : i32
    return %c0_i32, %c0_i32_0 : i32, i32
  }
  func.func @transform_6(%arg0: i32) -> (i32, i32) {
    %c0_i32 = arith.constant 0 : i32
    %c0_i32_0 = arith.constant 0 : i32
    %c0_i32_1 = arith.constant 0 : i32
    return %c0_i32, %c0_i32_0 : i32, i32
  }
  func.func @transform_7(%arg0: i32) -> (i32, i32) {
    %c0_i32 = arith.constant 0 : i32
    %c0_i32_0 = arith.constant 0 : i32
    return %arg0, %c0_i32 : i32, i32
  }
}

</mosaic_0001>

<bundles_post_ra>
// kernel: tpu_custom_call.1
= control target key start
LH: loop header
LB: loop body
LE: loop exit
PB: predicated region body
PF: predicated region fallthrough
CT: control target
= control target key end

     0   :  { %13 = vsyncpa [#allocation4], 0  ;;  %s7365_s0 = inlined_call_operand.hbm [shape: f32[64,128], index: 0, kind: input, shape index: {}]   ;;  %s7366_s1 = inlined_call_operand.hbm [shape: f32[128,1024], index: 1, kind: input, shape index: {}]   ;;  %s7367_s2 = inlined_call_operand.hbm [shape: f32[1,1024], index: 2, kind: input, shape index: {}]   ;;  %s7368_s3 = inlined_call_operand.hbm [shape: f32[1024,1024], index: 3, kind: input, shape index: {}]   ;;  %s7369_s4 = inlined_call_operand.hbm [shape: f32[1,1024], index: 4, kind: input, shape index: {}]   ;;  %s7370_s5 = inlined_call_operand.hbm [shape: f32[1,1024], index: 5, kind: input, shape index: {}]   ;;  %s7371_s6 = inlined_call_operand.<no memory space> [shape: f32[1,1], index: 6, kind: input, shape index: {}]   ;;  %s7372_s7 = inlined_call_operand.vmem [shape: f32[64,1], index: 7, kind: output, shape index: {}]  }
   0x1   :  { %14 = vsyncpa [#allocation6], 0 }
   0x2   :  { %15 = vsyncpa [#allocation9], 0 }
   0x3   :  { %16 = vsyncpa [#allocation12], 0  ;;  %s5700_s24 = smov [#allocation5]   ;;  %s5560_s28 = scalar_lea.hbm %s7366_s1, 16384 }
   0x4   :  { %s34_s25 = sshll.u32 %s5700_s24, 4  ;;  %p5561_p0 = scmp.ne.s32.totalorder %s7366_s1, %s5560_s28  ;;  %s35_s25 = int_to_ptr.vmem [resolvable:$true] %s34_s25 }
   0x5   :  { %p5564_p1 = scmp.lt.u32.totalorder %s5560_s28, %s7366_s1 }
   0x7   :  { %p5566_p2 = pnand %p5564_p1, %p5561_p0 }
   0x9   :  { %5569 = shalt.err (!%p5566_p2)
}
   0xa   :  { %s5570_s10 = scalar_lea.vmem %s35_s25, 16384  ;;  %p5575_p4 = scmp.lt.s32.totalorder %s35_s25, %s35_s25 }
   0xb   :  { %p5571_p3 = scmp.ne.s32.totalorder %s35_s25, %s5570_s10  ;;  %p5576_p5 = scmp.lt.s32.totalorder %s5570_s10, %s5570_s10 }
   0xd   :  { %p5577_p6 = por %p5576_p5, %p5575_p4 }
   0xf   :  { %p5578_p7 = pnand %p5577_p6, %p5571_p3 }
  0x11   :  { %5581 = shalt.err (!%p5578_p7)
}
  0x12   :  { %s5701_s11 = smov 1024   ;;  %s5702_s12 = smov 64  }
  0x13   :  { %40 = dma.hbm_to_vmem [thread:$0]  %s7366_s1, 16384, %s35_s25, [#allocation6], %s5701_s11, %s5701_s11, %s5702_s12  }
  0x14   :  { %s5703_s15 = smov [#allocation8]   ;;  %s5704_s17 = smov [#allocation3]  }
  0x15   :  { %s56_s16 = sshll.u32 %s5703_s15, 4  ;;  %s22_s18 = sshll.u32 %s5704_s17, 4  ;;  %s57_s16 = int_to_ptr.vmem [resolvable:$true] %s56_s16  ;;  %s23_s18 = int_to_ptr.vmem [resolvable:$true] %s22_s18 }
  0x16   :  { %s5582_s21 = scalar_lea.hbm %s7368_s3, 131072 }
  0x17   :  { %p5583_p8 = scmp.ne.s32.totalorder %s7368_s3, %s5582_s21  ;;  %p5586_p9 = scmp.lt.u32.totalorder %s5582_s21, %s7368_s3 }
  0x19   :  { %p5588_p10 = pnand %p5586_p9, %p5583_p8 }
  0x1b   :  { %5591 = shalt.err (!%p5588_p10)
}
  0x1c   :  { %s5592_s1 = scalar_lea.vmem %s57_s16, 131072  ;;  %p5597_p12 = scmp.lt.s32.totalorder %s57_s16, %s57_s16 }
  0x1d   :  { %p5593_p11 = scmp.ne.s32.totalorder %s57_s16, %s5592_s1  ;;  %p5598_p13 = scmp.lt.s32.totalorder %s5592_s1, %s5592_s1 }
  0x1f   :  { %p5599_p0 = por %p5598_p13, %p5597_p12 }
  0x21   :  { %p5600_p1 = pnand %p5599_p0, %p5593_p11 }
  0x23   :  { %5603 = shalt.err (!%p5600_p1)
}
  0x24   :  { %62 = dma.hbm_to_vmem [thread:$0]  %s7368_s3, 131072, %s57_s16, [#allocation9], %s5701_s11, %s5701_s11, %s5702_s12  }
  0x25   :  { %s5604_s30 = scalar_lea.hbm %s7365_s0, 1024 }
  0x26   :  { %p5605_p2 = scmp.ne.s32.totalorder %s7365_s0, %s5604_s30  ;;  %p5608_p3 = scmp.lt.u32.totalorder %s5604_s30, %s7365_s0 }
  0x28   :  { %p5610_p4 = pnand %p5608_p3, %p5605_p2 }
  0x2a   :  { %5613 = shalt.err (!%p5610_p4)
}
  0x2b   :  { %s5614_s14 = scalar_lea.vmem %s23_s18, 1024  ;;  %p5619_p6 = scmp.lt.s32.totalorder %s23_s18, %s23_s18 }
  0x2c   :  { %p5615_p5 = scmp.ne.s32.totalorder %s23_s18, %s5614_s14  ;;  %p5620_p7 = scmp.lt.s32.totalorder %s5614_s14, %s5614_s14 }
  0x2e   :  { %p5621_p8 = por %p5620_p7, %p5619_p6 }
  0x30   :  { %p5622_p9 = pnand %p5621_p8, %p5615_p5 }
  0x32   :  { %5625 = shalt.err (!%p5622_p9)
}
  0x33   :  { %s5705_s3 = smov 128   ;;  %s5706_s11 = smov 8  }
  0x34   :  { %28 = dma.hbm_to_vmem [thread:$0]  %s7365_s0, 1024, %s23_s18, [#allocation4], %s5705_s3, %s5705_s3, %s5706_s11  }
  0x35   :  { %s5707_s16 = smov [#allocation7]   ;;  %s5708_s19 = smov [#allocation10]  }
  0x36   :  { %s47_s17 = sshll.u32 %s5707_s16, 4  ;;  %s69_s20 = sshll.u32 %s5708_s19, 4  ;;  %s48_s17 = int_to_ptr.vmem [resolvable:$true] %s47_s17  ;;  %s70_s20 = int_to_ptr.vmem [resolvable:$true] %s69_s20 }
  0x37   :  { %s5626_s23 = scalar_lea.hbm %s7367_s2, 128 }
  0x38   :  { %p5627_p10 = scmp.ne.s32.totalorder %s7367_s2, %s5626_s23  ;;  %p5630_p11 = scmp.lt.u32.totalorder %s5626_s23, %s7367_s2 }
  0x3a   :  { %p5632_p12 = pnand %p5630_p11, %p5627_p10 }
  0x3c   :  { %5635 = shalt.err (!%p5632_p12)
}
  0x3d   :  { %s5636_s0 = scalar_lea.vmem %s48_s17, 128  ;;  %p5641_p0 = scmp.lt.s32.totalorder %s48_s17, %s48_s17 }
  0x3e   :  { %p5637_p13 = scmp.ne.s32.totalorder %s48_s17, %s5636_s0  ;;  %p5642_p1 = scmp.lt.s32.totalorder %s5636_s0, %s5636_s0 }
  0x40   :  { %p5643_p2 = por %p5642_p1, %p5641_p0 }
  0x42   :  { %p5644_p3 = pnand %p5643_p2, %p5637_p13 }
  0x44   :  { %5647 = shalt.err (!%p5644_p3)
}
  0x45   :  { %50 = dma.hbm_to_vmem [thread:$0]  %s7367_s2, 128, %s48_s17, [#allocation6]  }
  0x46   :  { %s5648_s30 = scalar_lea.hbm %s7369_s4, 128 }
  0x47   :  { %p5649_p4 = scmp.ne.s32.totalorder %s7369_s4, %s5648_s30  ;;  %p5652_p5 = scmp.lt.u32.totalorder %s5648_s30, %s7369_s4 }
  0x49   :  { %p5654_p6 = pnand %p5652_p5, %p5649_p4 }
  0x4b   :  { %5657 = shalt.err (!%p5654_p6)
}
  0x4c   :  { %s5658_s14 = scalar_lea.vmem %s70_s20, 128  ;;  %p5663_p8 = scmp.lt.s32.totalorder %s70_s20, %s70_s20 }
  0x4d   :  { %p5659_p7 = scmp.ne.s32.totalorder %s70_s20, %s5658_s14  ;;  %p5664_p9 = scmp.lt.s32.totalorder %s5658_s14, %s5658_s14 }
  0x4f   :  { %p5665_p10 = por %p5664_p9, %p5663_p8 }
  0x51   :  { %p5666_p11 = pnand %p5665_p10, %p5659_p7 }
  0x53   :  { %5669 = shalt.err (!%p5666_p11)
}
  0x54   :  { %72 = dma.hbm_to_vmem [thread:$0]  %s7369_s4, 128, %s70_s20, [#allocation9]  }
  0x55   :  { %s5709_s11 = smov [#allocation11]   ;;  %s5670_s17 = scalar_lea.hbm %s7370_s5, 128 }
  0x56   :  { %s79_s12 = sshll.u32 %s5709_s11, 4  ;;  %p5671_p12 = scmp.ne.s32.totalorder %s7370_s5, %s5670_s17  ;;  %s80_s12 = int_to_ptr.vmem [resolvable:$true] %s79_s12 }
  0x57   :  { %p5674_p13 = scmp.lt.u32.totalorder %s5670_s17, %s7370_s5 }
  0x59   :  { %p5676_p0 = pnand %p5674_p13, %p5671_p12 }
  0x5b   :  { %5679 = shalt.err (!%p5676_p0)
}
  0x5c   :  { %s5680_s24 = scalar_lea.vmem %s80_s12, 128  ;;  %p5685_p2 = scmp.lt.s32.totalorder %s80_s12, %s80_s12 }
  0x5d   :  { %p5681_p1 = scmp.ne.s32.totalorder %s80_s12, %s5680_s24  ;;  %p5686_p3 = scmp.lt.s32.totalorder %s5680_s24, %s5680_s24 }
  0x5f   :  { %p5687_p4 = por %p5686_p3, %p5685_p2 }
  0x61   :  { %p5688_p5 = pnand %p5687_p4, %p5681_p1 }
  0x63   :  { %5691 = shalt.err (!%p5688_p5)
}
  0x64   :  { %82 = dma.hbm_to_vmem [thread:$0]  %s7370_s5, 128, %s80_s12, [#allocation12]  }
  0x65   :  { %5692 = dma.done.wait [#allocation4], 1024  }
  0x66   :  { %5693 = vsyncadd [#allocation4], 4294966272 }
  0x67   :  { %5694 = dma.done.wait [#allocation6], 16512  }
  0x68   :  { %5695 = vsyncadd [#allocation6], 4294950784 }
  0x69   :  { %5696 = dma.done.wait [#allocation9], 131200  }
  0x6a   :  { %5697 = vsyncadd [#allocation9], 4294836096 }
  0x6b   :  { %5698 = dma.done.wait [#allocation12], 128  }
  0x6c   :  { %5699 = vsyncadd [#allocation12], 4294967168  ;;  %v5710_v0 = vmov 0.0   ;;  %v112_v1 = vld [vmem:[#allocation5 + $0x8] sm:$0xff]  ;;  %v111_v3 = vld [vmem:[#allocation5] sm:$0xff]  ;;  %vm4091_vm0 = vcmask 7168  }
  0x6d   :  { %345 = vmatprep.mubr.f32.mxu0 %v5710_v0  ;;  %458 = vmatprep.mubr.f32.mxu1 %v5710_v0  ;;  %v120_v2 = vld [vmem:[#allocation5 + $0x48] sm:$0xff]  ;;  %v119_v5 = vld [vmem:[#allocation5 + $0x40] sm:$0xff]  ;;  %v114_v28 = vld [vmem:[#allocation5 + $0x18] sm:$0xff] }
  0x6e   :  { %v4108_v4 = vpack.c.bf16 %v120_v2, %v112_v1  ;;  %v128_v6 = vld [vmem:[#allocation5 + $0x88] sm:$0xff]  ;;  %v4110_v8 = vpack.c.bf16 %v119_v5, %v111_v3  ;;  %v127_v10 = vld [vmem:[#allocation5 + $0x80] sm:$0xff]  ;;  %v122_v29 = vld [vmem:[#allocation5 + $0x58] sm:$0xff] }
  0x6f   :  { %v136_v7 = vld [vmem:[#allocation5 + $0xc8] sm:$0xff]  ;;  %v135_v11 = vld [vmem:[#allocation5 + $0xc0] sm:$0xff]  ;;  %v113_v30 = vld [vmem:[#allocation5 + $0x10] sm:$0xff]  ;;  %v4140_v33 = vpack.c.bf16 %v122_v29, %v114_v28 }
  0x70   :  { %v4112_v9 = vpack.c.bf16 %v136_v7, %v128_v6  ;;  %v144_v12 = vld [vmem:[#allocation5 + $0x108] sm:$0xff]  ;;  %4109 = vmatprep.subr.bf16.mxu0 %v4108_v4  ;;  %v4114_v14 = vpack.c.bf16 %v135_v11, %v127_v10  ;;  %v143_v16 = vld [vmem:[#allocation5 + $0x100] sm:$0xff]  ;;  %v121_v34 = vld [vmem:[#allocation5 + $0x50] sm:$0xff] }
  0x71   :  { %v152_v13 = vld [vmem:[#allocation5 + $0x148] sm:$0xff]  ;;  %4111 = vmatpush1.bf16.msra.mxu0 %v4110_v8  ;;  %v151_v17 = vld [vmem:[#allocation5 + $0x140] sm:$0xff]  ;;  %v130_v35 = vld [vmem:[#allocation5 + $0x98] sm:$0xff]  ;;  %v4142_v37 = vpack.c.bf16 %v121_v34, %v113_v30  ;;  %4141 = vmatprep.subr.bf16.mxu1 %v4140_v33 }
  0x72   :  { %4113 = vmatprep.subr.bf16.mxu0 %v4112_v9  ;;  %v4116_v15 = vpack.c.bf16 %v152_v13, %v144_v12  ;;  %v160_v18 = vld [vmem:[#allocation5 + $0x188] sm:$0xff]  ;;  %v4118_v20 = vpack.c.bf16 %v151_v17, %v143_v16  ;;  %v159_v22 = vld [vmem:[#allocation5 + $0x180] sm:$0xff]  ;;  %v138_v38 = vld [vmem:[#allocation5 + $0xd8] sm:$0xff] }
  0x73   :  { %v168_v19 = vld [vmem:[#allocation5 + $0x1c8] sm:$0xff]  ;;  %v167_v23 = vld [vmem:[#allocation5 + $0x1c0] sm:$0xff]  ;;  %v129_v39 = vld [vmem:[#allocation5 + $0x90] sm:$0xff]  ;;  %v4144_v42 = vpack.c.bf16 %v138_v38, %v130_v35  ;;  %4143 = vmatpush1.bf16.msra.mxu1 %v4142_v37 }
  0x74   :  { %v4120_v21 = vpack.c.bf16 %v168_v19, %v160_v18  ;;  %v176_v24 = vld [vmem:[#allocation5 + $0x208] sm:$0xff]  ;;  %v175_v26 = vld [vmem:[#allocation5 + $0x200] sm:$0xff]  ;;  %v4122_v31 = vpack.c.bf16 %v167_v23, %v159_v22  ;;  %v137_v40 = vld [vmem:[#allocation5 + $0xd0] sm:$0xff] }
  0x75   :  { %4115 = vmatpush1.bf16.msra.mxu0 %v4114_v14  ;;  %v184_v25 = vld [vmem:[#allocation5 + $0x248] sm:$0xff]  ;;  %v183_v27 = vld [vmem:[#allocation5 + $0x240] sm:$0xff]  ;;  %v146_v43 = vld [vmem:[#allocation5 + $0x118] sm:$0xff]  ;;  %v4146_v45 = vpack.c.bf16 %v137_v40, %v129_v39  ;;  %4145 = vmatprep.subr.bf16.mxu1 %v4144_v42 }
  0x76   :  { %4117 = vmatprep.subr.bf16.mxu0 %v4116_v15  ;;  %v192_v32 = vld [vmem:[#allocation5 + $0x288] sm:$0xff]  ;;  %v4124_v36 = vpack.c.bf16 %v184_v25, %v176_v24  ;;  %v154_v44 = vld [vmem:[#allocation5 + $0x158] sm:$0xff]  ;;  %v4126_v46 = vpack.c.bf16 %v183_v27, %v175_v26  ;;  %v191_v47 = vld [vmem:[#allocation5 + $0x280] sm:$0xff] }
  0x77   :  { %v200_v41 = vld [vmem:[#allocation5 + $0x2c8] sm:$0xff]  ;;  %v4148_v48 = vpack.c.bf16 %v154_v44, %v146_v43  ;;  %v145_v49 = vld [vmem:[#allocation5 + $0x110] sm:$0xff]  ;;  %v199_v52 = vld [vmem:[#allocation5 + $0x2c0] sm:$0xff]  ;;  %4147 = vmatpush1.bf16.msra.mxu1 %v4146_v45 }
  0x78   :  { %v153_v50 = vld [vmem:[#allocation5 + $0x150] sm:$0xff]  ;;  %v4128_v51 = vpack.c.bf16 %v200_v41, %v192_v32  ;;  %v162_v53 = vld [vmem:[#allocation5 + $0x198] sm:$0xff]  ;;  %v208_v55 = vld [vmem:[#allocation5 + $0x308] sm:$0xff]  ;;  %v4130_v58 = vpack.c.bf16 %v199_v52, %v191_v47 }
  0x79   :  { %4119 = vmatpush1.bf16.msra.mxu0 %v4118_v20  ;;  %v170_v54 = vld [vmem:[#allocation5 + $0x1d8] sm:$0xff]  ;;  %v216_v56 = vld [vmem:[#allocation5 + $0x348] sm:$0xff]  ;;  %v4150_v57 = vpack.c.bf16 %v153_v50, %v145_v49  ;;  %v207_v59 = vld [vmem:[#allocation5 + $0x300] sm:$0xff]  ;;  %4149 = vmatprep.subr.bf16.mxu1 %v4148_v48 }
  0x7a   :  { %4121 = vmatprep.subr.bf16.mxu0 %v4120_v21  ;;  %v4152_v60 = vpack.c.bf16 %v170_v54, %v162_v53  ;;  %v161_v61 = vld [vmem:[#allocation5 + $0x190] sm:$0xff]  ;;  %v4132_v63 = vpack.c.bf16 %v216_v56, %v208_v55  ;;  %v215_v1 = vld [vmem:[#allocation5 + $0x340] sm:$0xff]  ;;  %v178_v2 = vld [vmem:[#allocation5 + $0x218] sm:$0xff] }
  0x7b   :  { %v169_v62 = vld [vmem:[#allocation5 + $0x1d0] sm:$0xff]  ;;  %v186_v3 = vld [vmem:[#allocation5 + $0x258] sm:$0xff]  ;;  %v224_v4 = vld [vmem:[#allocation5 + $0x388] sm:$0xff]  ;;  %4151 = vmatpush1.bf16.msra.mxu1 %v4150_v57  ;;  %v4134_v7 = vpack.c.bf16 %v215_v1, %v207_v59 }
  0x7c   :  { %v232_v5 = vld [vmem:[#allocation5 + $0x3c8] sm:$0xff]  ;;  %v4154_v6 = vpack.c.bf16 %v169_v62, %v161_v61  ;;  %v223_v8 = vld [vmem:[#allocation5 + $0x380] sm:$0xff]  ;;  %4153 = vmatprep.subr.bf16.mxu1 %v4152_v60  ;;  %v4156_v9 = vpack.c.bf16 %v186_v3, %v178_v2  ;;  %v177_v10 = vld [vmem:[#allocation5 + $0x210] sm:$0xff] }
  0x7d   :  { %4123 = vmatpush1.bf16.msra.mxu0 %v4122_v31  ;;  %v185_v11 = vld [vmem:[#allocation5 + $0x250] sm:$0xff]  ;;  %v4136_v12 = vpack.c.bf16 %v232_v5, %v224_v4  ;;  %v231_v13 = vld [vmem:[#allocation5 + $0x3c0] sm:$0xff]  ;;  %v194_v14 = vld [vmem:[#allocation5 + $0x298] sm:$0xff] }
  0x7e   :  { %4125 = vmatprep.subr.bf16.mxu0 %v4124_v36  ;;  %v202_v15 = vld [vmem:[#allocation5 + $0x2d8] sm:$0xff]  ;;  %v116_v16 = vld [vmem:[#allocation5 + $0x28] sm:$0xff]  ;;  %v4158_v18 = vpack.c.bf16 %v185_v11, %v177_v10  ;;  %v4138_v19 = vpack.c.bf16 %v231_v13, %v223_v8  ;;  %v193_v21 = vld [vmem:[#allocation5 + $0x290] sm:$0xff] }
  0x7f   :  { %v124_v17 = vld [vmem:[#allocation5 + $0x68] sm:$0xff]  ;;  %4155 = vmatpush1.bf16.msra.mxu1 %v4154_v6  ;;  %v4160_v20 = vpack.c.bf16 %v202_v15, %v194_v14  ;;  %v201_v22 = vld [vmem:[#allocation5 + $0x2d0] sm:$0xff]  ;;  %v210_v23 = vld [vmem:[#allocation5 + $0x318] sm:$0xff] }
  0x80   :  { %4157 = vmatprep.subr.bf16.mxu1 %v4156_v9  ;;  %v218_v24 = vld [vmem:[#allocation5 + $0x358] sm:$0xff]  ;;  %v4172_v25 = vpack.c.bf16 %v124_v17, %v116_v16  ;;  %v115_v26 = vld [vmem:[#allocation5 + $0x20] sm:$0xff]  ;;  %v4162_v28 = vpack.c.bf16 %v201_v22, %v193_v21  ;;  %v132_v29 = vld [vmem:[#allocation5 + $0xa8] sm:$0xff] }
  0x81   :  { %4127 = vmatpush1.bf16.msra.mxu0 %v4126_v46  ;;  %v123_v27 = vld [vmem:[#allocation5 + $0x60] sm:$0xff]  ;;  %v140_v30 = vld [vmem:[#allocation5 + $0xe8] sm:$0xff]  ;;  %v4164_v32 = vpack.c.bf16 %v218_v24, %v210_v23  ;;  %v209_v33 = vld [vmem:[#allocation5 + $0x310] sm:$0xff] }
  0x82   :  { %4129 = vmatprep.subr.bf16.mxu0 %v4128_v51  ;;  %v5825_v31 = vld [vmem:[#allocation3] sm:$0xff]  ;;  %v217_v34 = vld [vmem:[#allocation5 + $0x350] sm:$0xff]  ;;  %v226_v35 = vld [vmem:[#allocation5 + $0x398] sm:$0xff]  ;;  %v4174_v37 = vpack.c.bf16 %v123_v27, %v115_v26  ;;  %v4176_v38 = vpack.c.bf16 %v140_v30, %v132_v29 }
  0x83   :  { %4159 = vmatpush1.bf16.msra.mxu1 %v4158_v18  ;;  %v234_v36 = vld [vmem:[#allocation5 + $0x3d8] sm:$0xff]  ;;  %v131_v39 = vld [vmem:[#allocation5 + $0xa0] sm:$0xff]  ;;  %v4166_v41 = vpack.c.bf16 %v217_v34, %v209_v33  ;;  %v148_v42 = vld [vmem:[#allocation5 + $0x128] sm:$0xff] }
  0x84   :  { %4161 = vmatprep.subr.bf16.mxu1 %v4160_v20  ;;  %v139_v40 = vld [vmem:[#allocation5 + $0xe0] sm:$0xff]  ;;  %v156_v43 = vld [vmem:[#allocation5 + $0x168] sm:$0xff]  ;;  %v4168_v45 = vpack.c.bf16 %v234_v36, %v226_v35  ;;  %v225_v46 = vld [vmem:[#allocation5 + $0x390] sm:$0xff] }
  0x85   :  { %4131 = vmatpush1.bf16.msra.mxu0 %v4130_v58  ;;  %v5829_v44 = vld [vmem:[#allocation3 + $0x8] sm:$0xff]  ;;  %v233_v47 = vld [vmem:[#allocation5 + $0x3d0] sm:$0xff]  ;;  %v4178_v48 = vpack.c.bf16 %v139_v40, %v131_v39  ;;  %v118_v49 = vld [vmem:[#allocation5 + $0x38] sm:$0xff]  ;;  %v4180_v51 = vpack.c.bf16 %v156_v43, %v148_v42 }
  0x86   :  { %4133 = vmatprep.subr.bf16.mxu0 %v4132_v63  ;;  %v126_v50 = vld [vmem:[#allocation5 + $0x78] sm:$0xff]  ;;  %v147_v52 = vld [vmem:[#allocation5 + $0x120] sm:$0xff]  ;;  %v4170_v54 = vpack.c.bf16 %v233_v47, %v225_v46  ;;  %v164_v55 = vld [vmem:[#allocation5 + $0x1a8] sm:$0xff] }
  0x87   :  { %4163 = vmatpush1.bf16.msra.mxu1 %v4162_v28  ;;  %v155_v53 = vld [vmem:[#allocation5 + $0x160] sm:$0xff]  ;;  %v172_v56 = vld [vmem:[#allocation5 + $0x1e8] sm:$0xff]  ;;  %v5833_v57 = vld [vmem:[#allocation3 + $0x10] sm:$0xff]  ;;  %v4204_v58 = vpack.c.bf16 %v126_v50, %v118_v49 }
  0x88   :  { %4165 = vmatprep.subr.bf16.mxu1 %v4164_v32  ;;  %v4182_v59 = vpack.c.bf16 %v155_v53, %v147_v52  ;;  %v163_v60 = vld [vmem:[#allocation5 + $0x1a0] sm:$0xff]  ;;  %v117_v61 = vld [vmem:[#allocation5 + $0x30] sm:$0xff]  ;;  %v4184_v63 = vpack.c.bf16 %v172_v56, %v164_v55  ;;  %v134_v2 = vld [vmem:[#allocation5 + $0xb8] sm:$0xff] }
  0x89   :  { %4135 = vmatpush1.bf16.msra.mxu0 %v4134_v7  ;;  %v125_v62 = vld [vmem:[#allocation5 + $0x70] sm:$0xff]  ;;  %v171_v1 = vld [vmem:[#allocation5 + $0x1e0] sm:$0xff]  ;;  %v142_v3 = vld [vmem:[#allocation5 + $0xf8] sm:$0xff] }
  0x8a   :  { %4137 = vmatprep.subr.bf16.mxu0 %v4136_v12  ;;  %v180_v4 = vld [vmem:[#allocation5 + $0x228] sm:$0xff]  ;;  %v5837_v6 = vld [vmem:[#allocation3 + $0x18] sm:$0xff]  ;;  %v4206_v7 = vpack.c.bf16 %v125_v62, %v117_v61  ;;  %v4186_v8 = vpack.c.bf16 %v171_v1, %v163_v60  ;;  %v179_v9 = vld [vmem:[#allocation5 + $0x220] sm:$0xff]  ;;  %v4208_v10 = vpack.c.bf16 %v142_v3, %v134_v2 }
  0x8b   :  { %4167 = vmatpush1.bf16.msra.mxu1 %v4166_v41  ;;  %v188_v5 = vld [vmem:[#allocation5 + $0x268] sm:$0xff]  ;;  %v133_v11 = vld [vmem:[#allocation5 + $0xb0] sm:$0xff]  ;;  %v187_v14 = vld [vmem:[#allocation5 + $0x260] sm:$0xff] }
  0x8c   :  { %4169 = vmatprep.subr.bf16.mxu1 %v4168_v45  ;;  %v141_v12 = vld [vmem:[#allocation5 + $0xf0] sm:$0xff]  ;;  %v4188_v13 = vpack.c.bf16 %v188_v5, %v180_v4  ;;  %v150_v15 = vld [vmem:[#allocation5 + $0x138] sm:$0xff]  ;;  %v196_v17 = vld [vmem:[#allocation5 + $0x2a8] sm:$0xff]  ;;  %v4190_v21 = vpack.c.bf16 %v187_v14, %v179_v9 }
  0x8d   :  { %4139 = vmatpush1.bf16.msra.mxu0 %v4138_v19  ;;  %v158_v16 = vld [vmem:[#allocation5 + $0x178] sm:$0xff]  ;;  %v204_v18 = vld [vmem:[#allocation5 + $0x2e8] sm:$0xff]  ;;  %v5843_v19 = vld [vmem:[#allocation3 + $0x20] sm:$0xff]  ;;  %v4210_v20 = vpack.c.bf16 %v141_v12, %v133_v11 }
  0x8e   :  { %4173 = vmatprep.subr.bf16.mxu0 %v4172_v25  ;;  %v195_v22 = vld [vmem:[#allocation5 + $0x2a0] sm:$0xff]  ;;  %v4212_v23 = vpack.c.bf16 %v158_v16, %v150_v15  ;;  %v149_v24 = vld [vmem:[#allocation5 + $0x130] sm:$0xff]  ;;  %v4192_v26 = vpack.c.bf16 %v204_v18, %v196_v17  ;;  %v166_v28 = vld [vmem:[#allocation5 + $0x1b8] sm:$0xff] }
  0x8f   :  { %4171 = vmatpush1.bf16.msra.mxu1 %v4170_v54  ;;  %v157_v25 = vld [vmem:[#allocation5 + $0x170] sm:$0xff]  ;;  %v203_v27 = vld [vmem:[#allocation5 + $0x2e0] sm:$0xff]  ;;  %v174_v29 = vld [vmem:[#allocation5 + $0x1f8] sm:$0xff] }
  0x90   :  { %346 = vmatmul.mubr.f32.vlgmr.msra.gmra.mrb[0].mxu0 %v5825_v31  ;;  %4205 = vmatprep.subr.bf16.mxu1 %v4204_v58  ;;  %v212_v30 = vld [vmem:[#allocation5 + $0x328] sm:$0xff]  ;;  %v4214_v34 = vpack.c.bf16 %v157_v25, %v149_v24  ;;  %v4194_v35 = vpack.c.bf16 %v203_v27, %v195_v22  ;;  %v211_v36 = vld [vmem:[#allocation5 + $0x320] sm:$0xff]  ;;  %v173_v39 = vld [vmem:[#allocation5 + $0x1f0] sm:$0xff] }
  0x91   :  { %351 = vmatprep.mubr.f32.mxu0 %v5710_v0  ;;  %4175 = vmatpush1.bf16.msra.mxu0 %v4174_v37  ;;  %v220_v32 = vld [vmem:[#allocation5 + $0x368] sm:$0xff]  ;;  %v4216_v37 = vpack.c.bf16 %v174_v29, %v166_v28  ;;  %v219_v41 = vld [vmem:[#allocation5 + $0x360] sm:$0xff]  ;;  %v182_v42 = vld [vmem:[#allocation5 + $0x238] sm:$0xff] }
  0x92   :  { %4177 = vmatprep.subr.bf16.mxu0 %v4176_v38  ;;  %459 = vmatmul.mubr.f32.vlgmr.msra.gmra.mrb[0].mxu1 %v5825_v31  ;;  %v5849_v33 = vld [vmem:[#allocation3 + $0x28] sm:$0xff]  ;;  %v165_v38 = vld [vmem:[#allocation5 + $0x1b0] sm:$0xff]  ;;  %v4196_v40 = vpack.c.bf16 %v220_v32, %v212_v30  ;;  %v190_v43 = vld [vmem:[#allocation5 + $0x278] sm:$0xff]  ;;  %v4198_v49 = vpack.c.bf16 %v219_v41, %v211_v36 }
  0x93   :  { %464 = vmatprep.mubr.f32.mxu1 %v5710_v0  ;;  %4207 = vmatpush1.bf16.msra.mxu1 %v4206_v7  ;;  %v228_v45 = vld [vmem:[#allocation5 + $0x3a8] sm:$0xff]  ;;  %v5855_v47 = vld [vmem:[#allocation3 + $0x30] sm:$0xff]  ;;  %v227_v50 = vld [vmem:[#allocation5 + $0x3a0] sm:$0xff] }
  0x94   :  { %352 = vmatmul.mubr.f32.gmra.mrb[2].mxu0 %v5829_v44  ;;  %4209 = vmatprep.subr.bf16.mxu1 %v4208_v10  ;;  %v236_v46 = vld [vmem:[#allocation5 + $0x3e8] sm:$0xff]  ;;  %v181_v52 = vld [vmem:[#allocation5 + $0x230] sm:$0xff]  ;;  %v235_v55 = vld [vmem:[#allocation5 + $0x3e0] sm:$0xff] }
  0x95   :  { %357 = vmatprep.mubr.f32.mxu0 %v5710_v0  ;;  %4179 = vmatpush1.bf16.msra.mxu0 %v4178_v48  ;;  %v4218_v48 = vpack.c.bf16 %v173_v39, %v165_v38  ;;  %v189_v53 = vld [vmem:[#allocation5 + $0x270] sm:$0xff]  ;;  %v4200_v54 = vpack.c.bf16 %v236_v46, %v228_v45  ;;  %v198_v56 = vld [vmem:[#allocation5 + $0x2b8] sm:$0xff]  ;;  %v869_v9 = vld [vmem:[#allocation8 + $0x40] sm:$0xff] }
  0x96   :  { %4181 = vmatprep.subr.bf16.mxu0 %v4180_v51  ;;  %465 = vmatmul.mubr.f32.gmra.mrb[2].mxu1 %v5829_v44  ;;  %v4220_v51 = vpack.c.bf16 %v190_v43, %v182_v42  ;;  %v206_v58 = vld [vmem:[#allocation5 + $0x2f8] sm:$0xff]  ;;  %v870_v60 = vld [vmem:[#allocation8 + $0x48] sm:$0xff]  ;;  %v4222_v62 = vpack.c.bf16 %v189_v53, %v181_v52  ;;  %v885_v22 = vld [vmem:[#allocation8 + $0xc0] sm:$0xff] }
  0x97   :  { %470 = vmatprep.mubr.f32.mxu1 %v5710_v0  ;;  %4211 = vmatpush1.bf16.msra.mxu1 %v4210_v20  ;;  %v5861_v61 = vld [vmem:[#allocation3 + $0x38] sm:$0xff]  ;;  %v4224_v1 = vpack.c.bf16 %v206_v58, %v198_v56  ;;  %v197_v2 = vld [vmem:[#allocation5 + $0x2b0] sm:$0xff]  ;;  %v864_v29 = vld [vmem:[#allocation8 + $0x18] sm:$0xff] }
  0x98   :  { %358 = vmatmul.mubr.f32.gmra.mrb[4].mxu0 %v5833_v57  ;;  %4213 = vmatprep.subr.bf16.mxu1 %v4212_v23  ;;  %v205_v3 = vld [vmem:[#allocation5 + $0x2f0] sm:$0xff]  ;;  %v214_v4 = vld [vmem:[#allocation5 + $0x338] sm:$0xff]  ;;  %v872_v30 = vld [vmem:[#allocation8 + $0x58] sm:$0xff] }
  0x99   :  { %363 = vmatprep.mubr.f32.mxu0 %v5710_v0  ;;  %4183 = vmatpush1.bf16.msra.mxu0 %v4182_v59  ;;  %v862_v59 = vld [vmem:[#allocation8 + $0x8] sm:$0xff]  ;;  %v222_v5 = vld [vmem:[#allocation5 + $0x378] sm:$0xff]  ;;  %v4226_v10 = vpack.c.bf16 %v205_v3, %v197_v2  ;;  %v901_v36 = vld [vmem:[#allocation8 + $0x140] sm:$0xff] }
  0x9a   :  { %4185 = vmatprep.subr.bf16.mxu0 %v4184_v63  ;;  %471 = vmatmul.mubr.f32.gmra.mrb[4].mxu1 %v5833_v57  ;;  %v4202_v63 = vpack.c.bf16 %v235_v55, %v227_v50  ;;  %v4236_v7 = vpack.c.bf16 %v870_v60, %v862_v59  ;;  %v878_v11 = vld [vmem:[#allocation8 + $0x88] sm:$0xff]  ;;  %v230_v16 = vld [vmem:[#allocation5 + $0x3b8] sm:$0xff]  ;;  %v880_v43 = vld [vmem:[#allocation8 + $0x98] sm:$0xff] }
  0x9b   :  { %476 = vmatprep.mubr.f32.mxu1 %v5710_v0  ;;  %4215 = vmatpush1.bf16.msra.mxu1 %v4214_v34  ;;  %v886_v12 = vld [vmem:[#allocation8 + $0xc8] sm:$0xff]  ;;  %v238_v17 = vld [vmem:[#allocation5 + $0x3f8] sm:$0xff]  ;;  %v888_v45 = vld [vmem:[#allocation8 + $0xd8] sm:$0xff] }
  0x9c   :  { %364 = vmatmul.mubr.f32.gmra.mrb[6].mxu0 %v5837_v6  ;;  %4217 = vmatprep.subr.bf16.mxu1 %v4216_v37  ;;  %v213_v14 = vld [vmem:[#allocation5 + $0x330] sm:$0xff]  ;;  %v4240_v20 = vpack.c.bf16 %v886_v12, %v878_v11  ;;  %v863_v41 = vld [vmem:[#allocation8 + $0x10] sm:$0xff]  ;;  %v917_v50 = vld [vmem:[#allocation8 + $0x1c0] sm:$0xff] }
  0x9d   :  { %369 = vmatprep.mubr.f32.mxu0 %v5710_v0  ;;  %4187 = vmatpush1.bf16.msra.mxu0 %v4186_v8  ;;  %v861_v8 = vld [vmem:[#allocation8] sm:$0xff]  ;;  %v221_v15 = vld [vmem:[#allocation5 + $0x370] sm:$0xff]  ;;  %v871_v42 = vld [vmem:[#allocation8 + $0x50] sm:$0xff] }
  0x9e   :  { %4189 = vmatprep.subr.bf16.mxu0 %v4188_v13  ;;  %477 = vmatmul.mubr.f32.gmra.mrb[6].mxu1 %v5837_v6  ;;  %v4228_v13 = vpack.c.bf16 %v222_v5, %v214_v4  ;;  %v4238_v18 = vpack.c.bf16 %v869_v9, %v861_v8  ;;  %v4230_v23 = vpack.c.bf16 %v221_v15, %v213_v14  ;;  %v894_v24 = vld [vmem:[#allocation8 + $0x108] sm:$0xff]  ;;  %v879_v55 = vld [vmem:[#allocation8 + $0x90] sm:$0xff]  ;;  %v896_v58 = vld [vmem:[#allocation8 + $0x118] sm:$0xff] }
  0x9f   :  { %482 = vmatprep.mubr.f32.mxu1 %v5710_v0  ;;  %4219 = vmatpush1.bf16.msra.mxu1 %v4218_v48  ;;  %v902_v25 = vld [vmem:[#allocation8 + $0x148] sm:$0xff]  ;;  %v887_v56 = vld [vmem:[#allocation8 + $0xd0] sm:$0xff]  ;;  %v904_v59 = vld [vmem:[#allocation8 + $0x158] sm:$0xff] }
  0xa0   :  { %370 = vmatmul.mubr.f32.gmra.mrb[8].mxu0 %v5843_v19  ;;  %4221 = vmatprep.subr.bf16.mxu1 %v4220_v51  ;;  %v229_v27 = vld [vmem:[#allocation5 + $0x3b0] sm:$0xff]  ;;  %v4244_v34 = vpack.c.bf16 %v902_v25, %v894_v24  ;;  %v4494_v51 = vpack.c.bf16 %v871_v42, %v863_v41  ;;  %v4498_v2 = vpack.c.bf16 %v887_v56, %v879_v55  ;;  %v903_v8 = vld [vmem:[#allocation8 + $0x150] sm:$0xff]  ;;  %v912_v9 = vld [vmem:[#allocation8 + $0x198] sm:$0xff] }
  0xa1   :  { %375 = vmatprep.mubr.f32.mxu0 %v5710_v0  ;;  %4191 = vmatpush1.bf16.msra.mxu0 %v4190_v21  ;;  %v877_v21 = vld [vmem:[#allocation8 + $0x80] sm:$0xff]  ;;  %v237_v28 = vld [vmem:[#allocation5 + $0x3f0] sm:$0xff]  ;;  %v4500_v5 = vpack.c.bf16 %v904_v59, %v896_v58  ;;  %v959_v56 = vld [vmem:[#allocation8 + $0x310] sm:$0xff] }
  0xa2   :  { %4193 = vmatprep.subr.bf16.mxu0 %v4192_v26  ;;  %483 = vmatmul.mubr.f32.gmra.mrb[8].mxu1 %v5843_v19  ;;  %v4232_v26 = vpack.c.bf16 %v238_v17, %v230_v16  ;;  %v4242_v32 = vpack.c.bf16 %v885_v22, %v877_v21  ;;  %v4234_v37 = vpack.c.bf16 %v237_v28, %v229_v27  ;;  %v910_v38 = vld [vmem:[#allocation8 + $0x188] sm:$0xff]  ;;  %v941_v12 = vld [vmem:[#allocation8 + $0x280] sm:$0xff]  ;;  %v928_v21 = vld [vmem:[#allocation8 + $0x218] sm:$0xff] }
  0xa3   :  { %488 = vmatprep.mubr.f32.mxu1 %v5710_v0  ;;  %4223 = vmatpush1.bf16.msra.mxu1 %v4222_v62  ;;  %v918_v39 = vld [vmem:[#allocation8 + $0x1c8] sm:$0xff]  ;;  %v936_v22 = vld [vmem:[#allocation8 + $0x258] sm:$0xff]  ;;  %v957_v24 = vld [vmem:[#allocation8 + $0x300] sm:$0xff] }
  0xa4   :  { %376 = vmatmul.mubr.f32.gmra.mrb[10].mxu0 %v5849_v33  ;;  %4225 = vmatprep.subr.bf16.mxu1 %v4224_v1  ;;  %v4248_v48 = vpack.c.bf16 %v918_v39, %v910_v38  ;;  %v926_v52 = vld [vmem:[#allocation8 + $0x208] sm:$0xff]  ;;  %v933_v1 = vld [vmem:[#allocation8 + $0x240] sm:$0xff]  ;;  %v967_v58 = vld [vmem:[#allocation8 + $0x350] sm:$0xff] }
  0xa5   :  { %381 = vmatprep.mubr.f32.mxu0 %v5710_v0  ;;  %4195 = vmatpush1.bf16.msra.mxu0 %v4194_v35  ;;  %v893_v35 = vld [vmem:[#allocation8 + $0x100] sm:$0xff]  ;;  %v934_v53 = vld [vmem:[#allocation8 + $0x248] sm:$0xff]  ;;  %v976_v59 = vld [vmem:[#allocation8 + $0x398] sm:$0xff] }
  0xa6   :  { %4197 = vmatprep.subr.bf16.mxu0 %v4196_v40  ;;  %489 = vmatmul.mubr.f32.gmra.mrb[10].mxu1 %v5849_v33  ;;  %v4492_v40 = vpack.c.bf16 %v872_v30, %v864_v29  ;;  %v4246_v46 = vpack.c.bf16 %v901_v36, %v893_v35  ;;  %v4252_v62 = vpack.c.bf16 %v934_v53, %v926_v52  ;;  %v942_v3 = vld [vmem:[#allocation8 + $0x288] sm:$0xff]  ;;  %v965_v25 = vld [vmem:[#allocation8 + $0x340] sm:$0xff]  ;;  %v927_v30 = vld [vmem:[#allocation8 + $0x210] sm:$0xff] }
  0xa7   :  { %494 = vmatprep.mubr.f32.mxu1 %v5710_v0  ;;  %4227 = vmatpush1.bf16.msra.mxu1 %v4226_v10  ;;  %v950_v4 = vld [vmem:[#allocation8 + $0x2c8] sm:$0xff]  ;;  %v920_v10 = vld [vmem:[#allocation8 + $0x1d8] sm:$0xff]  ;;  %v4508_v29 = vpack.c.bf16 %v936_v22, %v928_v21  ;;  %v4262_v36 = vpack.c.bf16 %v965_v25, %v957_v24  ;;  %v981_v38 = vld [vmem:[#allocation8 + $0x3c0] sm:$0xff] }
  0xa8   :  { %382 = vmatmul.mubr.f32.gmra.mrb[12].mxu0 %v5855_v47  ;;  %4229 = vmatprep.subr.bf16.mxu1 %v4228_v13  ;;  %v4256_v11 = vpack.c.bf16 %v950_v4, %v942_v3  ;;  %v949_v13 = vld [vmem:[#allocation8 + $0x2c0] sm:$0xff]  ;;  %v958_v15 = vld [vmem:[#allocation8 + $0x308] sm:$0xff]  ;;  %v4504_v17 = vpack.c.bf16 %v920_v10, %v912_v9  ;;  %v952_v35 = vld [vmem:[#allocation8 + $0x2d8] sm:$0xff] }
  0xa9   :  { %387 = vmatprep.mubr.f32.mxu0 %v5710_v0  ;;  %4199 = vmatpush1.bf16.msra.mxu0 %v4198_v49  ;;  %v909_v49 = vld [vmem:[#allocation8 + $0x180] sm:$0xff]  ;;  %v966_v16 = vld [vmem:[#allocation8 + $0x348] sm:$0xff]  ;;  %v992_v9 = vld [vmem:[#allocation8 + $0x418] sm:$0xff] }
  0xaa   :  { %4201 = vmatprep.subr.bf16.mxu0 %v4200_v54  ;;  %495 = vmatmul.mubr.f32.gmra.mrb[12].mxu1 %v5855_v47  ;;  %v4496_v54 = vpack.c.bf16 %v888_v45, %v880_v43  ;;  %v4250_v60 = vpack.c.bf16 %v917_v50, %v909_v49  ;;  %v974_v27 = vld [vmem:[#allocation8 + $0x388] sm:$0xff]  ;;  %v943_v43 = vld [vmem:[#allocation8 + $0x290] sm:$0xff]  ;;  %v989_v50 = vld [vmem:[#allocation8 + $0x400] sm:$0xff] }
  0xab   :  { %500 = vmatprep.mubr.f32.mxu1 %v5710_v0  ;;  %4231 = vmatpush1.bf16.msra.mxu1 %v4230_v23  ;;  %v4258_v23 = vpack.c.bf16 %v949_v13, %v941_v12  ;;  %v982_v28 = vld [vmem:[#allocation8 + $0x3c8] sm:$0xff]  ;;  %v951_v45 = vld [vmem:[#allocation8 + $0x2d0] sm:$0xff]  ;;  %v1000_v10 = vld [vmem:[#allocation8 + $0x458] sm:$0xff] }
  0xac   :  { %388 = vmatmul.mubr.f32.gmra.mrb[14].mxu0 %v5861_v61  ;;  %4233 = vmatprep.subr.bf16.mxu1 %v4232_v26  ;;  %v998_v41 = vld [vmem:[#allocation8 + $0x448] sm:$0xff]  ;;  %v4514_v52 = vpack.c.bf16 %v951_v45, %v943_v43  ;;  %v1021_v12 = vld [vmem:[#allocation8 + $0x500] sm:$0xff]  ;;  %v1016_v21 = vld [vmem:[#allocation8 + $0x4d8] sm:$0xff] }
  0xad   :  { %571 = vmatprep.mubr.f32.mxu0 %v5710_v0  ;;  %4203 = vmatpush1.bf16.msra.mxu0 %v4202_v63  ;;  %v925_v63 = vld [vmem:[#allocation8 + $0x200] sm:$0xff]  ;;  %v1006_v53 = vld [vmem:[#allocation8 + $0x488] sm:$0xff] }
  0xae   :  { %4237 = vmatprep.subr.bf16.mxu0 %v4236_v7  ;;  %501 = vmatmul.mubr.f32.gmra.mrb[14].mxu1 %v5861_v61  ;;  %v895_v7 = vld [vmem:[#allocation8 + $0x110] sm:$0xff]  ;;  %v1022_v3 = vld [vmem:[#allocation8 + $0x508] sm:$0xff]  ;;  %v1029_v13 = vld [vmem:[#allocation8 + $0x540] sm:$0xff] }
  0xaf   :  { %684 = vmatprep.mubr.f32.mxu1 %v5710_v0  ;;  %4235 = vmatpush1.bf16.msra.mxu1 %v4234_v37  ;;  %v4502_v14 = vpack.c.bf16 %v903_v8, %v895_v7  ;;  %v973_v37 = vld [vmem:[#allocation8 + $0x380] sm:$0xff]  ;;  %v1030_v4 = vld [vmem:[#allocation8 + $0x548] sm:$0xff]  ;;  %v975_v7 = vld [vmem:[#allocation8 + $0x390] sm:$0xff]  ;;  %v4278_v22 = vpack.c.bf16 %v1029_v13, %v1021_v12 }
  0xb0   :  { %572 = vmatmul.mubr.f32.vlgmr.msra.gmra.mrb[16].mxu0 %v5825_v31  ;;  %4493 = vmatprep.subr.bf16.mxu1 %v4492_v40  ;;  %v990_v40 = vld [vmem:[#allocation8 + $0x408] sm:$0xff]  ;;  %v4266_v49 = vpack.c.bf16 %v981_v38, %v973_v37  ;;  %v983_v8 = vld [vmem:[#allocation8 + $0x3d0] sm:$0xff]  ;;  %v1045_v24 = vld [vmem:[#allocation8 + $0x5c0] sm:$0xff] }
  0xb1   :  { %577 = vmatprep.mubr.f32.mxu0 %v5710_v0  ;;  %4239 = vmatpush1.bf16.msra.mxu0 %v4238_v18  ;;  %v911_v18 = vld [vmem:[#allocation8 + $0x190] sm:$0xff]  ;;  %v1054_v25 = vld [vmem:[#allocation8 + $0x608] sm:$0xff] }
  0xb2   :  { %4241 = vmatprep.subr.bf16.mxu0 %v4240_v20  ;;  %685 = vmatmul.mubr.f32.vlgmr.msra.gmra.mrb[16].mxu1 %v5825_v31  ;;  %v4254_v31 = vpack.c.bf16 %v933_v1, %v925_v63  ;;  %v919_v20 = vld [vmem:[#allocation8 + $0x1d0] sm:$0xff]  ;;  %v1005_v1 = vld [vmem:[#allocation8 + $0x480] sm:$0xff]  ;;  %v1070_v37 = vld [vmem:[#allocation8 + $0x688] sm:$0xff] }
  0xb3   :  { %4495 = vmatpush1.bf16.msra.mxu1 %v4494_v51  ;;  %690 = vmatprep.mubr.f32.mxu1 %v5710_v0  ;;  %v4506_v26 = vpack.c.bf16 %v919_v20, %v911_v18  ;;  %v997_v51 = vld [vmem:[#allocation8 + $0x440] sm:$0xff]  ;;  %v999_v18 = vld [vmem:[#allocation8 + $0x450] sm:$0xff]  ;;  %v1008_v20 = vld [vmem:[#allocation8 + $0x498] sm:$0xff] }
  0xb4   :  { %578 = vmatmul.mubr.f32.gmra.mrb[18].mxu0 %v5829_v44  ;;  %4497 = vmatprep.subr.bf16.mxu1 %v4496_v54  ;;  %v1014_v54 = vld [vmem:[#allocation8 + $0x4c8] sm:$0xff] }
  0xb5   :  { %583 = vmatprep.mubr.f32.mxu0 %v5710_v0  ;;  %4243 = vmatpush1.bf16.msra.mxu0 %v4242_v32  ;;  %v935_v32 = vld [vmem:[#allocation8 + $0x250] sm:$0xff]  ;;  %v4272_v63 = vpack.c.bf16 %v1014_v54, %v1006_v53  ;;  %v1056_v54 = vld [vmem:[#allocation8 + $0x618] sm:$0xff]  ;;  %v1126_v12 = vld [vmem:[#allocation8 + $0x848] sm:$0xff] }
  0xb6   :  { %4245 = vmatprep.subr.bf16.mxu0 %v4244_v34  ;;  %691 = vmatmul.mubr.f32.gmra.mrb[18].mxu1 %v5829_v44  ;;  %v4260_v44 = vpack.c.bf16 %v966_v16, %v958_v15  ;;  %v944_v34 = vld [vmem:[#allocation8 + $0x298] sm:$0xff]  ;;  %v4510_v39 = vpack.c.bf16 %v935_v32, %v927_v30  ;;  %v1046_v15 = vld [vmem:[#allocation8 + $0x5c8] sm:$0xff]  ;;  %v4524_v16 = vpack.c.bf16 %v1000_v10, %v992_v9  ;;  %v1047_v53 = vld [vmem:[#allocation8 + $0x5d0] sm:$0xff] }
  0xb7   :  { %4499 = vmatpush1.bf16.msra.mxu1 %v4498_v2  ;;  %696 = vmatprep.mubr.f32.mxu1 %v5710_v0  ;;  %v4512_v42 = vpack.c.bf16 %v952_v35, %v944_v34  ;;  %v4518_v2 = vpack.c.bf16 %v967_v58, %v959_v56  ;;  %v1032_v30 = vld [vmem:[#allocation8 + $0x558] sm:$0xff]  ;;  %v1053_v35 = vld [vmem:[#allocation8 + $0x600] sm:$0xff] }
  0xb8   :  { %584 = vmatmul.mubr.f32.gmra.mrb[20].mxu0 %v5833_v57  ;;  %4501 = vmatprep.subr.bf16.mxu1 %v4500_v5  ;;  %v1101_v9 = vld [vmem:[#allocation8 + $0x780] sm:$0xff] }
  0xb9   :  { %589 = vmatprep.mubr.f32.mxu0 %v5710_v0  ;;  %4247 = vmatpush1.bf16.msra.mxu0 %v4246_v46  ;;  %v960_v46 = vld [vmem:[#allocation8 + $0x318] sm:$0xff]  ;;  %v1109_v10 = vld [vmem:[#allocation8 + $0x7c0] sm:$0xff] }
  0xba   :  { %4249 = vmatprep.subr.bf16.mxu0 %v4248_v48  ;;  %697 = vmatmul.mubr.f32.gmra.mrb[20].mxu1 %v5833_v57  ;;  %v4264_v57 = vpack.c.bf16 %v982_v28, %v974_v27  ;;  %v968_v48 = vld [vmem:[#allocation8 + $0x358] sm:$0xff]  ;;  %v1007_v27 = vld [vmem:[#allocation8 + $0x490] sm:$0xff] }
  0xbb   :  { %4503 = vmatpush1.bf16.msra.mxu1 %v4502_v14  ;;  %702 = vmatprep.mubr.f32.mxu1 %v5710_v0  ;;  %v4516_v55 = vpack.c.bf16 %v968_v48, %v960_v46  ;;  %v1038_v14 = vld [vmem:[#allocation8 + $0x588] sm:$0xff]  ;;  %v1015_v28 = vld [vmem:[#allocation8 + $0x4d0] sm:$0xff]  ;;  %v1069_v46 = vld [vmem:[#allocation8 + $0x680] sm:$0xff] }
  0xbc   :  { %590 = vmatmul.mubr.f32.gmra.mrb[22].mxu0 %v5837_v6  ;;  %4505 = vmatprep.subr.bf16.mxu1 %v4504_v17  ;;  %v991_v17 = vld [vmem:[#allocation8 + $0x410] sm:$0xff]  ;;  %v1077_v48 = vld [vmem:[#allocation8 + $0x6c0] sm:$0xff] }
  0xbd   :  { %595 = vmatprep.mubr.f32.mxu0 %v5710_v0  ;;  %4251 = vmatpush1.bf16.msra.mxu0 %v4250_v60  ;;  %v984_v60 = vld [vmem:[#allocation8 + $0x3d8] sm:$0xff]  ;;  %v4290_v56 = vpack.c.bf16 %v1077_v48, %v1069_v46  ;;  %v1119_v46 = vld [vmem:[#allocation8 + $0x810] sm:$0xff] }
  0xbe   :  { %4253 = vmatprep.subr.bf16.mxu0 %v4252_v62  ;;  %703 = vmatmul.mubr.f32.gmra.mrb[22].mxu1 %v5837_v6  ;;  %v4268_v6 = vpack.c.bf16 %v998_v41, %v990_v40  ;;  %v4270_v62 = vpack.c.bf16 %v997_v51, %v989_v50  ;;  %v4520_v5 = vpack.c.bf16 %v984_v60, %v976_v59  ;;  %v1031_v40 = vld [vmem:[#allocation8 + $0x550] sm:$0xff]  ;;  %v1040_v41 = vld [vmem:[#allocation8 + $0x598] sm:$0xff]  ;;  %v1094_v50 = vld [vmem:[#allocation8 + $0x748] sm:$0xff] }
  0xbf   :  { %4507 = vmatpush1.bf16.msra.mxu1 %v4506_v26  ;;  %708 = vmatprep.mubr.f32.mxu1 %v5710_v0  ;;  %v1062_v26 = vld [vmem:[#allocation8 + $0x648] sm:$0xff]  ;;  %v1085_v59 = vld [vmem:[#allocation8 + $0x700] sm:$0xff]  ;;  %v1127_v48 = vld [vmem:[#allocation8 + $0x850] sm:$0xff] }
  0xc0   :  { %596 = vmatmul.mubr.f32.gmra.mrb[24].mxu0 %v5843_v19  ;;  %4509 = vmatprep.subr.bf16.mxu1 %v4508_v29  ;;  %v1024_v29 = vld [vmem:[#allocation8 + $0x518] sm:$0xff]  ;;  %v4284_v34 = vpack.c.bf16 %v1062_v26, %v1054_v25  ;;  %v1093_v60 = vld [vmem:[#allocation8 + $0x740] sm:$0xff]  ;;  %v1103_v26 = vld [vmem:[#allocation8 + $0x790] sm:$0xff] }
  0xc1   :  { %601 = vmatprep.mubr.f32.mxu0 %v5710_v0  ;;  %4255 = vmatpush1.bf16.msra.mxu0 %v4254_v31  ;;  %v4532_v38 = vpack.c.bf16 %v1032_v30, %v1024_v29 }
  0xc2   :  { %4257 = vmatprep.subr.bf16.mxu0 %v4256_v11  ;;  %709 = vmatmul.mubr.f32.gmra.mrb[24].mxu1 %v5843_v19  ;;  %v1013_v19 = vld [vmem:[#allocation8 + $0x4c0] sm:$0xff]  ;;  %v4276_v11 = vpack.c.bf16 %v1030_v4, %v1022_v3  ;;  %v1063_v3 = vld [vmem:[#allocation8 + $0x650] sm:$0xff]  ;;  %v1072_v4 = vld [vmem:[#allocation8 + $0x698] sm:$0xff] }
  0xc3   :  { %4511 = vmatpush1.bf16.msra.mxu1 %v4510_v39  ;;  %714 = vmatprep.mubr.f32.mxu1 %v5710_v0  ;;  %v4274_v31 = vpack.c.bf16 %v1013_v19, %v1005_v1  ;;  %v1023_v39 = vld [vmem:[#allocation8 + $0x510] sm:$0xff]  ;;  %v1110_v1 = vld [vmem:[#allocation8 + $0x7c8] sm:$0xff] }
  0xc4   :  { %602 = vmatmul.mubr.f32.gmra.mrb[26].mxu0 %v5849_v33  ;;  %4513 = vmatprep.subr.bf16.mxu1 %v4512_v42  ;;  %v1048_v42 = vld [vmem:[#allocation8 + $0x5d8] sm:$0xff] }
  0xc5   :  { %607 = vmatprep.mubr.f32.mxu0 %v5710_v0  ;;  %4259 = vmatpush1.bf16.msra.mxu0 %v4258_v23  ;;  %v4280_v23 = vpack.c.bf16 %v1046_v15, %v1038_v14  ;;  %v4536_v51 = vpack.c.bf16 %v1048_v42, %v1040_v41  ;;  %v1079_v14 = vld [vmem:[#allocation8 + $0x6d0] sm:$0xff]  ;;  %v1088_v15 = vld [vmem:[#allocation8 + $0x718] sm:$0xff]  ;;  %v1117_v42 = vld [vmem:[#allocation8 + $0x800] sm:$0xff] }
  0xc6   :  { %4261 = vmatprep.subr.bf16.mxu0 %v4260_v44  ;;  %715 = vmatmul.mubr.f32.gmra.mrb[26].mxu1 %v5849_v33  ;;  %v4522_v33 = vpack.c.bf16 %v983_v8, %v975_v7  ;;  %v1037_v44 = vld [vmem:[#allocation8 + $0x580] sm:$0xff]  ;;  %v4294_v7 = vpack.c.bf16 %v1093_v60, %v1085_v59  ;;  %v4558_v59 = vpack.c.bf16 %v1127_v48, %v1119_v46 }
  0xc7   :  { %4515 = vmatpush1.bf16.msra.mxu1 %v4514_v52  ;;  %720 = vmatprep.mubr.f32.mxu1 %v5710_v0  ;;  %v4282_v32 = vpack.c.bf16 %v1045_v24, %v1037_v44  ;;  %v1039_v52 = vld [vmem:[#allocation8 + $0x590] sm:$0xff]  ;;  %v1104_v44 = vld [vmem:[#allocation8 + $0x798] sm:$0xff]  ;;  %v1133_v60 = vld [vmem:[#allocation8 + $0x880] sm:$0xff] }
  0xc8   :  { %608 = vmatmul.mubr.f32.gmra.mrb[28].mxu0 %v5855_v47  ;;  %4517 = vmatprep.subr.bf16.mxu1 %v4516_v55  ;;  %v1064_v55 = vld [vmem:[#allocation8 + $0x658] sm:$0xff] }
  0xc9   :  { %613 = vmatprep.mubr.f32.mxu0 %v5710_v0  ;;  %4263 = vmatpush1.bf16.msra.mxu0 %v4262_v36  ;;  %v1061_v36 = vld [vmem:[#allocation8 + $0x640] sm:$0xff]  ;;  %v4540_v19 = vpack.c.bf16 %v1064_v55, %v1056_v54  ;;  %v1112_v24 = vld [vmem:[#allocation8 + $0x7d8] sm:$0xff] }
  0xca   :  { %4265 = vmatprep.subr.bf16.mxu0 %v4264_v57  ;;  %721 = vmatmul.mubr.f32.gmra.mrb[28].mxu1 %v5855_v47  ;;  %v4526_v47 = vpack.c.bf16 %v999_v18, %v991_v17  ;;  %v4530_v57 = vpack.c.bf16 %v1015_v28, %v1007_v27  ;;  %v4286_v43 = vpack.c.bf16 %v1061_v36, %v1053_v35  ;;  %v1120_v27 = vld [vmem:[#allocation8 + $0x818] sm:$0xff] }
  0xcb   :  { %4519 = vmatpush1.bf16.msra.mxu1 %v4518_v2  ;;  %726 = vmatprep.mubr.f32.mxu1 %v5710_v0  ;;  %v4528_v0 = vpack.c.bf16 %v1016_v21, %v1008_v20  ;;  %v1055_v2 = vld [vmem:[#allocation8 + $0x610] sm:$0xff]  ;;  %v4298_v17 = vpack.c.bf16 %v1109_v10, %v1101_v9  ;;  %v4552_v25 = vpack.c.bf16 %v1112_v24, %v1104_v44  ;;  %v1128_v28 = vld [vmem:[#allocation8 + $0x858] sm:$0xff]  ;;  %v1166_v24 = vld [vmem:[#allocation8 + $0x988] sm:$0xff] }
  0xcc   :  { %614 = vmatmul.mubr.f32.gmra.mrb[30].mxu0 %v5861_v61  ;;  %4521 = vmatprep.subr.bf16.mxu1 %v4520_v5  ;;  %v1080_v5 = vld [vmem:[#allocation8 + $0x6d8] sm:$0xff]  ;;  %v4556_v30 = vpack.c.bf16 %v1128_v28, %v1120_v27  ;;  %v1159_v44 = vld [vmem:[#allocation8 + $0x950] sm:$0xff] }
  0xcd   :  { %4267 = vmatpush1.bf16.msra.mxu0 %v4266_v49  ;;  %v4534_v49 = vpack.c.bf16 %v1031_v40, %v1023_v39  ;;  %v4544_v13 = vpack.c.bf16 %v1080_v5, %v1072_v4  ;;  %v5908_v36 = vld [vmem:[#allocation7] sm:$0xff]  ;;  %v1143_v4 = vld [vmem:[#allocation8 + $0x8d0] sm:$0xff]  ;;  %v1150_v5 = vld [vmem:[#allocation8 + $0x908] sm:$0xff] }
  0xce   :  { %4269 = vmatprep.subr.bf16.mxu0 %v4268_v6  ;;  %727 = vmatmul.mubr.f32.gmra.mrb[30].mxu1 %v5861_v61  ;;  %v1078_v61 = vld [vmem:[#allocation8 + $0x6c8] sm:$0xff]  ;;  %v1152_v9 = vld [vmem:[#allocation8 + $0x918] sm:$0xff] }
  0xcf   :  { %4523 = vmatpush1.bf16.msra.mxu1 %v4522_v33  ;;  %v4288_v45 = vpack.c.bf16 %v1078_v61, %v1070_v37  ;;  %v1086_v6 = vld [vmem:[#allocation8 + $0x708] sm:$0xff]  ;;  %v1071_v33 = vld [vmem:[#allocation8 + $0x690] sm:$0xff]  ;;  %v1160_v10 = vld [vmem:[#allocation8 + $0x958] sm:$0xff] }
  0xd0   :  { %4525 = vmatprep.subr.bf16.mxu1 %v4524_v16  ;;  %v4292_v58 = vpack.c.bf16 %v1094_v50, %v1086_v6  ;;  %v1096_v16 = vld [vmem:[#allocation8 + $0x758] sm:$0xff]  ;;  %v4546_v20 = vpack.c.bf16 %v1079_v14, %v1071_v33  ;;  %v1142_v50 = vld [vmem:[#allocation8 + $0x8c8] sm:$0xff] }
  0xd1   :  { %4271 = vmatpush1.bf16.msra.mxu0 %v4270_v62  ;;  %v4538_v62 = vpack.c.bf16 %v1047_v53, %v1039_v52  ;;  %v4548_v21 = vpack.c.bf16 %v1096_v16, %v1088_v15  ;;  %v1144_v52 = vld [vmem:[#allocation8 + $0x8d8] sm:$0xff]  ;;  %v1149_v16 = vld [vmem:[#allocation8 + $0x900] sm:$0xff] }
  0xd2   :  { %4273 = vmatprep.subr.bf16.mxu0 %v4272_v63  ;;  %v1102_v63 = vld [vmem:[#allocation8 + $0x788] sm:$0xff]  ;;  %v1176_v27 = vld [vmem:[#allocation8 + $0x9d8] sm:$0xff] }
  0xd3   :  { %4527 = vmatpush1.bf16.msra.mxu1 %v4526_v47  ;;  %v4296_v8 = vpack.c.bf16 %v1110_v1, %v1102_v63 }
  0xd4   :  { %4529 = vmatprep.subr.bf16.mxu1 %v4528_v0  ;;  %v1111_v0 = vld [vmem:[#allocation8 + $0x7d0] sm:$0xff] }
  0xd5   :  { %4275 = vmatpush1.bf16.msra.mxu0 %v4274_v31  ;;  %v4542_v31 = vpack.c.bf16 %v1063_v3, %v1055_v2  ;;  %v4554_v29 = vpack.c.bf16 %v1111_v0, %v1103_v26  ;;  %v1135_v3 = vld [vmem:[#allocation8 + $0x890] sm:$0xff]  ;;  %v1168_v0 = vld [vmem:[#allocation8 + $0x998] sm:$0xff] }
  0xd6   :  { %4277 = vmatprep.subr.bf16.mxu0 %v4276_v11  ;;  %v1118_v11 = vld [vmem:[#allocation8 + $0x808] sm:$0xff]  ;;  %v4562_v15 = vpack.c.bf16 %v1143_v4, %v1135_v3 }
  0xd7   :  { %4531 = vmatpush1.bf16.msra.mxu1 %v4530_v57  ;;  %v4300_v18 = vpack.c.bf16 %v1126_v12, %v1118_v11 }
  0xd8   :  { %4533 = vmatprep.subr.bf16.mxu1 %v4532_v38 }
  0xd9   :  { %4279 = vmatpush1.bf16.msra.mxu0 %v4278_v22  ;;  %v1087_v22 = vld [vmem:[#allocation8 + $0x710] sm:$0xff] }
  0xda   :  { %4281 = vmatprep.subr.bf16.mxu0 %v4280_v23  ;;  %v1095_v23 = vld [vmem:[#allocation8 + $0x750] sm:$0xff] }
  0xdb   :  { %4535 = vmatpush1.bf16.msra.mxu1 %v4534_v49  ;;  %v4550_v47 = vpack.c.bf16 %v1095_v23, %v1087_v22  ;;  %v1134_v49 = vld [vmem:[#allocation8 + $0x888] sm:$0xff]  ;;  %v4564_v23 = vpack.c.bf16 %v1160_v10, %v1152_v9  ;;  %v1191_v9 = vld [vmem:[#allocation8 + $0xa50] sm:$0xff] }
  0xdc   :  { %4537 = vmatprep.subr.bf16.mxu1 %v4536_v51  ;;  %v1136_v51 = vld [vmem:[#allocation8 + $0x898] sm:$0xff] }
  0xdd   :  { %4283 = vmatpush1.bf16.msra.mxu0 %v4282_v32  ;;  %v241_v32 = vlaneseq  ;;  %v4560_v2 = vpack.c.bf16 %v1144_v52, %v1136_v51  ;;  %v1182_v51 = vld [vmem:[#allocation8 + $0xa08] sm:$0xff] }
  0xde   :  { %4285 = vmatprep.subr.bf16.mxu0 %v4284_v34  ;;  %v1190_v52 = vld [vmem:[#allocation8 + $0xa48] sm:$0xff] }
  0xdf   :  { %4539 = vmatpush1.bf16.msra.mxu1 %v4538_v62  ;;  %v5903_v34 = vshrl.u32 %v241_v32, 7  ;;  %v1141_v62 = vld [vmem:[#allocation8 + $0x8c0] sm:$0xff] }
  0xe0   :  { %4541 = vmatprep.subr.bf16.mxu1 %v4540_v19  ;;  %v4304_v19 = vpack.c.bf16 %v1142_v50, %v1134_v49  ;;  %v4306_v12 = vpack.c.bf16 %v1141_v62, %v1133_v60  ;;  %v1175_v50 = vld [vmem:[#allocation8 + $0x9d0] sm:$0xff] }
  0xe1   :  { %4287 = vmatpush1.bf16.msra.mxu0 %v4286_v43  ;;  %v5906_v35 = vsub.s32 0, %v5903_v34  ;;  %v5911_v57 = vsub.s32 1, %v5903_v34  ;;  %v1125_v43 = vld [vmem:[#allocation8 + $0x840] sm:$0xff] }
  0xe2   :  { %4289 = vmatprep.subr.bf16.mxu0 %v4288_v45 }
  0xe3   :  { %4543 = vmatpush1.bf16.msra.mxu1 %v4542_v31  ;;  %7540 = vst [vmem:[#allocation17_spill] sm:$0xff] %v5906_v35  ;;  %7541 = vst [vmem:[#allocation18_spill] sm:$0xff] %v5911_v57  ;;  %v5915_v37 = vrot.slane %v5908_v36, %v5906_v35  ;;  %v5919_v61 = vrot.slane %v5908_v36, %v5911_v57  ;;  %v1302_v57 = vld [vmem:[#allocation8 + $0xdc8] sm:$0xff]  ;;  %v1296_v35 = vld [vmem:[#allocation8 + $0xd98] sm:$0xff] }
  0xe4   :  { %4545 = vmatprep.subr.bf16.mxu1 %v4544_v13 }
  0xe5   :  { %4291 = vmatpush1.bf16.msra.mxu0 %v4290_v56 }
  0xe6   :  { %4293 = vmatprep.subr.bf16.mxu0 %v4292_v58  ;;  %v4302_v58 = vpack.c.bf16 %v1125_v43, %v1117_v42  ;;  %v1165_v42 = vld [vmem:[#allocation8 + $0x980] sm:$0xff] }
  0xe7   :  { %4547 = vmatpush1.bf16.msra.mxu1 %v4546_v20  ;;  %v1173_v43 = vld [vmem:[#allocation8 + $0x9c0] sm:$0xff] }
  0xe8   :  { %4549 = vmatprep.subr.bf16.mxu1 %v4548_v21 }
  0xe9   :  { %4295 = vmatpush1.bf16.msra.mxu0 %v4294_v7 }
  0xea   :  { %4297 = vmatprep.subr.bf16.mxu0 %v4296_v8  ;;  %v1158_v8 = vld [vmem:[#allocation8 + $0x948] sm:$0xff] }
  0xeb   :  { %4551 = vmatpush1.bf16.msra.mxu1 %v4550_v47  ;;  %v4308_v22 = vpack.c.bf16 %v1158_v8, %v1150_v5  ;;  %v1174_v47 = vld [vmem:[#allocation8 + $0x9c8] sm:$0xff]  ;;  %v1183_v8 = vld [vmem:[#allocation8 + $0xa10] sm:$0xff] }
  0xec   :  { %4553 = vmatprep.subr.bf16.mxu1 %v4552_v25  ;;  %v4312_v49 = vpack.c.bf16 %v1174_v47, %v1166_v24 }
  0xed   :  { %4299 = vmatpush1.bf16.msra.mxu0 %v4298_v17  ;;  %v1157_v17 = vld [vmem:[#allocation8 + $0x940] sm:$0xff] }
  0xee   :  { %4301 = vmatprep.subr.bf16.mxu0 %v4300_v18  ;;  %v1151_v18 = vld [vmem:[#allocation8 + $0x910] sm:$0xff]  ;;  %v4310_v32 = vpack.c.bf16 %v1157_v17, %v1149_v16 }
  0xef   :  { %4555 = vmatpush1.bf16.msra.mxu1 %v4554_v29 }
  0xf0   :  { %4557 = vmatprep.subr.bf16.mxu1 %v4556_v30 }
 0x163   :  { %v347_v38 = vpop.f32.mrb[0].mxu0 }
 0x164   :  { %v348_v39 = vadd.f32 %v347_v38, %v5915_v37  ;;  %v349_v40 = vpop.f32.mrb[1].mxu0 }
 0x165   :  { %v350_v41 = vadd.f32 %v349_v40, %v5919_v61  ;;  %v5939_v26 = vpop.f32.mrb[0].mxu1 }
 0x166   :  { %v733_v45 = vmul.f32 0.2, %v348_v39  ;;  %v5943_v30 = vpop.f32.mrb[1].mxu1 }
 0x167   :  { %v734_v6 = vmul.f32 0.2, %v350_v41  ;;  %v353_v53 = vpop.f32.mrb[2].mxu0 }
 0x168   :  { %v354_v54 = vadd.f32 %v353_v53, %v5915_v37  ;;  %v355_v55 = vpop.f32.mrb[3].mxu0  ;;  %v5927_v1 = vmax.f32 %v348_v39, %v733_v45  ;;  %v1167_v45 = vld [vmem:[#allocation8 + $0x990] sm:$0xff] }
 0x169   :  { %v5924_v56 = vmax.f32 %v350_v41, %v734_v6  ;;  %v356_v63 = vadd.f32 %v355_v55, %v5919_v61  ;;  %v4566_v41 = vpack.c.bf16 %v1159_v44, %v1151_v18  ;;  %v4568_v6 = vpack.c.bf16 %v1176_v27, %v1168_v0  ;;  %v1184_v55 = vld [vmem:[#allocation8 + $0xa18] sm:$0xff] }
 0x16a   :  { %7543 = vst [vmem:[#allocation20_spill] sm:$0xff] %v5927_v1  ;;  %v741_v7 = vmul.f32 0.2, %v354_v54  ;;  %v4570_v5 = vpack.c.bf16 %v1175_v50, %v1167_v45  ;;  %v1208_v18 = vld [vmem:[#allocation8 + $0xad8] sm:$0xff]  ;;  %v4574_v27 = vpack.c.bf16 %v1191_v9, %v1183_v8  ;;  %v1214_v45 = vld [vmem:[#allocation8 + $0xb08] sm:$0xff] }
 0x16b   :  { %7542 = vst [vmem:[#allocation19_spill] sm:$0xff] %v5924_v56  ;;  %1991 = vmatprep.mubr.f32.mxu0 %v5924_v56  ;;  %2443 = vmatprep.mubr.f32.mxu1 %v5924_v56  ;;  %v742_v31 = vmul.f32 0.2, %v356_v63  ;;  %v359_v11 = vpop.f32.mrb[4].mxu0  ;;  %v1216_v50 = vld [vmem:[#allocation8 + $0xb18] sm:$0xff] }
 0x16c   :  { %1992 = vmatmul.mubr.f32.vlgmr.msra.gmra.mrb[32].mxu0 %v5927_v1  ;;  %2444 = vmatmul.mubr.f32.vlgmr.msra.gmra.mrb[32].mxu1 %v5927_v1  ;;  %v5933_v13 = vmax.f32 %v354_v54, %v741_v7  ;;  %v360_v33 = vadd.f32 %v359_v11, %v5915_v37  ;;  %v361_v14 = vpop.f32.mrb[5].mxu0  ;;  %v5953_v54 = vpop.f32.mrb[2].mxu1  ;;  %v1189_v7 = vld [vmem:[#allocation8 + $0xa40] sm:$0xff]  ;;  %v4316_v11 = vpack.c.bf16 %v1190_v52, %v1182_v51  ;;  %v1224_v51 = vld [vmem:[#allocation8 + $0xb58] sm:$0xff] }
 0x16d   :  { %4303 = vmatpush1.bf16.msra.mxu0 %v4302_v58  ;;  %4559 = vmatpush1.bf16.msra.mxu1 %v4558_v59  ;;  %v5936_v20 = vmax.f32 %v356_v63, %v742_v31  ;;  %v362_v21 = vadd.f32 %v361_v14, %v5919_v61  ;;  %v1192_v58 = vld [vmem:[#allocation8 + $0xa58] sm:$0xff]  ;;  %v5957_v62 = vpop.f32.mrb[3].mxu1  ;;  %v4314_v63 = vpack.c.bf16 %v1173_v43, %v1165_v42  ;;  %v1206_v14 = vld [vmem:[#allocation8 + $0xac8] sm:$0xff]  ;;  %v1207_v43 = vld [vmem:[#allocation8 + $0xad0] sm:$0xff] }
 0x16e   :  { %7544 = vst [vmem:[#allocation21_spill] sm:$0xff] %v5933_v13  ;;  %4305 = vmatprep.subr.bf16.mxu0 %v4304_v19  ;;  %4561 = vmatprep.subr.bf16.mxu1 %v4560_v2  ;;  %v749_v25 = vmul.f32 0.2, %v360_v33  ;;  %v5959_v19 = vld [vmem:[#allocation8 + $0xa00] sm:$0xff]  ;;  %v5969_v17 = vpop.f32.mrb[4].mxu1  ;;  %v1392_v1 = vld [vmem:[#allocation8 + $0x1098] sm:$0xff] }
 0x16f   :  { %7545 = vst [vmem:[#allocation22_spill] sm:$0xff] %v5936_v20  ;;  %v750_v28 = vmul.f32 0.2, %v362_v21  ;;  %v365_v29 = vpop.f32.mrb[6].mxu0  ;;  %1997 = vmatprep.mubr.f32.mxu0 %v5936_v20  ;;  %2449 = vmatprep.mubr.f32.mxu1 %v5936_v20  ;;  %v5976_v44 = vpop.f32.mrb[5].mxu1  ;;  %v4318_v24 = vpack.c.bf16 %v1189_v7, %v5959_v19  ;;  %v1215_v7 = vld [vmem:[#allocation8 + $0xb10] sm:$0xff] }
 0x170   :  { %v5945_v38 = vmax.f32 %v360_v33, %v749_v25  ;;  %v366_v39 = vadd.f32 %v365_v29, %v5915_v37  ;;  %v367_v40 = vpop.f32.mrb[7].mxu0  ;;  %1998 = vmatmul.mubr.f32.gmra.mrb[34].mxu0 %v5933_v13  ;;  %2450 = vmatmul.mubr.f32.gmra.mrb[34].mxu1 %v5933_v13  ;;  %v1198_v33 = vld [vmem:[#allocation8 + $0xa88] sm:$0xff]  ;;  %v1205_v29 = vld [vmem:[#allocation8 + $0xac0] sm:$0xff]  ;;  %v1400_v56 = vld [vmem:[#allocation8 + $0x10d8] sm:$0xff] }
 0x171   :  { %4307 = vmatpush1.bf16.msra.mxu0 %v4306_v12  ;;  %4563 = vmatpush1.bf16.msra.mxu1 %v4562_v15  ;;  %v5950_v46 = vmax.f32 %v362_v21, %v750_v28  ;;  %v368_v48 = vadd.f32 %v367_v40, %v5919_v61  ;;  %v4572_v12 = vpack.c.bf16 %v1192_v58, %v1184_v55  ;;  %v1200_v15 = vld [vmem:[#allocation8 + $0xa98] sm:$0xff]  ;;  %v1197_v28 = vld [vmem:[#allocation8 + $0xa80] sm:$0xff]  ;;  %v1390_v13 = vld [vmem:[#allocation8 + $0x1088] sm:$0xff] }
 0x172   :  { %7546 = vst [vmem:[#allocation23_spill] sm:$0xff] %v5945_v38  ;;  %4309 = vmatprep.subr.bf16.mxu0 %v4308_v22  ;;  %4565 = vmatprep.subr.bf16.mxu1 %v4564_v23  ;;  %v757_v53 = vmul.f32 0.2, %v366_v39  ;;  %v5974_v23 = vsub.s32 3, %v5903_v34  ;;  %v4576_v42 = vpack.c.bf16 %v1208_v18, %v1200_v15  ;;  %v1232_v18 = vld [vmem:[#allocation8 + $0xb98] sm:$0xff]  ;;  %v1398_v20 = vld [vmem:[#allocation8 + $0x10c8] sm:$0xff] }
 0x173   :  { %7547 = vst [vmem:[#allocation24_spill] sm:$0xff] %v5950_v46  ;;  %v758_v59 = vmul.f32 0.2, %v368_v48  ;;  %v371_v60 = vpop.f32.mrb[8].mxu0  ;;  %2003 = vmatprep.mubr.f32.mxu0 %v5950_v46  ;;  %2455 = vmatprep.mubr.f32.mxu1 %v5950_v46  ;;  %v1376_v46 = vld [vmem:[#allocation8 + $0x1018] sm:$0xff] }
 0x174   :  { %v5961_v2 = vmax.f32 %v366_v39, %v757_v53  ;;  %v372_v3 = vadd.f32 %v371_v60, %v5915_v37  ;;  %v373_v4 = vpop.f32.mrb[9].mxu0  ;;  %2004 = vmatmul.mubr.f32.gmra.mrb[36].mxu0 %v5945_v38  ;;  %2456 = vmatmul.mubr.f32.gmra.mrb[36].mxu1 %v5945_v38  ;;  %7550 = vst [vmem:[#allocation27_spill] sm:$0xff] %v5974_v23  ;;  %v1382_v38 = vld [vmem:[#allocation8 + $0x1048] sm:$0xff] }
 0x175   :  { %4311 = vmatpush1.bf16.msra.mxu0 %v4310_v32  ;;  %4567 = vmatpush1.bf16.msra.mxu1 %v4566_v41  ;;  %v5966_v10 = vmax.f32 %v368_v48, %v758_v59  ;;  %v374_v31 = vadd.f32 %v373_v4, %v5919_v61  ;;  %v1199_v32 = vld [vmem:[#allocation8 + $0xa90] sm:$0xff]  ;;  %v4320_v41 = vpack.c.bf16 %v1206_v14, %v1198_v33  ;;  %v1222_v48 = vld [vmem:[#allocation8 + $0xb48] sm:$0xff]  ;;  %v1213_v4 = vld [vmem:[#allocation8 + $0xb00] sm:$0xff] }
 0x176   :  { %7548 = vst [vmem:[#allocation25_spill] sm:$0xff] %v5961_v2  ;;  %4313 = vmatprep.subr.bf16.mxu0 %v4312_v49  ;;  %4569 = vmatprep.subr.bf16.mxu1 %v4568_v6  ;;  %v765_v16 = vmul.f32 0.2, %v372_v3  ;;  %v5987_v6 = vpop.f32.mrb[6].mxu1  ;;  %v5993_v55 = vrot.slane %v5908_v36, %v5974_v23  ;;  %v4322_v59 = vpack.c.bf16 %v1205_v29, %v1197_v28  ;;  %v1230_v33 = vld [vmem:[#allocation8 + $0xb88] sm:$0xff]  ;;  %v1229_v28 = vld [vmem:[#allocation8 + $0xb80] sm:$0xff] }
 0x177   :  { %7549 = vst [vmem:[#allocation26_spill] sm:$0xff] %v5966_v10  ;;  %v766_v21 = vmul.f32 0.2, %v374_v31  ;;  %v377_v22 = vpop.f32.mrb[10].mxu0  ;;  %2009 = vmatprep.mubr.f32.mxu0 %v5966_v10  ;;  %2461 = vmatprep.mubr.f32.mxu1 %v5966_v10  ;;  %v5995_v58 = vpop.f32.mrb[7].mxu1  ;;  %v1238_v14 = vld [vmem:[#allocation8 + $0xbc8] sm:$0xff] }
 0x178   :  { %v5979_v47 = vmax.f32 %v372_v3, %v765_v16  ;;  %v378_v25 = vadd.f32 %v377_v22, %v5915_v37  ;;  %v379_v0 = vpop.f32.mrb[11].mxu0  ;;  %2010 = vmatmul.mubr.f32.gmra.mrb[38].mxu0 %v5961_v2  ;;  %2462 = vmatmul.mubr.f32.gmra.mrb[38].mxu1 %v5961_v2  ;;  %v4578_v3 = vpack.c.bf16 %v1207_v43, %v1199_v32  ;;  %v6005_v16 = vpop.f32.mrb[8].mxu1  ;;  %v1231_v43 = vld [vmem:[#allocation8 + $0xb90] sm:$0xff]  ;;  %v1288_v23 = vld [vmem:[#allocation8 + $0xd58] sm:$0xff]  ;;  %v1358_v2 = vld [vmem:[#allocation8 + $0xf88] sm:$0xff] }
 0x179   :  { %4315 = vmatpush1.bf16.msra.mxu0 %v4314_v63  ;;  %4571 = vmatpush1.bf16.msra.mxu1 %v4570_v5  ;;  %v5984_v39 = vmax.f32 %v374_v31, %v766_v21  ;;  %v380_v40 = vadd.f32 %v379_v0, %v5919_v61  ;;  %v1221_v5 = vld [vmem:[#allocation8 + $0xb40] sm:$0xff]  ;;  %v4324_v31 = vpack.c.bf16 %v1222_v48, %v1214_v45  ;;  %v1240_v21 = vld [vmem:[#allocation8 + $0xbd8] sm:$0xff]  ;;  %v6011_v0 = vpop.f32.mrb[9].mxu1  ;;  %v1239_v45 = vld [vmem:[#allocation8 + $0xbd0] sm:$0xff] }
 0x17a   :  { %7551 = vst [vmem:[#allocation28_spill] sm:$0xff] %v5979_v47  ;;  %4317 = vmatprep.subr.bf16.mxu0 %v4316_v11  ;;  %4573 = vmatprep.subr.bf16.mxu1 %v4572_v12  ;;  %v773_v49 = vmul.f32 0.2, %v378_v25  ;;  %v4580_v11 = vpack.c.bf16 %v1224_v51, %v1216_v50  ;;  %v1223_v12 = vld [vmem:[#allocation8 + $0xb50] sm:$0xff]  ;;  %v4584_v50 = vpack.c.bf16 %v1240_v21, %v1232_v18  ;;  %v1254_v51 = vld [vmem:[#allocation8 + $0xc48] sm:$0xff] }
 0x17b   :  { %7552 = vst [vmem:[#allocation29_spill] sm:$0xff] %v5984_v39  ;;  %v774_v52 = vmul.f32 0.2, %v380_v40  ;;  %v383_v53 = vpop.f32.mrb[12].mxu0  ;;  %2015 = vmatprep.mubr.f32.mxu0 %v5984_v39  ;;  %2467 = vmatprep.mubr.f32.mxu1 %v5984_v39  ;;  %v1247_v18 = vld [vmem:[#allocation8 + $0xc10] sm:$0xff]  ;;  %v1344_v39 = vld [vmem:[#allocation8 + $0xf18] sm:$0xff] }
 0x17c   :  { %v5997_v60 = vmax.f32 %v378_v25, %v773_v49  ;;  %v384_v63 = vadd.f32 %v383_v53, %v5915_v37  ;;  %v385_v19 = vpop.f32.mrb[13].mxu0  ;;  %2016 = vmatmul.mubr.f32.gmra.mrb[40].mxu0 %v5979_v47  ;;  %2468 = vmatmul.mubr.f32.gmra.mrb[40].mxu1 %v5979_v47  ;;  %v463_v25 = vadd.f32 %v5943_v30, %v5993_v55  ;;  %v1255_v21 = vld [vmem:[#allocation8 + $0xc50] sm:$0xff]  ;;  %v1366_v10 = vld [vmem:[#allocation8 + $0xfc8] sm:$0xff] }
 0x17d   :  { %4319 = vmatpush1.bf16.msra.mxu0 %v4318_v24  ;;  %4575 = vmatpush1.bf16.msra.mxu1 %v4574_v27  ;;  %v6002_v8 = vmax.f32 %v380_v40, %v774_v52  ;;  %v386_v9 = vadd.f32 %v385_v19, %v5919_v61  ;;  %v4326_v27 = vpack.c.bf16 %v1221_v5, %v1213_v4  ;;  %v1248_v52 = vld [vmem:[#allocation8 + $0xc18] sm:$0xff] }
 0x17e   :  { %7553 = vst [vmem:[#allocation30_spill] sm:$0xff] %v5997_v60  ;;  %4321 = vmatprep.subr.bf16.mxu0 %v4320_v41  ;;  %4577 = vmatprep.subr.bf16.mxu1 %v4576_v42  ;;  %v781_v15 = vmul.f32 0.2, %v384_v63  ;;  %v4582_v41 = vpack.c.bf16 %v1223_v12, %v1215_v7  ;;  %v1237_v42 = vld [vmem:[#allocation8 + $0xbc0] sm:$0xff]  ;;  %v4328_v49 = vpack.c.bf16 %v1238_v14, %v1230_v33 }
 0x17f   :  { %7554 = vst [vmem:[#allocation31_spill] sm:$0xff] %v6002_v8  ;;  %v782_v22 = vmul.f32 0.2, %v386_v9  ;;  %v389_v24 = vpop.f32.mrb[14].mxu0  ;;  %2021 = vmatprep.mubr.f32.mxu0 %v6002_v8  ;;  %2473 = vmatprep.mubr.f32.mxu1 %v6002_v8  ;;  %v4330_v7 = vpack.c.bf16 %v1237_v42, %v1229_v28  ;;  %v1336_v8 = vld [vmem:[#allocation8 + $0xed8] sm:$0xff] }
 0x180   :  { %v6013_v29 = vmax.f32 %v384_v63, %v781_v15  ;;  %v390_v32 = vadd.f32 %v389_v24, %v5915_v37  ;;  %v391_v40 = vpop.f32.mrb[15].mxu0  ;;  %2022 = vmatmul.mubr.f32.gmra.mrb[42].mxu0 %v5997_v60  ;;  %2474 = vmatmul.mubr.f32.gmra.mrb[42].mxu1 %v5997_v60  ;;  %v1246_v37 = vld [vmem:[#allocation8 + $0xc08] sm:$0xff]  ;;  %v6021_v63 = vpop.f32.mrb[10].mxu1 }
 0x181   :  { %4323 = vmatpush1.bf16.msra.mxu0 %v4322_v59  ;;  %4579 = vmatpush1.bf16.msra.mxu1 %v4578_v3  ;;  %v6018_v30 = vmax.f32 %v386_v9, %v782_v22  ;;  %v392_v48 = vadd.f32 %v391_v40, %v5919_v61  ;;  %v1256_v59 = vld [vmem:[#allocation8 + $0xc58] sm:$0xff]  ;;  %v736_v3 = vmul.f32 0.2, %v463_v25  ;;  %v6025_v4 = vpop.f32.mrb[11].mxu1  ;;  %v4586_v9 = vpack.c.bf16 %v1239_v45, %v1231_v43  ;;  %v1262_v22 = vld [vmem:[#allocation8 + $0xc88] sm:$0xff] }
 0x182   :  { %7555 = vst [vmem:[#allocation32_spill] sm:$0xff] %v6013_v29  ;;  %4325 = vmatprep.subr.bf16.mxu0 %v4324_v31  ;;  %4581 = vmatprep.subr.bf16.mxu1 %v4580_v11  ;;  %v789_v53 = vmul.f32 0.2, %v390_v32  ;;  %v1245_v31 = vld [vmem:[#allocation8 + $0xc00] sm:$0xff]  ;;  %v4332_v14 = vpack.c.bf16 %v1254_v51, %v1246_v37  ;;  %v4588_v15 = vpack.c.bf16 %v1256_v59, %v1248_v52  ;;  %v6037_v24 = vpop.f32.mrb[12].mxu1  ;;  %v1272_v40 = vld [vmem:[#allocation8 + $0xcd8] sm:$0xff] }
 0x183   :  { %7556 = vst [vmem:[#allocation33_spill] sm:$0xff] %v6018_v30  ;;  %v790_v19 = vmul.f32 0.2, %v392_v48  ;;  %2027 = vmatprep.mubr.f32.mxu0 %v6018_v30  ;;  %2479 = vmatprep.mubr.f32.mxu1 %v6018_v30  ;;  %v6031_v5 = vpop.f32.mrb[16].mxu0  ;;  %v1253_v11 = vld [vmem:[#allocation8 + $0xc40] sm:$0xff]  ;;  %v6039_v28 = vmax.f32 %v463_v25, %v736_v3  ;;  %v4590_v45 = vpack.c.bf16 %v1255_v21, %v1247_v18  ;;  %v1263_v51 = vld [vmem:[#allocation8 + $0xc90] sm:$0xff] }
 0x184   :  { %v6027_v61 = vmax.f32 %v390_v32, %v789_v53  ;;  %2028 = vmatmul.mubr.f32.gmra.mrb[44].mxu0 %v6013_v29  ;;  %2480 = vmatmul.mubr.f32.gmra.mrb[44].mxu1 %v6013_v29  ;;  %v6035_v33 = vpop.f32.mrb[17].mxu0  ;;  %v1270_v32 = vld [vmem:[#allocation8 + $0xcc8] sm:$0xff]  ;;  %v4334_v43 = vpack.c.bf16 %v1253_v11, %v1245_v31  ;;  %v1271_v52 = vld [vmem:[#allocation8 + $0xcd0] sm:$0xff]  ;;  %v1280_v3 = vld [vmem:[#allocation8 + $0xd18] sm:$0xff] }
 0x185   :  { %4327 = vmatpush1.bf16.msra.mxu0 %v4326_v27  ;;  %4583 = vmatpush1.bf16.msra.mxu1 %v4582_v41  ;;  %v6033_v12 = vmax.f32 %v392_v48, %v790_v19  ;;  %v1264_v27 = vld [vmem:[#allocation8 + $0xc98] sm:$0xff]  ;;  %7559 = vst [vmem:[#allocation36_spill] sm:$0xff] %v6039_v28  ;;  %v6043_v41 = vpop.f32.mrb[13].mxu1  ;;  %v1261_v48 = vld [vmem:[#allocation8 + $0xc80] sm:$0xff]  ;;  %v1278_v53 = vld [vmem:[#allocation8 + $0xd08] sm:$0xff]  ;;  %v4594_v11 = vpack.c.bf16 %v1271_v52, %v1263_v51 }
 0x186   :  { %7557 = vst [vmem:[#allocation34_spill] sm:$0xff] %v6027_v61  ;;  %4329 = vmatprep.subr.bf16.mxu0 %v4328_v49  ;;  %4585 = vmatprep.subr.bf16.mxu1 %v4584_v50  ;;  %v1269_v49 = vld [vmem:[#allocation8 + $0xcc0] sm:$0xff]  ;;  %v4336_v50 = vpack.c.bf16 %v1270_v32, %v1262_v22  ;;  %v4592_v37 = vpack.c.bf16 %v1272_v40, %v1264_v27  ;;  %v6051_v59 = vpop.f32.mrb[14].mxu1  ;;  %v1286_v19 = vld [vmem:[#allocation8 + $0xd48] sm:$0xff]  ;;  %v1279_v32 = vld [vmem:[#allocation8 + $0xd10] sm:$0xff] }
 0x187   :  { %7558 = vst [vmem:[#allocation35_spill] sm:$0xff] %v6033_v12  ;;  %2033 = vmatprep.mubr.f32.mxu0 %v6033_v12  ;;  %2485 = vmatprep.mubr.f32.mxu1 %v6033_v12  ;;  %v6047_v42 = vpop.f32.mrb[18].mxu0  ;;  %v4338_v31 = vpack.c.bf16 %v1269_v49, %v1261_v48  ;;  %v4340_v21 = vpack.c.bf16 %v1286_v19, %v1278_v53  ;;  %v1287_v27 = vld [vmem:[#allocation8 + $0xd50] sm:$0xff]  ;;  %v1294_v40 = vld [vmem:[#allocation8 + $0xd88] sm:$0xff]  ;;  %v1312_v29 = vld [vmem:[#allocation8 + $0xe18] sm:$0xff] }
 0x188   :  { %2034 = vmatmul.mubr.f32.gmra.mrb[46].mxu0 %v6027_v61  ;;  %2486 = vmatmul.mubr.f32.gmra.mrb[46].mxu1 %v6027_v61  ;;  %v6049_v25 = vpop.f32.mrb[19].mxu0  ;;  %v4596_v22 = vpack.c.bf16 %v1288_v23, %v1280_v3  ;;  %v4598_v49 = vpack.c.bf16 %v1287_v27, %v1279_v32  ;;  %v4344_v23 = vpack.c.bf16 %v1302_v57, %v1294_v40  ;;  %v1295_v53 = vld [vmem:[#allocation8 + $0xd90] sm:$0xff]  ;;  %v1310_v3 = vld [vmem:[#allocation8 + $0xe08] sm:$0xff]  ;;  %v1320_v30 = vld [vmem:[#allocation8 + $0xe58] sm:$0xff] }
 0x189   :  { %4331 = vmatpush1.bf16.msra.mxu0 %v4330_v7  ;;  %4587 = vmatpush1.bf16.msra.mxu1 %v4586_v9  ;;  %v6055_v7 = vpop.f32.mrb[15].mxu1  ;;  %v1303_v19 = vld [vmem:[#allocation8 + $0xdd0] sm:$0xff]  ;;  %v1318_v12 = vld [vmem:[#allocation8 + $0xe48] sm:$0xff]  ;;  %v1328_v40 = vld [vmem:[#allocation8 + $0xe98] sm:$0xff] }
 0x18a   :  { %4333 = vmatprep.subr.bf16.mxu0 %v4332_v14  ;;  %4589 = vmatprep.subr.bf16.mxu1 %v4588_v15  ;;  %v1277_v14 = vld [vmem:[#allocation8 + $0xd00] sm:$0xff]  ;;  %v6061_v61 = vpop.f32.mrb[16].mxu1  ;;  %v4348_v57 = vpack.c.bf16 %v1318_v12, %v1310_v3  ;;  %v1334_v27 = vld [vmem:[#allocation8 + $0xec8] sm:$0xff] }
 0x18b   :  { %2104 = vmatprep.mubr.f32.mxu0 %v6039_v28  ;;  %2556 = vmatprep.mubr.f32.mxu1 %v6039_v28  ;;  %v6057_v9 = vpop.f32.mrb[20].mxu0  ;;  %v1285_v15 = vld [vmem:[#allocation8 + $0xd40] sm:$0xff]  ;;  %v1304_v28 = vld [vmem:[#allocation8 + $0xdd8] sm:$0xff]  ;;  %7560 = vst [vmem:[#allocation37_spill] sm:$0xff] %v6061_v61  ;;  %v1350_v3 = vld [vmem:[#allocation8 + $0xf48] sm:$0xff] }
 0x18c   :  { %v6059_v18 = vpop.f32.mrb[21].mxu0  ;;  %v4342_v48 = vpack.c.bf16 %v1285_v15, %v1277_v14  ;;  %v4600_v52 = vpack.c.bf16 %v1304_v28, %v1296_v35  ;;  %v1309_v14 = vld [vmem:[#allocation8 + $0xe00] sm:$0xff]  ;;  %v4604_v35 = vpack.c.bf16 %v1320_v30, %v1312_v29  ;;  %v1311_v28 = vld [vmem:[#allocation8 + $0xe10] sm:$0xff]  ;;  %v4608_v29 = vpack.c.bf16 %v1336_v8, %v1328_v40  ;;  %v1414_v61 = vld [vmem:[#allocation8 + $0x1148] sm:$0xff] }
 0x18d   :  { %4335 = vmatpush1.bf16.msra.mxu0 %v4334_v43  ;;  %4591 = vmatpush1.bf16.msra.mxu1 %v4590_v45  ;;  %v6065_v45 = vpop.f32.mrb[17].mxu1  ;;  %v1317_v15 = vld [vmem:[#allocation8 + $0xe40] sm:$0xff]  ;;  %v6078_v30 = vsub.s32 2, %v5903_v34  ;;  %v1351_v40 = vld [vmem:[#allocation8 + $0xf50] sm:$0xff] }
 0x18e   :  { %4337 = vmatprep.subr.bf16.mxu0 %v4336_v50  ;;  %4593 = vmatprep.subr.bf16.mxu1 %v4592_v37  ;;  %v1293_v50 = vld [vmem:[#allocation8 + $0xd80] sm:$0xff] }
 0x18f   :  { %v6063_v43 = vpop.f32.mrb[22].mxu0  ;;  %v1301_v37 = vld [vmem:[#allocation8 + $0xdc0] sm:$0xff]  ;;  %7561 = vst [vmem:[#allocation38_spill] sm:$0xff] %v6078_v30  ;;  %v6086_v8 = vrot.slane %v5908_v36, %v6078_v30  ;;  %v1374_v30 = vld [vmem:[#allocation8 + $0x1008] sm:$0xff] }
 0x190   :  { %v6067_v51 = vpop.f32.mrb[23].mxu0 }
 0x191   :  { %4339 = vmatpush1.bf16.msra.mxu0 %v4338_v31  ;;  %4595 = vmatpush1.bf16.msra.mxu1 %v4594_v11  ;;  %v4346_v31 = vpack.c.bf16 %v1301_v37, %v1293_v50  ;;  %v4602_v11 = vpack.c.bf16 %v1303_v19, %v1295_v53  ;;  %v1325_v50 = vld [vmem:[#allocation8 + $0xe80] sm:$0xff]  ;;  %v1342_v19 = vld [vmem:[#allocation8 + $0xf08] sm:$0xff]  ;;  %v461_v36 = vadd.f32 %v5939_v26, %v6086_v8 }
 0x192   :  { %4341 = vmatprep.subr.bf16.mxu0 %v4340_v21  ;;  %4597 = vmatprep.subr.bf16.mxu1 %v4596_v22  ;;  %v1319_v21 = vld [vmem:[#allocation8 + $0xe50] sm:$0xff]  ;;  %v1326_v22 = vld [vmem:[#allocation8 + $0xe88] sm:$0xff]  ;;  %v1333_v37 = vld [vmem:[#allocation8 + $0xec0] sm:$0xff] }
 0x193   :  { %v6069_v60 = vpop.f32.mrb[24].mxu0  ;;  %v4352_v12 = vpack.c.bf16 %v1334_v27, %v1326_v22  ;;  %v1343_v27 = vld [vmem:[#allocation8 + $0xf10] sm:$0xff] }
 0x194   :  { %v6071_v32 = vpop.f32.mrb[25].mxu0 }
 0x195   :  { %4343 = vmatpush1.bf16.msra.mxu0 %v4342_v48  ;;  %4599 = vmatpush1.bf16.msra.mxu1 %v4598_v49  ;;  %v4350_v48 = vpack.c.bf16 %v1317_v15, %v1309_v14  ;;  %v4606_v49 = vpack.c.bf16 %v1319_v21, %v1311_v28  ;;  %v4354_v14 = vpack.c.bf16 %v1333_v37, %v1325_v50  ;;  %v1341_v28 = vld [vmem:[#allocation8 + $0xf00] sm:$0xff] }
 0x196   :  { %4345 = vmatprep.subr.bf16.mxu0 %v4344_v23  ;;  %4601 = vmatprep.subr.bf16.mxu1 %v4600_v52  ;;  %v1327_v23 = vld [vmem:[#allocation8 + $0xe90] sm:$0xff]  ;;  %v4356_v21 = vpack.c.bf16 %v1350_v3, %v1342_v19 }
 0x197   :  { %v6073_v47 = vpop.f32.mrb[26].mxu0  ;;  %v1335_v52 = vld [vmem:[#allocation8 + $0xed0] sm:$0xff] }
 0x198   :  { %v6075_v53 = vpop.f32.mrb[27].mxu0  ;;  %v4610_v15 = vpack.c.bf16 %v1335_v52, %v1327_v23  ;;  %v4614_v23 = vpack.c.bf16 %v1351_v40, %v1343_v27  ;;  %v1359_v3 = vld [vmem:[#allocation8 + $0xf90] sm:$0xff]  ;;  %v4364_v27 = vpack.c.bf16 %v1382_v38, %v1374_v30  ;;  %v1389_v30 = vld [vmem:[#allocation8 + $0x1080] sm:$0xff] }
 0x199   :  { %4347 = vmatpush1.bf16.msra.mxu0 %v4346_v31  ;;  %4603 = vmatpush1.bf16.msra.mxu1 %v4602_v11  ;;  %v1352_v31 = vld [vmem:[#allocation8 + $0xf58] sm:$0xff] }
 0x19a   :  { %4349 = vmatprep.subr.bf16.mxu0 %v4348_v57  ;;  %4605 = vmatprep.subr.bf16.mxu1 %v4604_v35  ;;  %v1349_v57 = vld [vmem:[#allocation8 + $0xf40] sm:$0xff]  ;;  %v4612_v22 = vpack.c.bf16 %v1352_v31, %v1344_v39  ;;  %v4360_v39 = vpack.c.bf16 %v1366_v10, %v1358_v2  ;;  %v1367_v31 = vld [vmem:[#allocation8 + $0xfd0] sm:$0xff] }
 0x19b   :  { %v6080_v11 = vpop.f32.mrb[28].mxu0  ;;  %v4358_v37 = vpack.c.bf16 %v1349_v57, %v1341_v28  ;;  %v6096_v28 = vpop.f32.mrb[18].mxu1  ;;  %v467_v57 = vadd.f32 %v5953_v54, %v6086_v8  ;;  %v1373_v2 = vld [vmem:[#allocation8 + $0x1000] sm:$0xff] }
 0x19c   :  { %v6082_v35 = vpop.f32.mrb[29].mxu0  ;;  %7562 = vst [vmem:[#allocation39_spill] sm:$0xff] %v6096_v28  ;;  %v1381_v10 = vld [vmem:[#allocation8 + $0x1040] sm:$0xff]  ;;  %v1406_v28 = vld [vmem:[#allocation8 + $0x1108] sm:$0xff] }
 0x19d   :  { %4351 = vmatpush1.bf16.msra.mxu0 %v4350_v48  ;;  %4607 = vmatpush1.bf16.msra.mxu1 %v4606_v49  ;;  %v1360_v48 = vld [vmem:[#allocation8 + $0xf98] sm:$0xff]  ;;  %v4366_v38 = vpack.c.bf16 %v1381_v10, %v1373_v2  ;;  %v481_v2 = vadd.f32 %v5995_v58, %v5993_v55  ;;  %v1413_v10 = vld [vmem:[#allocation8 + $0x1140] sm:$0xff]  ;;  %v4372_v58 = vpack.c.bf16 %v1414_v61, %v1406_v28 }
 0x19e   :  { %4353 = vmatprep.subr.bf16.mxu0 %v4352_v12  ;;  %4609 = vmatprep.subr.bf16.mxu1 %v4608_v29  ;;  %v1368_v49 = vld [vmem:[#allocation8 + $0xfd8] sm:$0xff]  ;;  %v1357_v12 = vld [vmem:[#allocation8 + $0xf80] sm:$0xff] }
 0x19f   :  { %v6088_v50 = vpop.f32.mrb[30].mxu0  ;;  %v1365_v29 = vld [vmem:[#allocation8 + $0xfc0] sm:$0xff]  ;;  %v4616_v19 = vpack.c.bf16 %v1368_v49, %v1360_v48  ;;  %v1375_v48 = vld [vmem:[#allocation8 + $0x1010] sm:$0xff] }
 0x1a0   :  { %v6090_v52 = vpop.f32.mrb[31].mxu0  ;;  %v4362_v26 = vpack.c.bf16 %v1365_v29, %v1357_v12  ;;  %v1383_v49 = vld [vmem:[#allocation8 + $0x1050] sm:$0xff]  ;;  %v743_v12 = vmul.f32 0.2, %v467_v57  ;;  %v473_v29 = vadd.f32 %v5969_v17, %v6086_v8  ;;  %v1416_v17 = vld [vmem:[#allocation8 + $0x1158] sm:$0xff] }
 0x1a1   :  { %4355 = vmatpush1.bf16.msra.mxu0 %v4354_v14  ;;  %4611 = vmatpush1.bf16.msra.mxu1 %v4610_v15  ;;  %v1384_v14 = vld [vmem:[#allocation8 + $0x1058] sm:$0xff]  ;;  %v469_v15 = vadd.f32 %v5957_v62, %v5993_v55  ;;  %v6100_v62 = vpop.f32.mrb[19].mxu1 }
 0x1a2   :  { %4357 = vmatprep.subr.bf16.mxu0 %v4356_v21  ;;  %4613 = vmatprep.subr.bf16.mxu1 %v4612_v22  ;;  %v4618_v21 = vpack.c.bf16 %v1367_v31, %v1359_v3  ;;  %v735_v22 = vmul.f32 0.2, %v461_v36  ;;  %v4620_v40 = vpack.c.bf16 %v1384_v14, %v1376_v46  ;;  %7563 = vst [vmem:[#allocation40_spill] sm:$0xff] %v6100_v62  ;;  %v1391_v14 = vld [vmem:[#allocation8 + $0x1090] sm:$0xff]  ;;  %v1408_v62 = vld [vmem:[#allocation8 + $0x1118] sm:$0xff] }
 0x1a3   :  { %v744_v54 = vmul.f32 0.2, %v469_v15  ;;  %v4622_v46 = vpack.c.bf16 %v1383_v49, %v1375_v48  ;;  %v4368_v3 = vpack.c.bf16 %v1398_v20, %v1390_v13  ;;  %v4624_v31 = vpack.c.bf16 %v1400_v56, %v1392_v1  ;;  %v1415_v48 = vld [vmem:[#allocation8 + $0x1150] sm:$0xff]  ;;  %v1430_v49 = vld [vmem:[#allocation8 + $0x11c8] sm:$0xff] }
 0x1a4   :  { %v6118_v13 = vmax.f32 %v467_v57, %v743_v12  ;;  %v751_v56 = vmul.f32 0.2, %v473_v29  ;;  %v479_v1 = vadd.f32 %v5987_v6, %v6086_v8  ;;  %v1422_v57 = vld [vmem:[#allocation8 + $0x1188] sm:$0xff]  ;;  %v1432_v12 = vld [vmem:[#allocation8 + $0x11d8] sm:$0xff]  ;;  %v760_v6 = vmul.f32 0.2, %v481_v2 }
 0x1a5   :  { %4359 = vmatpush1.bf16.msra.mxu0 %v4358_v37  ;;  %4615 = vmatpush1.bf16.msra.mxu1 %v4614_v23  ;;  %v475_v37 = vadd.f32 %v5976_v44, %v5993_v55  ;;  %v6104_v23 = vpop.f32.mrb[20].mxu1  ;;  %v1399_v44 = vld [vmem:[#allocation8 + $0x10d0] sm:$0xff] }
 0x1a6   :  { %4361 = vmatprep.subr.bf16.mxu0 %v4360_v39  ;;  %4617 = vmatprep.subr.bf16.mxu1 %v4616_v19  ;;  %7564 = vst [vmem:[#allocation41_spill] sm:$0xff] %v6104_v23  ;;  %v1397_v39 = vld [vmem:[#allocation8 + $0x10c0] sm:$0xff]  ;;  %v6108_v19 = vmax.f32 %v461_v36, %v735_v22  ;;  %v6110_v23 = vpop.f32.mrb[21].mxu1  ;;  %7567 = vst [vmem:[#allocation44_spill] sm:$0xff] %v6118_v13  ;;  %v4626_v36 = vpack.c.bf16 %v1399_v44, %v1391_v14  ;;  %v759_v28 = vmul.f32 0.2, %v479_v1 }
 0x1a7   :  { %v4370_v20 = vpack.c.bf16 %v1397_v39, %v1389_v30  ;;  %v6122_v22 = vpop.f32.mrb[22].mxu1  ;;  %v6132_v61 = vmax.f32 %v473_v29, %v751_v56  ;;  %v1421_v39 = vld [vmem:[#allocation8 + $0x1180] sm:$0xff]  ;;  %v1423_v14 = vld [vmem:[#allocation8 + $0x1190] sm:$0xff]  ;;  %v1440_v56 = vld [vmem:[#allocation8 + $0x1218] sm:$0xff] }
 0x1a8   :  { %7565 = vst [vmem:[#allocation42_spill] sm:$0xff] %v6108_v19  ;;  %v1431_v44 = vld [vmem:[#allocation8 + $0x11d0] sm:$0xff] }
 0x1a9   :  { %4363 = vmatpush1.bf16.msra.mxu0 %v4362_v26  ;;  %4619 = vmatpush1.bf16.msra.mxu1 %v4618_v21  ;;  %v6112_v26 = vmax.f32 %v469_v15, %v744_v54  ;;  %v752_v21 = vmul.f32 0.2, %v475_v37  ;;  %v1405_v15 = vld [vmem:[#allocation8 + $0x1100] sm:$0xff]  ;;  %v1424_v54 = vld [vmem:[#allocation8 + $0x1198] sm:$0xff]  ;;  %7569 = vst [vmem:[#allocation46_spill] sm:$0xff] %v6132_v61 }
 0x1aa   :  { %4365 = vmatprep.subr.bf16.mxu0 %v4364_v27  ;;  %4621 = vmatprep.subr.bf16.mxu1 %v4620_v40  ;;  %v4628_v27 = vpack.c.bf16 %v1416_v17, %v1408_v62  ;;  %v1407_v40 = vld [vmem:[#allocation8 + $0x1110] sm:$0xff]  ;;  %v485_v62 = vadd.f32 %v6005_v16, %v6086_v8  ;;  %v4632_v29 = vpack.c.bf16 %v1432_v12, %v1424_v54  ;;  %v1438_v17 = vld [vmem:[#allocation8 + $0x1208] sm:$0xff] }
 0x1ab   :  { %7566 = vst [vmem:[#allocation43_spill] sm:$0xff] %v6112_v26  ;;  %v4630_v30 = vpack.c.bf16 %v1415_v48, %v1407_v40  ;;  %v1437_v40 = vld [vmem:[#allocation8 + $0x1200] sm:$0xff]  ;;  %v1447_v54 = vld [vmem:[#allocation8 + $0x1250] sm:$0xff]  ;;  %v1454_v12 = vld [vmem:[#allocation8 + $0x1288] sm:$0xff] }
 0x1ac   :  { %2105 = vmatmul.mubr.f32.vlgmr.msra.gmra.mrb[32].mxu0 %v6108_v19  ;;  %2557 = vmatmul.mubr.f32.vlgmr.msra.gmra.mrb[32].mxu1 %v6108_v19  ;;  %v6124_v19 = vmax.f32 %v475_v37, %v752_v21  ;;  %v4374_v37 = vpack.c.bf16 %v1413_v10, %v1405_v15  ;;  %v1446_v21 = vld [vmem:[#allocation8 + $0x1248] sm:$0xff]  ;;  %v6148_v15 = vmax.f32 %v479_v1, %v759_v28  ;;  %v767_v10 = vmul.f32 0.2, %v485_v62  ;;  %v1445_v48 = vld [vmem:[#allocation8 + $0x1240] sm:$0xff]  ;;  %v1456_v28 = vld [vmem:[#allocation8 + $0x1298] sm:$0xff] }
 0x1ad   :  { %4367 = vmatpush1.bf16.msra.mxu0 %v4366_v38  ;;  %4623 = vmatpush1.bf16.msra.mxu1 %v4622_v46  ;;  %v487_v38 = vadd.f32 %v6011_v0, %v5993_v55  ;;  %v6130_v46 = vpop.f32.mrb[23].mxu1  ;;  %v4376_v0 = vpack.c.bf16 %v1430_v49, %v1422_v57  ;;  %v1439_v57 = vld [vmem:[#allocation8 + $0x1210] sm:$0xff]  ;;  %v4380_v1 = vpack.c.bf16 %v1446_v21, %v1438_v17 }
 0x1ae   :  { %4369 = vmatprep.subr.bf16.mxu0 %v4368_v3  ;;  %4625 = vmatprep.subr.bf16.mxu1 %v4624_v31  ;;  %7568 = vst [vmem:[#allocation45_spill] sm:$0xff] %v6124_v19  ;;  %v1429_v3 = vld [vmem:[#allocation8 + $0x11c0] sm:$0xff]  ;;  %v6138_v31 = vpop.f32.mrb[24].mxu1  ;;  %7571 = vst [vmem:[#allocation48_spill] sm:$0xff] %v6148_v15  ;;  %v1455_v21 = vld [vmem:[#allocation8 + $0x1290] sm:$0xff] }
 0x1af   :  { %2110 = vmatprep.mubr.f32.mxu0 %v6112_v26  ;;  %2562 = vmatprep.mubr.f32.mxu1 %v6112_v26  ;;  %v6140_v26 = vmax.f32 %v481_v2, %v760_v6  ;;  %v768_v16 = vmul.f32 0.2, %v487_v38  ;;  %v491_v2 = vadd.f32 %v6021_v63, %v6086_v8  ;;  %v1462_v6 = vld [vmem:[#allocation8 + $0x12c8] sm:$0xff] }
 0x1b0   :  { %2111 = vmatmul.mubr.f32.gmra.mrb[34].mxu0 %v6118_v13  ;;  %2563 = vmatmul.mubr.f32.gmra.mrb[34].mxu1 %v6118_v13  ;;  %v1448_v13 = vld [vmem:[#allocation8 + $0x1258] sm:$0xff] }
 0x1b1   :  { %4371 = vmatpush1.bf16.msra.mxu0 %v4370_v20  ;;  %4627 = vmatpush1.bf16.msra.mxu1 %v4626_v36  ;;  %7570 = vst [vmem:[#allocation47_spill] sm:$0xff] %v6140_v26  ;;  %v493_v20 = vadd.f32 %v6025_v4, %v5993_v55  ;;  %v6146_v36 = vpop.f32.mrb[25].mxu1  ;;  %v4636_v49 = vpack.c.bf16 %v1448_v13, %v1440_v56  ;;  %v1463_v56 = vld [vmem:[#allocation8 + $0x12d0] sm:$0xff] }
 0x1b2   :  { %4373 = vmatprep.subr.bf16.mxu0 %v4372_v58  ;;  %4629 = vmatprep.subr.bf16.mxu1 %v4628_v27  ;;  %v4378_v58 = vpack.c.bf16 %v1429_v3, %v1421_v39  ;;  %v4634_v27 = vpack.c.bf16 %v1431_v44, %v1423_v14  ;;  %v6154_v4 = vpop.f32.mrb[26].mxu1  ;;  %v6167_v13 = vmax.f32 %v485_v62, %v767_v10  ;;  %v775_v3 = vmul.f32 0.2, %v491_v2  ;;  %v1461_v14 = vld [vmem:[#allocation8 + $0x12c0] sm:$0xff]  ;;  %v1478_v10 = vld [vmem:[#allocation8 + $0x1348] sm:$0xff] }
 0x1b3   :  { %2116 = vmatprep.mubr.f32.mxu0 %v6124_v19  ;;  %2568 = vmatprep.mubr.f32.mxu1 %v6124_v19  ;;  %7572 = vst [vmem:[#allocation49_spill] sm:$0xff] %v6154_v4  ;;  %v6156_v19 = vmax.f32 %v487_v38, %v768_v16  ;;  %v776_v63 = vmul.f32 0.2, %v493_v20  ;;  %v6165_v39 = vpop.f32.mrb[27].mxu1  ;;  %v497_v38 = vadd.f32 %v6037_v24, %v6086_v8  ;;  %v1470_v16 = vld [vmem:[#allocation8 + $0x1308] sm:$0xff] }
 0x1b4   :  { %2117 = vmatmul.mubr.f32.gmra.mrb[36].mxu0 %v6132_v61  ;;  %2569 = vmatmul.mubr.f32.gmra.mrb[36].mxu1 %v6132_v61  ;;  %v1464_v61 = vld [vmem:[#allocation8 + $0x12d8] sm:$0xff]  ;;  %7575 = vst [vmem:[#allocation52_spill] sm:$0xff] %v6167_v13  ;;  %v6173_v44 = vpop.f32.mrb[28].mxu1  ;;  %v4384_v62 = vpack.c.bf16 %v1462_v6, %v1454_v12  ;;  %v1471_v6 = vld [vmem:[#allocation8 + $0x1310] sm:$0xff] }
 0x1b5   :  { %4375 = vmatpush1.bf16.msra.mxu0 %v4374_v37  ;;  %4631 = vmatpush1.bf16.msra.mxu1 %v4630_v30  ;;  %7573 = vst [vmem:[#allocation50_spill] sm:$0xff] %v6156_v19  ;;  %v499_v37 = vadd.f32 %v6043_v41, %v5993_v55  ;;  %v6163_v30 = vsub.s32 5, %v5903_v34  ;;  %v1453_v41 = vld [vmem:[#allocation8 + $0x1280] sm:$0xff]  ;;  %v4640_v17 = vpack.c.bf16 %v1464_v61, %v1456_v28  ;;  %v1479_v28 = vld [vmem:[#allocation8 + $0x1350] sm:$0xff] }
 0x1b6   :  { %4377 = vmatprep.subr.bf16.mxu0 %v4376_v0  ;;  %4633 = vmatprep.subr.bf16.mxu1 %v4632_v29  ;;  %v4382_v0 = vpack.c.bf16 %v1445_v48, %v1437_v40  ;;  %v4638_v29 = vpack.c.bf16 %v1447_v54, %v1439_v57  ;;  %v6175_v4 = vmax.f32 %v493_v20, %v776_v63  ;;  %v6187_v40 = vpop.f32.mrb[29].mxu1  ;;  %v783_v20 = vmul.f32 0.2, %v497_v38  ;;  %v1486_v63 = vld [vmem:[#allocation8 + $0x1388] sm:$0xff] }
 0x1b7   :  { %2122 = vmatprep.mubr.f32.mxu0 %v6140_v26  ;;  %2574 = vmatprep.mubr.f32.mxu1 %v6140_v26  ;;  %7574 = vst [vmem:[#allocation51_spill] sm:$0xff] %v6163_v30  ;;  %v1480_v26 = vld [vmem:[#allocation8 + $0x1358] sm:$0xff]  ;;  %v784_v24 = vmul.f32 0.2, %v499_v37  ;;  %v6189_v48 = vmax.f32 %v491_v2, %v775_v3  ;;  %v503_v57 = vadd.f32 %v6051_v59, %v6086_v8  ;;  %v6195_v54 = vpop.f32.mrb[30].mxu1  ;;  %v1494_v3 = vld [vmem:[#allocation8 + $0x13c8] sm:$0xff] }
 0x1b8   :  { %2123 = vmatmul.mubr.f32.gmra.mrb[38].mxu0 %v6148_v15  ;;  %2575 = vmatmul.mubr.f32.gmra.mrb[38].mxu1 %v6148_v15  ;;  %v1472_v15 = vld [vmem:[#allocation8 + $0x1318] sm:$0xff]  ;;  %v4388_v2 = vpack.c.bf16 %v1478_v10, %v1470_v16 }
 0x1b9   :  { %4379 = vmatpush1.bf16.msra.mxu0 %v4378_v58  ;;  %4635 = vmatpush1.bf16.msra.mxu1 %v4634_v27  ;;  %v505_v58 = vadd.f32 %v6055_v7, %v5993_v55  ;;  %v6181_v27 = vld [vmem:[#allocation7] sm:$0xff]  ;;  %v4386_v55 = vpack.c.bf16 %v1461_v14, %v1453_v41  ;;  %v4642_v7 = vpack.c.bf16 %v1463_v56, %v1455_v21  ;;  %v1485_v41 = vld [vmem:[#allocation8 + $0x1380] sm:$0xff]  ;;  %v1495_v21 = vld [vmem:[#allocation8 + $0x13d0] sm:$0xff] }
 0x1ba   :  { %4381 = vmatprep.subr.bf16.mxu0 %v4380_v1  ;;  %4637 = vmatprep.subr.bf16.mxu1 %v4636_v49  ;;  %v6185_v61 = vrot.slane %v6181_v27, %v6163_v30  ;;  %v1469_v1 = vld [vmem:[#allocation8 + $0x1300] sm:$0xff]  ;;  %v4644_v12 = vpack.c.bf16 %v1480_v26, %v1472_v15  ;;  %v1488_v30 = vld [vmem:[#allocation8 + $0x1398] sm:$0xff]  ;;  %v791_v26 = vmul.f32 0.2, %v503_v57  ;;  %v1502_v56 = vld [vmem:[#allocation8 + $0x1408] sm:$0xff] }
 0x1bb   :  { %2128 = vmatprep.mubr.f32.mxu0 %v6156_v19  ;;  %2580 = vmatprep.mubr.f32.mxu1 %v6156_v19  ;;  %v1477_v49 = vld [vmem:[#allocation8 + $0x1340] sm:$0xff]  ;;  %v6197_v19 = vmax.f32 %v499_v37, %v784_v24  ;;  %v792_v59 = vmul.f32 0.2, %v505_v58  ;;  %v4646_v37 = vpack.c.bf16 %v1479_v28, %v1471_v6  ;;  %v1504_v16 = vld [vmem:[#allocation8 + $0x1418] sm:$0xff]  ;;  %v1518_v6 = vld [vmem:[#allocation8 + $0x1488] sm:$0xff] }
 0x1bc   :  { %2129 = vmatmul.mubr.f32.gmra.mrb[40].mxu0 %v6167_v13  ;;  %2581 = vmatmul.mubr.f32.gmra.mrb[40].mxu1 %v6167_v13  ;;  %v1496_v13 = vld [vmem:[#allocation8 + $0x13d8] sm:$0xff]  ;;  %v576_v8 = vadd.f32 %v6035_v33, %v6185_v61  ;;  %v4390_v15 = vpack.c.bf16 %v1477_v49, %v1469_v1  ;;  %v1493_v14 = vld [vmem:[#allocation8 + $0x13c0] sm:$0xff]  ;;  %v1487_v33 = vld [vmem:[#allocation8 + $0x1390] sm:$0xff] }
 0x1bd   :  { %4383 = vmatpush1.bf16.msra.mxu0 %v4382_v0  ;;  %4639 = vmatpush1.bf16.msra.mxu1 %v4638_v29  ;;  %v6203_v0 = vpop.f32.mrb[31].mxu1  ;;  %v6205_v29 = vmax.f32 %v497_v38, %v783_v20  ;;  %v1510_v38 = vld [vmem:[#allocation8 + $0x1448] sm:$0xff]  ;;  %v1512_v10 = vld [vmem:[#allocation8 + $0x1458] sm:$0xff]  ;;  %v6209_v24 = vmax.f32 %v505_v58, %v792_v59  ;;  %v1509_v1 = vld [vmem:[#allocation8 + $0x1440] sm:$0xff] }
 0x1be   :  { %4385 = vmatprep.subr.bf16.mxu0 %v4384_v62  ;;  %4641 = vmatprep.subr.bf16.mxu1 %v4640_v17  ;;  %v4392_v62 = vpack.c.bf16 %v1494_v3, %v1486_v63  ;;  %v4648_v17 = vpack.c.bf16 %v1496_v13, %v1488_v30  ;;  %v738_v20 = vmul.f32 0.2, %v576_v8  ;;  %v4394_v30 = vpack.c.bf16 %v1493_v14, %v1485_v41  ;;  %v1526_v28 = vld [vmem:[#allocation8 + $0x14c8] sm:$0xff]  ;;  %v1528_v63 = vld [vmem:[#allocation8 + $0x14d8] sm:$0xff] }
 0x1bf   :  { %2134 = vmatprep.mubr.f32.mxu0 %v6175_v4  ;;  %2586 = vmatprep.mubr.f32.mxu1 %v6175_v4  ;;  %v4650_v13 = vpack.c.bf16 %v1495_v21, %v1487_v33  ;;  %v4396_v58 = vpack.c.bf16 %v1510_v38, %v1502_v56  ;;  %v4652_v49 = vpack.c.bf16 %v1512_v10, %v1504_v16  ;;  %v1542_v33 = vld [vmem:[#allocation8 + $0x1548] sm:$0xff]  ;;  %v1536_v21 = vld [vmem:[#allocation8 + $0x1518] sm:$0xff]  ;;  %v1533_v10 = vld [vmem:[#allocation8 + $0x1500] sm:$0xff] }
 0x1c0   :  { %2135 = vmatmul.mubr.f32.gmra.mrb[42].mxu0 %v6189_v48  ;;  %2587 = vmatmul.mubr.f32.gmra.mrb[42].mxu1 %v6189_v48  ;;  %v6217_v3 = vmax.f32 %v576_v8, %v738_v20  ;;  %v4400_v41 = vpack.c.bf16 %v1526_v28, %v1518_v6  ;;  %v1519_v8 = vld [vmem:[#allocation8 + $0x1490] sm:$0xff]  ;;  %v1544_v56 = vld [vmem:[#allocation8 + $0x1558] sm:$0xff]  ;;  %v1541_v20 = vld [vmem:[#allocation8 + $0x1540] sm:$0xff] }
 0x1c1   :  { %4387 = vmatpush1.bf16.msra.mxu0 %v4386_v55  ;;  %4643 = vmatpush1.bf16.msra.mxu1 %v4642_v7  ;;  %v6213_v55 = vmax.f32 %v503_v57, %v791_v26  ;;  %v1501_v7 = vld [vmem:[#allocation8 + $0x1400] sm:$0xff]  ;;  %v1520_v57 = vld [vmem:[#allocation8 + $0x1498] sm:$0xff]  ;;  %v4406_v6 = vpack.c.bf16 %v1541_v20, %v1533_v10  ;;  %v1567_v10 = vld [vmem:[#allocation8 + $0x1610] sm:$0xff] }
 0x1c2   :  { %4389 = vmatprep.subr.bf16.mxu0 %v4388_v2  ;;  %4645 = vmatprep.subr.bf16.mxu1 %v4644_v12  ;;  %v1503_v2 = vld [vmem:[#allocation8 + $0x1410] sm:$0xff]  ;;  %v4398_v59 = vpack.c.bf16 %v1509_v1, %v1501_v7  ;;  %v4656_v14 = vpack.c.bf16 %v1528_v63, %v1520_v57  ;;  %v1549_v57 = vld [vmem:[#allocation8 + $0x1580] sm:$0xff] }
 0x1c3   :  { %2140 = vmatprep.mubr.f32.mxu0 %v6197_v19  ;;  %2592 = vmatprep.mubr.f32.mxu1 %v6197_v19  ;;  %v1511_v12 = vld [vmem:[#allocation8 + $0x1450] sm:$0xff]  ;;  %v1557_v63 = vld [vmem:[#allocation8 + $0x15c0] sm:$0xff] }
 0x1c4   :  { %2141 = vmatmul.mubr.f32.gmra.mrb[44].mxu0 %v6205_v29  ;;  %2593 = vmatmul.mubr.f32.gmra.mrb[44].mxu1 %v6205_v29  ;;  %v4654_v26 = vpack.c.bf16 %v1511_v12, %v1503_v2  ;;  %v1535_v7 = vld [vmem:[#allocation8 + $0x1510] sm:$0xff]  ;;  %v1552_v2 = vld [vmem:[#allocation8 + $0x1598] sm:$0xff] }
 0x1c5   :  { %4391 = vmatpush1.bf16.msra.mxu0 %v4390_v15  ;;  %4647 = vmatpush1.bf16.msra.mxu1 %v4646_v37  ;;  %v1517_v15 = vld [vmem:[#allocation8 + $0x1480] sm:$0xff]  ;;  %v1543_v1 = vld [vmem:[#allocation8 + $0x1550] sm:$0xff]  ;;  %v1560_v12 = vld [vmem:[#allocation8 + $0x15d8] sm:$0xff] }
 0x1c6   :  { %4393 = vmatprep.subr.bf16.mxu0 %v4392_v62  ;;  %4649 = vmatprep.subr.bf16.mxu1 %v4648_v17  ;;  %v1525_v37 = vld [vmem:[#allocation8 + $0x14c0] sm:$0xff]  ;;  %v1527_v62 = vld [vmem:[#allocation8 + $0x14d0] sm:$0xff]  ;;  %v1534_v17 = vld [vmem:[#allocation8 + $0x1508] sm:$0xff]  ;;  %v4662_v28 = vpack.c.bf16 %v1543_v1, %v1535_v7 }
 0x1c7   :  { %2146 = vmatprep.mubr.f32.mxu0 %v6209_v24  ;;  %2598 = vmatprep.mubr.f32.mxu1 %v6209_v24  ;;  %v4402_v38 = vpack.c.bf16 %v1525_v37, %v1517_v15  ;;  %v4658_v16 = vpack.c.bf16 %v1527_v62, %v1519_v8  ;;  %v1551_v15 = vld [vmem:[#allocation8 + $0x1590] sm:$0xff]  ;;  %v1568_v8 = vld [vmem:[#allocation8 + $0x1618] sm:$0xff] }
 0x1c8   :  { %2147 = vmatmul.mubr.f32.gmra.mrb[46].mxu0 %v6213_v55  ;;  %2599 = vmatmul.mubr.f32.gmra.mrb[46].mxu1 %v6213_v55  ;;  %v1559_v37 = vld [vmem:[#allocation8 + $0x15d0] sm:$0xff]  ;;  %v1576_v62 = vld [vmem:[#allocation8 + $0x1658] sm:$0xff] }
 0x1c9   :  { %4395 = vmatpush1.bf16.msra.mxu0 %v4394_v30  ;;  %4651 = vmatpush1.bf16.msra.mxu1 %v4650_v13  ;;  %v4404_v30 = vpack.c.bf16 %v1542_v33, %v1534_v17  ;;  %v4660_v13 = vpack.c.bf16 %v1544_v56, %v1536_v21  ;;  %v4410_v17 = vpack.c.bf16 %v1557_v63, %v1549_v57  ;;  %v1565_v21 = vld [vmem:[#allocation8 + $0x1600] sm:$0xff]  ;;  %v1575_v20 = vld [vmem:[#allocation8 + $0x1650] sm:$0xff]  ;;  %v1584_v7 = vld [vmem:[#allocation8 + $0x1698] sm:$0xff]  ;;  %v6226_v57 = vsub.s32 4, %v5903_v34 }
 0x1ca   :  { %4397 = vmatprep.subr.bf16.mxu0 %v4396_v58  ;;  %4653 = vmatprep.subr.bf16.mxu1 %v4652_v49  ;;  %v1550_v58 = vld [vmem:[#allocation8 + $0x1588] sm:$0xff]  ;;  %v4666_v33 = vpack.c.bf16 %v1559_v37, %v1551_v15  ;;  %v1573_v56 = vld [vmem:[#allocation8 + $0x1640] sm:$0xff]  ;;  %v1592_v1 = vld [vmem:[#allocation8 + $0x16d8] sm:$0xff] }
 0x1cb   :  { %2217 = vmatprep.mubr.f32.mxu0 %v6217_v3  ;;  %2669 = vmatprep.mubr.f32.mxu1 %v6217_v3  ;;  %v1558_v49 = vld [vmem:[#allocation8 + $0x15c8] sm:$0xff]  ;;  %7576 = vst [vmem:[#allocation53_spill] sm:$0xff] %v6226_v57  ;;  %v1583_v63 = vld [vmem:[#allocation8 + $0x1690] sm:$0xff]  ;;  %v1600_v37 = vld [vmem:[#allocation8 + $0x1718] sm:$0xff] }
 0x1cc   :  { %v1606_v15 = vld [vmem:[#allocation8 + $0x1748] sm:$0xff] }
 0x1cd   :  { %4399 = vmatpush1.bf16.msra.mxu0 %v4398_v59  ;;  %4655 = vmatpush1.bf16.msra.mxu1 %v4654_v26  ;;  %v4408_v59 = vpack.c.bf16 %v1558_v49, %v1550_v58  ;;  %v4664_v26 = vpack.c.bf16 %v1560_v12, %v1552_v2  ;;  %v4414_v58 = vpack.c.bf16 %v1573_v56, %v1565_v21  ;;  %v1581_v2 = vld [vmem:[#allocation8 + $0x1680] sm:$0xff] }
 0x1ce   :  { %4401 = vmatprep.subr.bf16.mxu0 %v4400_v41  ;;  %4657 = vmatprep.subr.bf16.mxu1 %v4656_v14  ;;  %v1566_v41 = vld [vmem:[#allocation8 + $0x1608] sm:$0xff]  ;;  %v4670_v49 = vpack.c.bf16 %v1575_v20, %v1567_v10  ;;  %v1589_v12 = vld [vmem:[#allocation8 + $0x16c0] sm:$0xff]  ;;  %v6230_v21 = vrot.slane %v6181_v27, %v6226_v57 }
 0x1cf   :  { %v1574_v14 = vld [vmem:[#allocation8 + $0x1648] sm:$0xff] }
 0x1d0   :  { %v1614_v10 = vld [vmem:[#allocation8 + $0x1788] sm:$0xff] }
 0x1d1   :  { %4403 = vmatpush1.bf16.msra.mxu0 %v4402_v38  ;;  %4659 = vmatpush1.bf16.msra.mxu1 %v4658_v16  ;;  %v4412_v38 = vpack.c.bf16 %v1574_v14, %v1566_v41  ;;  %v4668_v16 = vpack.c.bf16 %v1576_v62, %v1568_v8  ;;  %v1608_v41 = vld [vmem:[#allocation8 + $0x1758] sm:$0xff]  ;;  %v4418_v14 = vpack.c.bf16 %v1589_v12, %v1581_v2  ;;  %v1597_v62 = vld [vmem:[#allocation8 + $0x1700] sm:$0xff]  ;;  %v1622_v20 = vld [vmem:[#allocation8 + $0x17c8] sm:$0xff] }
 0x1d2   :  { %4405 = vmatprep.subr.bf16.mxu0 %v4404_v30  ;;  %4661 = vmatprep.subr.bf16.mxu1 %v4660_v13  ;;  %v1582_v30 = vld [vmem:[#allocation8 + $0x1688] sm:$0xff]  ;;  %v1621_v2 = vld [vmem:[#allocation8 + $0x17c0] sm:$0xff]  ;;  %v1615_v12 = vld [vmem:[#allocation8 + $0x1790] sm:$0xff] }
 0x1d3   :  { %v1590_v13 = vld [vmem:[#allocation8 + $0x16c8] sm:$0xff] }
 0x1d5   :  { %4407 = vmatpush1.bf16.msra.mxu0 %v4406_v6  ;;  %4663 = vmatpush1.bf16.msra.mxu1 %v4662_v28  ;;  %v4416_v6 = vpack.c.bf16 %v1590_v13, %v1582_v30  ;;  %v4672_v28 = vpack.c.bf16 %v1592_v1, %v1584_v7  ;;  %v1616_v30 = vld [vmem:[#allocation8 + $0x1798] sm:$0xff] }
 0x1d6   :  { %4409 = vmatprep.subr.bf16.mxu0 %v4408_v59  ;;  %4665 = vmatprep.subr.bf16.mxu1 %v4664_v26  ;;  %v1591_v59 = vld [vmem:[#allocation8 + $0x16d0] sm:$0xff]  ;;  %v1598_v26 = vld [vmem:[#allocation8 + $0x1708] sm:$0xff]  ;;  %v1624_v13 = vld [vmem:[#allocation8 + $0x17d8] sm:$0xff] }
 0x1d7   :  { %v4674_v8 = vpack.c.bf16 %v1591_v59, %v1583_v63  ;;  %v4420_v56 = vpack.c.bf16 %v1606_v15, %v1598_v26  ;;  %v4680_v63 = vpack.c.bf16 %v1624_v13, %v1616_v30  ;;  %v1623_v59 = vld [vmem:[#allocation8 + $0x17d0] sm:$0xff]  ;;  %v1630_v26 = vld [vmem:[#allocation8 + $0x1808] sm:$0xff] }
 0x1d8   :  { %v1638_v15 = vld [vmem:[#allocation8 + $0x1848] sm:$0xff] }
 0x1d9   :  { %4411 = vmatpush1.bf16.msra.mxu0 %v4410_v17  ;;  %4667 = vmatpush1.bf16.msra.mxu1 %v4666_v33  ;;  %v1605_v17 = vld [vmem:[#allocation8 + $0x1740] sm:$0xff]  ;;  %v1599_v33 = vld [vmem:[#allocation8 + $0x1710] sm:$0xff]  ;;  %v1646_v30 = vld [vmem:[#allocation8 + $0x1888] sm:$0xff] }
 0x1da   :  { %4413 = vmatprep.subr.bf16.mxu0 %v4412_v38  ;;  %4669 = vmatprep.subr.bf16.mxu1 %v4668_v16  ;;  %v4676_v38 = vpack.c.bf16 %v1608_v41, %v1600_v37  ;;  %v1607_v16 = vld [vmem:[#allocation8 + $0x1750] sm:$0xff]  ;;  %v4422_v7 = vpack.c.bf16 %v1605_v17, %v1597_v62  ;;  %v1632_v37 = vld [vmem:[#allocation8 + $0x1818] sm:$0xff]  ;;  %v4682_v62 = vpack.c.bf16 %v1623_v59, %v1615_v12 }
 0x1db   :  { %v4678_v1 = vpack.c.bf16 %v1607_v16, %v1599_v33  ;;  %v1640_v41 = vld [vmem:[#allocation8 + $0x1858] sm:$0xff]  ;;  %v4428_v17 = vpack.c.bf16 %v1638_v15, %v1630_v26  ;;  %v1637_v33 = vld [vmem:[#allocation8 + $0x1840] sm:$0xff]  ;;  %v594_v26 = vadd.f32 %v6067_v51, %v6185_v61 }
 0x1dc   :  { %v4684_v16 = vpack.c.bf16 %v1640_v41, %v1632_v37  ;;  %v1653_v15 = vld [vmem:[#allocation8 + $0x18c0] sm:$0xff]  ;;  %v1655_v37 = vld [vmem:[#allocation8 + $0x18d0] sm:$0xff] }
 0x1dd   :  { %4415 = vmatpush1.bf16.msra.mxu0 %v4414_v58  ;;  %4671 = vmatpush1.bf16.msra.mxu1 %v4670_v49  ;;  %v4424_v58 = vpack.c.bf16 %v1622_v20, %v1614_v10  ;;  %v1613_v49 = vld [vmem:[#allocation8 + $0x1780] sm:$0xff]  ;;  %v1631_v10 = vld [vmem:[#allocation8 + $0x1810] sm:$0xff] }
 0x1de   :  { %4417 = vmatprep.subr.bf16.mxu0 %v4416_v6  ;;  %4673 = vmatprep.subr.bf16.mxu1 %v4672_v28  ;;  %v574_v6 = vadd.f32 %v6031_v5, %v6230_v21  ;;  %v582_v28 = vadd.f32 %v6049_v25, %v6185_v61  ;;  %v1629_v5 = vld [vmem:[#allocation8 + $0x1800] sm:$0xff]  ;;  %v588_v25 = vadd.f32 %v6059_v18, %v6185_v61  ;;  %v1639_v20 = vld [vmem:[#allocation8 + $0x1850] sm:$0xff] }
 0x1df   :  { %v4686_v12 = vpack.c.bf16 %v1639_v20, %v1631_v10  ;;  %v600_v10 = vadd.f32 %v6071_v32, %v6185_v61  ;;  %v1669_v20 = vld [vmem:[#allocation8 + $0x1940] sm:$0xff]  ;;  %v1680_v32 = vld [vmem:[#allocation8 + $0x1998] sm:$0xff] }
 0x1e0   :  { %v754_v18 = vmul.f32 0.2, %v588_v25 }
 0x1e1   :  { %4419 = vmatpush1.bf16.msra.mxu0 %v4418_v14  ;;  %4675 = vmatpush1.bf16.msra.mxu1 %v4674_v8  ;;  %v580_v14 = vadd.f32 %v6047_v42, %v6230_v21  ;;  %v4426_v8 = vpack.c.bf16 %v1621_v2, %v1613_v49  ;;  %v586_v42 = vadd.f32 %v6057_v9, %v6230_v21  ;;  %v1656_v49 = vld [vmem:[#allocation8 + $0x18d8] sm:$0xff]  ;;  %v1647_v9 = vld [vmem:[#allocation8 + $0x1890] sm:$0xff] }
 0x1e2   :  { %4421 = vmatprep.subr.bf16.mxu0 %v4420_v56  ;;  %4677 = vmatprep.subr.bf16.mxu1 %v4676_v38  ;;  %v737_v56 = vmul.f32 0.2, %v574_v6  ;;  %v746_v38 = vmul.f32 0.2, %v582_v28  ;;  %v4430_v2 = vpack.c.bf16 %v1637_v33, %v1629_v5  ;;  %v1672_v33 = vld [vmem:[#allocation8 + $0x1958] sm:$0xff] }
 0x1e3   :  { %v745_v13 = vmul.f32 0.2, %v580_v14  ;;  %v753_v5 = vmul.f32 0.2, %v586_v42 }
 0x1e4   :  { %v6244_v59 = vmax.f32 %v582_v28, %v746_v38  ;;  %v1670_v28 = vld [vmem:[#allocation8 + $0x1948] sm:$0xff]  ;;  %v1661_v38 = vld [vmem:[#allocation8 + $0x1900] sm:$0xff] }
 0x1e5   :  { %4423 = vmatpush1.bf16.msra.mxu0 %v4422_v7  ;;  %4679 = vmatpush1.bf16.msra.mxu1 %v4678_v1  ;;  %v1654_v7 = vld [vmem:[#allocation8 + $0x18c8] sm:$0xff]  ;;  %v1648_v1 = vld [vmem:[#allocation8 + $0x1898] sm:$0xff] }
 0x1e6   :  { %4425 = vmatprep.subr.bf16.mxu0 %v4424_v58  ;;  %4681 = vmatprep.subr.bf16.mxu1 %v4680_v63  ;;  %v1645_v58 = vld [vmem:[#allocation8 + $0x1880] sm:$0xff]  ;;  %v6242_v63 = vmax.f32 %v574_v6, %v737_v56  ;;  %v4432_v41 = vpack.c.bf16 %v1654_v7, %v1646_v30  ;;  %v4688_v57 = vpack.c.bf16 %v1656_v49, %v1648_v1  ;;  %v1671_v30 = vld [vmem:[#allocation8 + $0x1950] sm:$0xff]  ;;  %v1678_v1 = vld [vmem:[#allocation8 + $0x1988] sm:$0xff] }
 0x1e7   :  { %v592_v6 = vadd.f32 %v6063_v43, %v6230_v21  ;;  %v4434_v51 = vpack.c.bf16 %v1653_v15, %v1645_v58  ;;  %v4690_v56 = vpack.c.bf16 %v1655_v37, %v1647_v9  ;;  %v1663_v43 = vld [vmem:[#allocation8 + $0x1910] sm:$0xff]  ;;  %v6260_v49 = vmax.f32 %v586_v42, %v753_v5  ;;  %v1688_v58 = vld [vmem:[#allocation8 + $0x19d8] sm:$0xff]  ;;  %v1677_v15 = vld [vmem:[#allocation8 + $0x1980] sm:$0xff] }
 0x1e8   :  { %v770_v42 = vmul.f32 0.2, %v600_v10  ;;  %v606_v37 = vadd.f32 %v6075_v53, %v6185_v61  ;;  %v1696_v53 = vld [vmem:[#allocation8 + $0x1a18] sm:$0xff] }
 0x1e9   :  { %4427 = vmatpush1.bf16.msra.mxu0 %v4426_v8  ;;  %4683 = vmatpush1.bf16.msra.mxu1 %v4682_v62  ;;  %v1662_v8 = vld [vmem:[#allocation8 + $0x1908] sm:$0xff]  ;;  %v6248_v62 = vmax.f32 %v580_v14, %v745_v13  ;;  %v762_v14 = vmul.f32 0.2, %v594_v26 }
 0x1ea   :  { %4429 = vmatprep.subr.bf16.mxu0 %v4428_v17  ;;  %4685 = vmatprep.subr.bf16.mxu1 %v4684_v16  ;;  %v1664_v17 = vld [vmem:[#allocation8 + $0x1918] sm:$0xff]  ;;  %v6254_v16 = vmax.f32 %v588_v25, %v754_v18  ;;  %v4436_v13 = vpack.c.bf16 %v1670_v28, %v1662_v8  ;;  %v761_v25 = vmul.f32 0.2, %v592_v6  ;;  %v4438_v18 = vpack.c.bf16 %v1669_v20, %v1661_v38  ;;  %v1687_v8 = vld [vmem:[#allocation8 + $0x19d0] sm:$0xff] }
 0x1eb   :  { %v4692_v7 = vpack.c.bf16 %v1672_v33, %v1664_v17  ;;  %v6266_v9 = vmax.f32 %v594_v26, %v762_v14  ;;  %v4696_v28 = vpack.c.bf16 %v1688_v58, %v1680_v32  ;;  %v1694_v17 = vld [vmem:[#allocation8 + $0x1a08] sm:$0xff]  ;;  %v1704_v38 = vld [vmem:[#allocation8 + $0x1a58] sm:$0xff] }
 0x1ec   :  { %2218 = vmatmul.mubr.f32.vlgmr.msra.gmra.mrb[32].mxu0 %v6242_v63  ;;  %2670 = vmatmul.mubr.f32.vlgmr.msra.gmra.mrb[32].mxu1 %v6242_v63  ;;  %v6272_v33 = vmax.f32 %v592_v6, %v761_v25  ;;  %v6281_v6 = vmax.f32 %v600_v10, %v770_v42  ;;  %v1703_v25 = vld [vmem:[#allocation8 + $0x1a50] sm:$0xff]  ;;  %v4700_v32 = vpack.c.bf16 %v1704_v38, %v1696_v53  ;;  %v1710_v58 = vld [vmem:[#allocation8 + $0x1a88] sm:$0xff]  ;;  %v1720_v42 = vld [vmem:[#allocation8 + $0x1ad8] sm:$0xff] }
 0x1ed   :  { %4431 = vmatpush1.bf16.msra.mxu0 %v4430_v2  ;;  %4687 = vmatpush1.bf16.msra.mxu1 %v4686_v12  ;;  %v598_v2 = vadd.f32 %v6069_v60, %v6230_v21  ;;  %v1686_v12 = vld [vmem:[#allocation8 + $0x19c8] sm:$0xff]  ;;  %v1679_v60 = vld [vmem:[#allocation8 + $0x1990] sm:$0xff] }
 0x1ee   :  { %2223 = vmatprep.mubr.f32.mxu0 %v6244_v59  ;;  %2675 = vmatprep.mubr.f32.mxu1 %v6244_v59  ;;  %v4440_v5 = vpack.c.bf16 %v1686_v12, %v1678_v1  ;;  %v4698_v20 = vpack.c.bf16 %v1687_v8, %v1679_v60  ;;  %v1695_v1 = vld [vmem:[#allocation8 + $0x1a10] sm:$0xff]  ;;  %v1709_v8 = vld [vmem:[#allocation8 + $0x1a80] sm:$0xff] }
 0x1ef   :  { %4433 = vmatprep.subr.bf16.mxu0 %v4432_v41  ;;  %4689 = vmatprep.subr.bf16.mxu1 %v4688_v57  ;;  %v4694_v57 = vpack.c.bf16 %v1671_v30, %v1663_v43  ;;  %v1685_v41 = vld [vmem:[#allocation8 + $0x19c0] sm:$0xff]  ;;  %v769_v26 = vmul.f32 0.2, %v598_v2  ;;  %v6279_v30 = vsub.s32 7, %v5903_v34  ;;  %v4702_v60 = vpack.c.bf16 %v1703_v25, %v1695_v1 }
 0x1f0   :  { %2224 = vmatmul.mubr.f32.gmra.mrb[34].mxu0 %v6248_v62  ;;  %2676 = vmatmul.mubr.f32.gmra.mrb[34].mxu1 %v6248_v62  ;;  %v4442_v14 = vpack.c.bf16 %v1685_v41, %v1677_v15  ;;  %v1693_v43 = vld [vmem:[#allocation8 + $0x1a00] sm:$0xff]  ;;  %v1718_v15 = vld [vmem:[#allocation8 + $0x1ac8] sm:$0xff] }
 0x1f1   :  { %4435 = vmatpush1.bf16.msra.mxu0 %v4434_v51  ;;  %4691 = vmatpush1.bf16.msra.mxu1 %v4690_v56  ;;  %v604_v51 = vadd.f32 %v6073_v47, %v6230_v21  ;;  %v1702_v56 = vld [vmem:[#allocation8 + $0x1a48] sm:$0xff]  ;;  %7577 = vst [vmem:[#allocation54_spill] sm:$0xff] %v6279_v30  ;;  %v612_v47 = vadd.f32 %v6082_v35, %v6185_v61  ;;  %v1712_v35 = vld [vmem:[#allocation8 + $0x1a98] sm:$0xff] }
 0x1f2   :  { %2229 = vmatprep.mubr.f32.mxu0 %v6254_v16  ;;  %2681 = vmatprep.mubr.f32.mxu1 %v6254_v16  ;;  %v4444_v12 = vpack.c.bf16 %v1702_v56, %v1694_v17  ;;  %v1717_v17 = vld [vmem:[#allocation8 + $0x1ac0] sm:$0xff]  ;;  %v1719_v56 = vld [vmem:[#allocation8 + $0x1ad0] sm:$0xff]  ;;  %v4448_v53 = vpack.c.bf16 %v1718_v15, %v1710_v58  ;;  %v4704_v38 = vpack.c.bf16 %v1720_v42, %v1712_v35  ;;  %v1742_v35 = vld [vmem:[#allocation8 + $0x1b88] sm:$0xff] }
 0x1f3   :  { %4437 = vmatprep.subr.bf16.mxu0 %v4436_v13  ;;  %4693 = vmatprep.subr.bf16.mxu1 %v4692_v7  ;;  %v778_v13 = vmul.f32 0.2, %v606_v37  ;;  %v1701_v7 = vld [vmem:[#allocation8 + $0x1a40] sm:$0xff]  ;;  %v777_v10 = vmul.f32 0.2, %v604_v51 }
 0x1f4   :  { %2230 = vmatmul.mubr.f32.gmra.mrb[36].mxu0 %v6260_v49  ;;  %2682 = vmatmul.mubr.f32.gmra.mrb[36].mxu1 %v6260_v49  ;;  %v4446_v41 = vpack.c.bf16 %v1701_v7, %v1693_v43  ;;  %v616_v43 = vadd.f32 %v6088_v50, %v6230_v21  ;;  %v4450_v7 = vpack.c.bf16 %v1717_v17, %v1709_v8  ;;  %v1733_v58 = vld [vmem:[#allocation8 + $0x1b40] sm:$0xff]  ;;  %v1727_v50 = vld [vmem:[#allocation8 + $0x1b10] sm:$0xff] }
 0x1f5   :  { %4439 = vmatpush1.bf16.msra.mxu0 %v4438_v18  ;;  %4695 = vmatpush1.bf16.msra.mxu1 %v4694_v57  ;;  %v6287_v18 = vmax.f32 %v598_v2, %v769_v26  ;;  %v610_v57 = vadd.f32 %v6080_v11, %v6230_v21  ;;  %v6295_v2 = vrot.slane %v6181_v27, %v6279_v30  ;;  %v1711_v26 = vld [vmem:[#allocation8 + $0x1a90] sm:$0xff]  ;;  %v890_v30 = vld [vmem:[#allocation8 + $0xe8] sm:$0xff] }
 0x1f6   :  { %2235 = vmatprep.mubr.f32.mxu0 %v6266_v9  ;;  %2687 = vmatprep.mubr.f32.mxu1 %v6266_v9  ;;  %v618_v11 = vadd.f32 %v6090_v52, %v6185_v61  ;;  %v1728_v52 = vld [vmem:[#allocation8 + $0x1b18] sm:$0xff]  ;;  %v4706_v1 = vpack.c.bf16 %v1719_v56, %v1711_v26  ;;  %v1735_v21 = vld [vmem:[#allocation8 + $0x1b50] sm:$0xff]  ;;  %v1749_v56 = vld [vmem:[#allocation8 + $0x1bc0] sm:$0xff] }
 0x1f7   :  { %4441 = vmatprep.subr.bf16.mxu0 %v4440_v5  ;;  %4697 = vmatprep.subr.bf16.mxu1 %v4696_v28  ;;  %v6297_v5 = vmax.f32 %v606_v37, %v778_v13  ;;  %v786_v28 = vmul.f32 0.2, %v612_v47  ;;  %v785_v37 = vmul.f32 0.2, %v610_v57  ;;  %v1734_v13 = vld [vmem:[#allocation8 + $0x1b48] sm:$0xff]  ;;  %v1736_v61 = vld [vmem:[#allocation8 + $0x1b58] sm:$0xff]  ;;  %v689_v25 = vadd.f32 %v6065_v45, %v6295_v2 }
 0x1f8   :  { %2236 = vmatmul.mubr.f32.gmra.mrb[38].mxu0 %v6272_v33  ;;  %2688 = vmatmul.mubr.f32.gmra.mrb[38].mxu1 %v6272_v33  ;;  %v4708_v15 = vpack.c.bf16 %v1736_v61, %v1728_v52  ;;  %v1750_v45 = vld [vmem:[#allocation8 + $0x1bc8] sm:$0xff]  ;;  %v4710_v17 = vpack.c.bf16 %v1735_v21, %v1727_v50  ;;  %v1760_v61 = vld [vmem:[#allocation8 + $0x1c18] sm:$0xff]  ;;  %v1759_v50 = vld [vmem:[#allocation8 + $0x1c10] sm:$0xff] }
 0x1f9   :  { %4443 = vmatpush1.bf16.msra.mxu0 %v4442_v14  ;;  %4699 = vmatpush1.bf16.msra.mxu1 %v4698_v20  ;;  %v1726_v14 = vld [vmem:[#allocation8 + $0x1b08] sm:$0xff]  ;;  %v6303_v20 = vmax.f32 %v604_v51, %v777_v10  ;;  %v1725_v51 = vld [vmem:[#allocation8 + $0x1b00] sm:$0xff]  ;;  %v6315_v42 = vmax.f32 %v610_v57, %v785_v37  ;;  %v740_v8 = vmul.f32 0.2, %v689_v25  ;;  %v1751_v37 = vld [vmem:[#allocation8 + $0x1bd0] sm:$0xff] }
 0x1fa   :  { %2241 = vmatprep.mubr.f32.mxu0 %v6281_v6  ;;  %2693 = vmatprep.mubr.f32.mxu1 %v6281_v6  ;;  %v4452_v10 = vpack.c.bf16 %v1734_v13, %v1726_v14  ;;  %v1741_v57 = vld [vmem:[#allocation8 + $0x1b80] sm:$0xff]  ;;  %v1743_v14 = vld [vmem:[#allocation8 + $0x1b90] sm:$0xff]  ;;  %v1758_v13 = vld [vmem:[#allocation8 + $0x1c08] sm:$0xff] }
 0x1fb   :  { %4445 = vmatprep.subr.bf16.mxu0 %v4444_v12  ;;  %4701 = vmatprep.subr.bf16.mxu1 %v4700_v32  ;;  %7578 = vst [vmem:[#allocation55_spill] sm:$0xff] %v6303_v20  ;;  %v6311_v12 = vmax.f32 %v612_v47, %v786_v28  ;;  %v794_v32 = vmul.f32 0.2, %v618_v11  ;;  %7580 = vst [vmem:[#allocation57_spill] sm:$0xff] %v6315_v42  ;;  %v1744_v47 = vld [vmem:[#allocation8 + $0x1b98] sm:$0xff]  ;;  %v4454_v28 = vpack.c.bf16 %v1733_v58, %v1725_v51  ;;  %v1757_v58 = vld [vmem:[#allocation8 + $0x1c00] sm:$0xff] }
 0x1fc   :  { %2242 = vmatmul.mubr.f32.gmra.mrb[40].mxu0 %v6287_v18  ;;  %2694 = vmatmul.mubr.f32.gmra.mrb[40].mxu1 %v6287_v18  ;;  %v4458_v51 = vpack.c.bf16 %v1749_v56, %v1741_v57  ;;  %v1775_v57 = vld [vmem:[#allocation8 + $0x1c90] sm:$0xff] }
 0x1fd   :  { %4447 = vmatpush1.bf16.msra.mxu0 %v4446_v41  ;;  %4703 = vmatpush1.bf16.msra.mxu1 %v4702_v60  ;;  %7579 = vst [vmem:[#allocation56_spill] sm:$0xff] %v6311_v12  ;;  %v793_v41 = vmul.f32 0.2, %v616_v43  ;;  %v1752_v60 = vld [vmem:[#allocation8 + $0x1bd8] sm:$0xff]  ;;  %v6319_v26 = vmax.f32 %v618_v11, %v794_v32  ;;  %v1766_v11 = vld [vmem:[#allocation8 + $0x1c48] sm:$0xff]  ;;  %v4714_v32 = vpack.c.bf16 %v1751_v37, %v1743_v14 }
 0x1fe   :  { %2247 = vmatprep.mubr.f32.mxu0 %v6297_v5  ;;  %2699 = vmatprep.mubr.f32.mxu1 %v6297_v5  ;;  %v4460_v21 = vpack.c.bf16 %v1766_v11, %v1758_v13  ;;  %v1798_v14 = vld [vmem:[#allocation8 + $0x1d48] sm:$0xff]  ;;  %v1792_v37 = vld [vmem:[#allocation8 + $0x1d18] sm:$0xff] }
 0x1ff   :  { %4449 = vmatprep.subr.bf16.mxu0 %v4448_v53  ;;  %4705 = vmatprep.subr.bf16.mxu1 %v4704_v38  ;;  %7581 = vst [vmem:[#allocation58_spill] sm:$0xff] %v6319_v26  ;;  %v4456_v53 = vpack.c.bf16 %v1750_v45, %v1742_v35  ;;  %v4712_v38 = vpack.c.bf16 %v1752_v60, %v1744_v47  ;;  %v1774_v35 = vld [vmem:[#allocation8 + $0x1c88] sm:$0xff]  ;;  %v1784_v45 = vld [vmem:[#allocation8 + $0x1cd8] sm:$0xff] }
 0x200   :  { %2248 = vmatmul.mubr.f32.gmra.mrb[42].mxu0 %v6303_v20  ;;  %2700 = vmatmul.mubr.f32.gmra.mrb[42].mxu1 %v6303_v20  ;;  %v6323_v52 = vmax.f32 %v616_v43, %v793_v41  ;;  %v1765_v43 = vld [vmem:[#allocation8 + $0x1c40] sm:$0xff]  ;;  %v1782_v41 = vld [vmem:[#allocation8 + $0x1cc8] sm:$0xff]  ;;  %v1800_v13 = vld [vmem:[#allocation8 + $0x1d58] sm:$0xff] }
 0x201   :  { %4451 = vmatpush1.bf16.msra.mxu0 %v4450_v7  ;;  %4707 = vmatpush1.bf16.msra.mxu1 %v4706_v1  ;;  %v1768_v7 = vld [vmem:[#allocation8 + $0x1c58] sm:$0xff]  ;;  %v6327_v1 = vmax.f32 %v689_v25, %v740_v8  ;;  %v4462_v47 = vpack.c.bf16 %v1765_v43, %v1757_v58  ;;  %v4464_v8 = vpack.c.bf16 %v1782_v41, %v1774_v35  ;;  %v1791_v58 = vld [vmem:[#allocation8 + $0x1d10] sm:$0xff] }
 0x202   :  { %2253 = vmatprep.mubr.f32.mxu0 %v6311_v12  ;;  %2705 = vmatprep.mubr.f32.mxu1 %v6311_v12  ;;  %7582 = vst [vmem:[#allocation59_spill] sm:$0xff] %v6323_v52  ;;  %v1776_v25 = vld [vmem:[#allocation8 + $0x1c98] sm:$0xff]  ;;  %v4724_v43 = vpack.c.bf16 %v1800_v13, %v1792_v37  ;;  %v6673_v12 = vld [vmem:[#allocation8 + $0x1be0] sm:$0xff] }
 0x203   :  { %4453 = vmatprep.subr.bf16.mxu0 %v4452_v10  ;;  %4709 = vmatprep.subr.bf16.mxu1 %v4708_v15  ;;  %7583 = vst [vmem:[#allocation60_spill] sm:$0xff] %v6327_v1  ;;  %v4716_v10 = vpack.c.bf16 %v1768_v7, %v1760_v61  ;;  %v1767_v15 = vld [vmem:[#allocation8 + $0x1c50] sm:$0xff]  ;;  %v4720_v56 = vpack.c.bf16 %v1784_v45, %v1776_v25  ;;  %v1816_v35 = vld [vmem:[#allocation8 + $0x1dd8] sm:$0xff] }
 0x204   :  { %2254 = vmatmul.mubr.f32.gmra.mrb[44].mxu0 %v6315_v42  ;;  %2706 = vmatmul.mubr.f32.gmra.mrb[44].mxu1 %v6315_v42  ;;  %v4718_v60 = vpack.c.bf16 %v1767_v15, %v1759_v50  ;;  %v1799_v50 = vld [vmem:[#allocation8 + $0x1d50] sm:$0xff]  ;;  %v1808_v15 = vld [vmem:[#allocation8 + $0x1d98] sm:$0xff]  ;;  %v6671_v42 = vld [vmem:[#allocation8 + $0x1ba0] sm:$0xff] }
 0x205   :  { %4455 = vmatpush1.bf16.msra.mxu0 %v4454_v28  ;;  %4711 = vmatpush1.bf16.msra.mxu1 %v4710_v17  ;;  %v1773_v28 = vld [vmem:[#allocation8 + $0x1c80] sm:$0xff]  ;;  %v4726_v25 = vpack.c.bf16 %v1799_v50, %v1791_v58  ;;  %v1838_v58 = vld [vmem:[#allocation8 + $0x1e88] sm:$0xff]  ;;  %v1840_v50 = vld [vmem:[#allocation8 + $0x1e98] sm:$0xff] }
 0x206   :  { %2259 = vmatprep.mubr.f32.mxu0 %v6319_v26  ;;  %2711 = vmatprep.mubr.f32.mxu1 %v6319_v26  ;;  %v1781_v17 = vld [vmem:[#allocation8 + $0x1cc0] sm:$0xff]  ;;  %v6667_v26 = vld [vmem:[#allocation8 + $0x1bb8] sm:$0xff] }
 0x207   :  { %4457 = vmatprep.subr.bf16.mxu0 %v4456_v53  ;;  %4713 = vmatprep.subr.bf16.mxu1 %v4712_v38  ;;  %v1783_v53 = vld [vmem:[#allocation8 + $0x1cd0] sm:$0xff]  ;;  %v1790_v38 = vld [vmem:[#allocation8 + $0x1d08] sm:$0xff]  ;;  %v4466_v11 = vpack.c.bf16 %v1781_v17, %v1773_v28  ;;  %v4728_v28 = vpack.c.bf16 %v1816_v35, %v1808_v15  ;;  %v6336_v15 = vsub.s32 6, %v5903_v34 }
 0x208   :  { %2260 = vmatmul.mubr.f32.gmra.mrb[46].mxu0 %v6323_v52  ;;  %2712 = vmatmul.mubr.f32.gmra.mrb[46].mxu1 %v6323_v52  ;;  %v4722_v61 = vpack.c.bf16 %v1783_v53, %v1775_v57  ;;  %v4468_v7 = vpack.c.bf16 %v1798_v14, %v1790_v38  ;;  %v1815_v17 = vld [vmem:[#allocation8 + $0x1dd0] sm:$0xff]  ;;  %v1822_v57 = vld [vmem:[#allocation8 + $0x1e08] sm:$0xff]  ;;  %v1824_v53 = vld [vmem:[#allocation8 + $0x1e18] sm:$0xff] }
 0x209   :  { %4459 = vmatpush1.bf16.msra.mxu0 %v4458_v51  ;;  %2330 = vmatprep.mubr.f32.mxu0 %v6327_v1  ;;  %v1789_v51 = vld [vmem:[#allocation8 + $0x1d00] sm:$0xff]  ;;  %v1832_v38 = vld [vmem:[#allocation8 + $0x1e58] sm:$0xff]  ;;  %7584 = vst [vmem:[#allocation61_spill] sm:$0xff] %v6336_v15  ;;  %v6340_v34 = vrot.slane %v6181_v27, %v6336_v15  ;;  %v898_v15 = vld [vmem:[#allocation8 + $0x128] sm:$0xff] }
 0x20a   :  { %4715 = vmatpush1.bf16.msra.mxu1 %v4714_v32  ;;  %2782 = vmatprep.mubr.f32.mxu1 %v6327_v1  ;;  %v1797_v32 = vld [vmem:[#allocation8 + $0x1d40] sm:$0xff]  ;;  %v6663_v1 = vld [vmem:[#allocation8 + $0x1ba8] sm:$0xff] }
 0x20b   :  { %4461 = vmatprep.subr.bf16.mxu0 %v4460_v21  ;;  %4717 = vmatprep.subr.bf16.mxu1 %v4716_v10  ;;  %v1806_v21 = vld [vmem:[#allocation8 + $0x1d88] sm:$0xff]  ;;  %v4470_v41 = vpack.c.bf16 %v1797_v32, %v1789_v51  ;;  %v4732_v51 = vpack.c.bf16 %v1832_v38, %v1824_v53  ;;  %v1831_v32 = vld [vmem:[#allocation8 + $0x1e50] sm:$0xff] }
 0x20c   :  { %v1814_v10 = vld [vmem:[#allocation8 + $0x1dc8] sm:$0xff] }
 0x20d   :  { %4463 = vmatpush1.bf16.msra.mxu0 %v4462_v47  ;;  %v4472_v45 = vpack.c.bf16 %v1814_v10, %v1806_v21  ;;  %v1805_v47 = vld [vmem:[#allocation8 + $0x1d80] sm:$0xff]  ;;  %v1848_v21 = vld [vmem:[#allocation8 + $0x1ed8] sm:$0xff]  ;;  %v6665_v52 = vld [vmem:[#allocation8 + $0x1be8] sm:$0xff] }
 0x20e   :  { %4719 = vmatpush1.bf16.msra.mxu1 %v4718_v60  ;;  %4465 = vmatprep.subr.bf16.mxu0 %v4464_v8  ;;  %v1813_v60 = vld [vmem:[#allocation8 + $0x1dc0] sm:$0xff]  ;;  %v1807_v8 = vld [vmem:[#allocation8 + $0x1d90] sm:$0xff] }
 0x20f   :  { %4721 = vmatprep.subr.bf16.mxu1 %v4720_v56  ;;  %v1830_v56 = vld [vmem:[#allocation8 + $0x1e48] sm:$0xff]  ;;  %v4474_v14 = vpack.c.bf16 %v1813_v60, %v1805_v47  ;;  %v4730_v37 = vpack.c.bf16 %v1815_v17, %v1807_v8  ;;  %v1839_v47 = vld [vmem:[#allocation8 + $0x1e90] sm:$0xff]  ;;  %v4736_v60 = vpack.c.bf16 %v1848_v21, %v1840_v50 }
 0x210   :  { %v4476_v13 = vpack.c.bf16 %v1830_v56, %v1822_v57  ;;  %v1847_v8 = vld [vmem:[#allocation8 + $0x1ed0] sm:$0xff]  ;;  %v1862_v17 = vld [vmem:[#allocation8 + $0x1f48] sm:$0xff]  ;;  %v1856_v57 = vld [vmem:[#allocation8 + $0x1f18] sm:$0xff] }
 0x211   :  { %4467 = vmatpush1.bf16.msra.mxu0 %v4466_v11  ;;  %v1821_v11 = vld [vmem:[#allocation8 + $0x1e00] sm:$0xff]  ;;  %v1864_v56 = vld [vmem:[#allocation8 + $0x1f58] sm:$0xff]  ;;  %v4738_v38 = vpack.c.bf16 %v1847_v8, %v1839_v47  ;;  %v7585_v21 = vld [vmem:[#allocation40_spill] sm:$0xff] }
 0x212   :  { %4723 = vmatpush1.bf16.msra.mxu1 %v4722_v61  ;;  %4469 = vmatprep.subr.bf16.mxu0 %v4468_v7  ;;  %v1829_v61 = vld [vmem:[#allocation8 + $0x1e40] sm:$0xff]  ;;  %v1823_v7 = vld [vmem:[#allocation8 + $0x1e10] sm:$0xff]  ;;  %v695_v27 = vadd.f32 %v7585_v21, %v6295_v2  ;;  %v701_v21 = vadd.f32 %v6110_v23, %v6295_v2 }
 0x213   :  { %4725 = vmatprep.subr.bf16.mxu1 %v4724_v43  ;;  %v1846_v43 = vld [vmem:[#allocation8 + $0x1ec8] sm:$0xff]  ;;  %v4478_v10 = vpack.c.bf16 %v1829_v61, %v1821_v11  ;;  %v4734_v35 = vpack.c.bf16 %v1831_v32, %v1823_v7  ;;  %v1855_v11 = vld [vmem:[#allocation8 + $0x1f10] sm:$0xff]  ;;  %v4740_v61 = vpack.c.bf16 %v1864_v56, %v1856_v57  ;;  %v1877_v47 = vld [vmem:[#allocation8 + $0x1fc0] sm:$0xff] }
 0x214   :  { %v1863_v7 = vld [vmem:[#allocation8 + $0x1f50] sm:$0xff]  ;;  %v1878_v32 = vld [vmem:[#allocation8 + $0x1fc8] sm:$0xff]  ;;  %v868_v56 = vld [vmem:[#allocation8 + $0x38] sm:$0xff]  ;;  %v756_v23 = vmul.f32 0.2, %v701_v21 }
 0x215   :  { %4471 = vmatpush1.bf16.msra.mxu0 %v4470_v41  ;;  %v4480_v41 = vpack.c.bf16 %v1846_v43, %v1838_v58  ;;  %v1872_v58 = vld [vmem:[#allocation8 + $0x1f98] sm:$0xff]  ;;  %v874_v57 = vld [vmem:[#allocation8 + $0x68] sm:$0xff] }
 0x216   :  { %4727 = vmatpush1.bf16.msra.mxu1 %v4726_v25  ;;  %4473 = vmatprep.subr.bf16.mxu0 %v4472_v45  ;;  %v1837_v25 = vld [vmem:[#allocation8 + $0x1e80] sm:$0xff]  ;;  %v1880_v43 = vld [vmem:[#allocation8 + $0x1fd8] sm:$0xff] }
 0x217   :  { %4729 = vmatprep.subr.bf16.mxu1 %v4728_v28  ;;  %v1845_v45 = vld [vmem:[#allocation8 + $0x1ec0] sm:$0xff]  ;;  %v1854_v28 = vld [vmem:[#allocation8 + $0x1f08] sm:$0xff]  ;;  %v4744_v8 = vpack.c.bf16 %v1880_v43, %v1872_v58  ;;  %v867_v43 = vld [vmem:[#allocation8 + $0x30] sm:$0xff] }
 0x218   :  { %v4482_v53 = vpack.c.bf16 %v1845_v45, %v1837_v25  ;;  %v1869_v45 = vld [vmem:[#allocation8 + $0x1f80] sm:$0xff] }
 0x219   :  { %4475 = vmatpush1.bf16.msra.mxu0 %v4474_v14  ;;  %v4484_v14 = vpack.c.bf16 %v1862_v17, %v1854_v28  ;;  %v1879_v28 = vld [vmem:[#allocation8 + $0x1fd0] sm:$0xff]  ;;  %v866_v17 = vld [vmem:[#allocation8 + $0x28] sm:$0xff]  ;;  %v873_v58 = vld [vmem:[#allocation8 + $0x60] sm:$0xff] }
 0x21a   :  { %4731 = vmatpush1.bf16.msra.mxu1 %v4730_v37  ;;  %4477 = vmatprep.subr.bf16.mxu0 %v4476_v13  ;;  %v1853_v37 = vld [vmem:[#allocation8 + $0x1f00] sm:$0xff] }
 0x21b   :  { %4733 = vmatprep.subr.bf16.mxu1 %v4732_v51  ;;  %v1861_v13 = vld [vmem:[#allocation8 + $0x1f40] sm:$0xff]  ;;  %v1870_v51 = vld [vmem:[#allocation8 + $0x1f88] sm:$0xff] }
 0x21c   :  { %v4486_v50 = vpack.c.bf16 %v1861_v13, %v1853_v37  ;;  %v4488_v25 = vpack.c.bf16 %v1878_v32, %v1870_v51  ;;  %v748_v37 = vmul.f32 0.2, %v695_v27  ;;  %v4490_v13 = vpack.c.bf16 %v1877_v47, %v1869_v45  ;;  %v865_v32 = vld [vmem:[#allocation8 + $0x20] sm:$0xff] }
 0x21d   :  { %4479 = vmatpush1.bf16.msra.mxu0 %v4478_v10  ;;  %v7586_v10 = vld [vmem:[#allocation37_spill] sm:$0xff]  ;;  %v707_v47 = vadd.f32 %v6130_v46, %v6295_v2 }
 0x21e   :  { %4735 = vmatpush1.bf16.msra.mxu1 %v4734_v35  ;;  %4481 = vmatprep.subr.bf16.mxu0 %v4480_v41  ;;  %v687_v35 = vadd.f32 %v7586_v10, %v6340_v34  ;;  %v4742_v41 = vpack.c.bf16 %v1863_v7, %v1855_v11  ;;  %v875_v10 = vld [vmem:[#allocation8 + $0x70] sm:$0xff]  ;;  %v6350_v45 = vmax.f32 %v695_v27, %v748_v37 }
 0x21f   :  { %4737 = vmatprep.subr.bf16.mxu1 %v4736_v60  ;;  %v1871_v60 = vld [vmem:[#allocation8 + $0x1f90] sm:$0xff] }
 0x220   :  { %v4746_v7 = vpack.c.bf16 %v1879_v28, %v1871_v60  ;;  %7588 = vst [vmem:[#allocation40_spill] sm:$0xff] %v6350_v45  ;;  %v883_v37 = vld [vmem:[#allocation8 + $0xb0] sm:$0xff] }
 0x221   :  { %4483 = vmatpush1.bf16.msra.mxu0 %v4482_v53  ;;  %v876_v53 = vld [vmem:[#allocation8 + $0x78] sm:$0xff] }
 0x222   :  { %4739 = vmatpush1.bf16.msra.mxu1 %v4738_v38  ;;  %4485 = vmatprep.subr.bf16.mxu0 %v4484_v14  ;;  %v739_v38 = vmul.f32 0.2, %v687_v35  ;;  %v7587_v14 = vld [vmem:[#allocation39_spill] sm:$0xff]  ;;  %v5004_v51 = vpack.c.bf16 %v876_v53, %v868_v56 }
 0x223   :  { %4741 = vmatprep.subr.bf16.mxu1 %v4740_v61  ;;  %v693_v11 = vadd.f32 %v7587_v14, %v6340_v34  ;;  %v4748_v61 = vpack.c.bf16 %v874_v57, %v866_v17  ;;  %v884_v14 = vld [vmem:[#allocation8 + $0xb8] sm:$0xff]  ;;  %v4750_v17 = vpack.c.bf16 %v873_v58, %v865_v32  ;;  %v5006_v57 = vpack.c.bf16 %v875_v10, %v867_v43  ;;  %v881_v56 = vld [vmem:[#allocation8 + $0xa0] sm:$0xff] }
 0x224   :  { %v889_v53 = vld [vmem:[#allocation8 + $0xe0] sm:$0xff]  ;;  %v705_v43 = vadd.f32 %v6122_v22, %v6340_v34 }
 0x225   :  { %4487 = vmatpush1.bf16.msra.mxu0 %v4486_v50  ;;  %v882_v50 = vld [vmem:[#allocation8 + $0xa8] sm:$0xff]  ;;  %v747_v60 = vmul.f32 0.2, %v693_v11 }
 0x226   :  { %4743 = vmatpush1.bf16.msra.mxu1 %v4742_v41  ;;  %4489 = vmatprep.subr.bf16.mxu0 %v4488_v25  ;;  %v892_v41 = vld [vmem:[#allocation8 + $0xf8] sm:$0xff]  ;;  %v6354_v25 = vmax.f32 %v687_v35, %v739_v38  ;;  %v4752_v27 = vpack.c.bf16 %v890_v30, %v882_v50  ;;  %v906_v35 = vld [vmem:[#allocation8 + $0x168] sm:$0xff]  ;;  %v6359_v38 = vmax.f32 %v701_v21, %v756_v23  ;;  %v897_v23 = vld [vmem:[#allocation8 + $0x120] sm:$0xff] }
 0x227   :  { %4745 = vmatprep.subr.bf16.mxu1 %v4744_v8  ;;  %v7590_v8 = vld [vmem:[#allocation41_spill] sm:$0xff]  ;;  %v5008_v46 = vpack.c.bf16 %v892_v41, %v884_v14  ;;  %v900_v30 = vld [vmem:[#allocation8 + $0x138] sm:$0xff]  ;;  %v6365_v32 = vmax.f32 %v693_v11, %v747_v60  ;;  %v4754_v21 = vpack.c.bf16 %v889_v53, %v881_v56  ;;  %v4756_v50 = vpack.c.bf16 %v906_v35, %v898_v15  ;;  %v905_v14 = vld [vmem:[#allocation8 + $0x160] sm:$0xff] }
 0x228   :  { %7589 = vst [vmem:[#allocation37_spill] sm:$0xff] %v6354_v25  ;;  %v699_v28 = vadd.f32 %v7590_v8, %v6340_v34  ;;  %7591 = vst [vmem:[#allocation39_spill] sm:$0xff] %v6359_v38  ;;  %v899_v41 = vld [vmem:[#allocation8 + $0x130] sm:$0xff]  ;;  %v914_v60 = vld [vmem:[#allocation8 + $0x1a8] sm:$0xff]  ;;  %v719_v15 = vadd.f32 %v6165_v39, %v6295_v2  ;;  %v763_v56 = vmul.f32 0.2, %v705_v43  ;;  %v711_v53 = vadd.f32 %v6138_v31, %v6340_v34 }
 0x229   :  { %4491 = vmatpush1.bf16.msra.mxu0 %v4490_v13  ;;  %v891_v13 = vld [vmem:[#allocation8 + $0xf0] sm:$0xff]  ;;  %7592 = vst [vmem:[#allocation41_spill] sm:$0xff] %v6365_v32  ;;  %v922_v8 = vld [vmem:[#allocation8 + $0x1e8] sm:$0xff]  ;;  %v921_v35 = vld [vmem:[#allocation8 + $0x1e0] sm:$0xff] }
 0x22a   :  { %4747 = vmatpush1.bf16.msra.mxu1 %v4746_v7  ;;  %4749 = vmatprep.subr.bf16.mxu0 %v4748_v61  ;;  %v764_v7 = vmul.f32 0.2, %v707_v47  ;;  %v713_v61 = vadd.f32 %v6146_v36, %v6295_v2  ;;  %v755_v58 = vmul.f32 0.2, %v699_v28  ;;  %v5010_v10 = vpack.c.bf16 %v891_v13, %v883_v37  ;;  %v907_v11 = vld [vmem:[#allocation8 + $0x170] sm:$0xff]  ;;  %v913_v13 = vld [vmem:[#allocation8 + $0x1a0] sm:$0xff] }
 0x22b   :  { %5005 = vmatprep.subr.bf16.mxu1 %v5004_v51  ;;  %v908_v51 = vld [vmem:[#allocation8 + $0x178] sm:$0xff]  ;;  %v5014_v37 = vpack.c.bf16 %v907_v11, %v899_v41  ;;  %v780_v31 = vmul.f32 0.2, %v719_v15  ;;  %v7597_v41 = vld [vmem:[#allocation49_spill] sm:$0xff] }
 0x22c   :  { %2331 = vmatmul.mubr.f32.vlgmr.msra.gmra.mrb[32].mxu0 %v6354_v25  ;;  %v5012_v36 = vpack.c.bf16 %v908_v51, %v900_v30  ;;  %v772_v22 = vmul.f32 0.2, %v713_v61  ;;  %v930_v30 = vld [vmem:[#allocation8 + $0x228] sm:$0xff] }
 0x22d   :  { %2783 = vmatmul.mubr.f32.vlgmr.msra.gmra.mrb[32].mxu1 %v6354_v25  ;;  %2336 = vmatprep.mubr.f32.mxu0 %v6350_v45  ;;  %v6371_v25 = vmax.f32 %v707_v47, %v764_v7  ;;  %v4758_v47 = vpack.c.bf16 %v905_v14, %v897_v23  ;;  %v915_v7 = vld [vmem:[#allocation8 + $0x1b0] sm:$0xff]  ;;  %v938_v51 = vld [vmem:[#allocation8 + $0x268] sm:$0xff]  ;;  %v6389_v23 = vmax.f32 %v705_v43, %v763_v56  ;;  %v771_v14 = vmul.f32 0.2, %v711_v53 }
 0x22e   :  { %2788 = vmatprep.mubr.f32.mxu1 %v6350_v45  ;;  %4751 = vmatpush1.bf16.msra.mxu0 %v4750_v17  ;;  %v916_v17 = vld [vmem:[#allocation8 + $0x1b8] sm:$0xff]  ;;  %v939_v43 = vld [vmem:[#allocation8 + $0x270] sm:$0xff]  ;;  %v954_v56 = vld [vmem:[#allocation8 + $0x2e8] sm:$0xff] }
 0x22f   :  { %5007 = vmatpush1.bf16.msra.mxu1 %v5006_v57  ;;  %4753 = vmatprep.subr.bf16.mxu0 %v4752_v27  ;;  %7593 = vst [vmem:[#allocation62_spill] sm:$0xff] %v6371_v25  ;;  %v924_v57 = vld [vmem:[#allocation8 + $0x1f8] sm:$0xff]  ;;  %v6377_v27 = vmax.f32 %v699_v28, %v755_v58  ;;  %v923_v28 = vld [vmem:[#allocation8 + $0x1f0] sm:$0xff]  ;;  %v6383_v58 = vmax.f32 %v713_v61, %v772_v22  ;;  %7596 = vst [vmem:[#allocation65_spill] sm:$0xff] %v6389_v23 }
 0x230   :  { %2337 = vmatmul.mubr.f32.gmra.mrb[34].mxu0 %v6365_v32  ;;  %5009 = vmatprep.subr.bf16.mxu1 %v5008_v46  ;;  %v4760_v46 = vpack.c.bf16 %v922_v8, %v914_v60  ;;  %v5016_v39 = vpack.c.bf16 %v924_v57, %v916_v17  ;;  %v4762_v61 = vpack.c.bf16 %v921_v35, %v913_v13  ;;  %v929_v8 = vld [vmem:[#allocation8 + $0x220] sm:$0xff]  ;;  %v931_v17 = vld [vmem:[#allocation8 + $0x230] sm:$0xff]  ;;  %v946_v57 = vld [vmem:[#allocation8 + $0x2a8] sm:$0xff] }
 0x231   :  { %2789 = vmatmul.mubr.f32.gmra.mrb[34].mxu1 %v6365_v32  ;;  %2342 = vmatprep.mubr.f32.mxu0 %v6359_v38  ;;  %7594 = vst [vmem:[#allocation63_spill] sm:$0xff] %v6377_v27  ;;  %7595 = vst [vmem:[#allocation64_spill] sm:$0xff] %v6383_v58  ;;  %v5018_v11 = vpack.c.bf16 %v923_v28, %v915_v7  ;;  %v4764_v60 = vpack.c.bf16 %v938_v51, %v930_v30  ;;  %v937_v22 = vld [vmem:[#allocation8 + $0x260] sm:$0xff]  ;;  %v956_v13 = vld [vmem:[#allocation8 + $0x2f8] sm:$0xff] }
 0x232   :  { %2794 = vmatprep.mubr.f32.mxu1 %v6359_v38  ;;  %4755 = vmatpush1.bf16.msra.mxu0 %v4754_v21  ;;  %v725_v21 = vadd.f32 %v6187_v40, %v6295_v2  ;;  %v6401_v35 = vmax.f32 %v711_v53, %v771_v14  ;;  %v5022_v28 = vpack.c.bf16 %v939_v43, %v931_v17  ;;  %v945_v51 = vld [vmem:[#allocation8 + $0x2a0] sm:$0xff]  ;;  %v962_v53 = vld [vmem:[#allocation8 + $0x328] sm:$0xff]  ;;  %v6649_v38 = vld [vmem:[#allocation8 + $0x1b70] sm:$0xff] }
 0x233   :  { %5011 = vmatpush1.bf16.msra.mxu1 %v5010_v10  ;;  %4757 = vmatprep.subr.bf16.mxu0 %v4756_v50  ;;  %v932_v10 = vld [vmem:[#allocation8 + $0x238] sm:$0xff]  ;;  %v4768_v30 = vpack.c.bf16 %v954_v56, %v946_v57  ;;  %v969_v43 = vld [vmem:[#allocation8 + $0x360] sm:$0xff]  ;;  %v963_v57 = vld [vmem:[#allocation8 + $0x330] sm:$0xff] }
 0x234   :  { %2343 = vmatmul.mubr.f32.gmra.mrb[36].mxu0 %v6377_v27  ;;  %5013 = vmatprep.subr.bf16.mxu1 %v5012_v36  ;;  %v940_v50 = vld [vmem:[#allocation8 + $0x278] sm:$0xff]  ;;  %v717_v36 = vadd.f32 %v7597_v41, %v6340_v34  ;;  %7599 = vst [vmem:[#allocation66_spill] sm:$0xff] %v6401_v35  ;;  %v971_v56 = vld [vmem:[#allocation8 + $0x370] sm:$0xff]  ;;  %v7658_v45 = vld [vmem:[#allocation27_spill] sm:$0xff] }
 0x235   :  { %2795 = vmatmul.mubr.f32.gmra.mrb[36].mxu1 %v6377_v27  ;;  %2348 = vmatprep.mubr.f32.mxu0 %v6371_v25  ;;  %v5020_v40 = vpack.c.bf16 %v940_v50, %v932_v10  ;;  %v6395_v27 = vmax.f32 %v719_v15, %v780_v31  ;;  %v4766_v15 = vpack.c.bf16 %v937_v22, %v929_v8  ;;  %v953_v31 = vld [vmem:[#allocation8 + $0x2e0] sm:$0xff]  ;;  %v947_v10 = vld [vmem:[#allocation8 + $0x2b0] sm:$0xff]  ;;  %v970_v50 = vld [vmem:[#allocation8 + $0x368] sm:$0xff] }
 0x236   :  { %2800 = vmatprep.mubr.f32.mxu1 %v6371_v25  ;;  %4759 = vmatpush1.bf16.msra.mxu0 %v4758_v47  ;;  %v788_v47 = vmul.f32 0.2, %v725_v21  ;;  %v779_v7 = vmul.f32 0.2, %v717_v36  ;;  %v964_v41 = vld [vmem:[#allocation8 + $0x338] sm:$0xff]  ;;  %v729_v8 = vadd.f32 %v6195_v54, %v6340_v34  ;;  %v4770_v22 = vpack.c.bf16 %v953_v31, %v945_v51  ;;  %v977_v31 = vld [vmem:[#allocation8 + $0x3a0] sm:$0xff] }
 0x237   :  { %5015 = vmatpush1.bf16.msra.mxu1 %v5014_v37  ;;  %4761 = vmatprep.subr.bf16.mxu0 %v4760_v46  ;;  %7598 = vst [vmem:[#allocation49_spill] sm:$0xff] %v6395_v27  ;;  %v731_v37 = vadd.f32 %v6203_v0, %v6295_v2  ;;  %v948_v46 = vld [vmem:[#allocation8 + $0x2b8] sm:$0xff]  ;;  %v955_v2 = vld [vmem:[#allocation8 + $0x2f0] sm:$0xff]  ;;  %v4772_v17 = vpack.c.bf16 %v970_v50, %v962_v53  ;;  %v994_v53 = vld [vmem:[#allocation8 + $0x428] sm:$0xff] }
 0x238   :  { %2349 = vmatmul.mubr.f32.gmra.mrb[38].mxu0 %v6389_v23  ;;  %5017 = vmatprep.subr.bf16.mxu1 %v5016_v39  ;;  %v723_v39 = vadd.f32 %v6173_v44, %v6340_v34  ;;  %v5024_v0 = vpack.c.bf16 %v956_v13, %v948_v46  ;;  %v6407_v14 = vmax.f32 %v725_v21, %v788_v47  ;;  %v978_v47 = vld [vmem:[#allocation8 + $0x3a8] sm:$0xff]  ;;  %v980_v54 = vld [vmem:[#allocation8 + $0x3b8] sm:$0xff]  ;;  %v6647_v25 = vld [vmem:[#allocation8 + $0x1b30] sm:$0xff] }
 0x239   :  { %2801 = vmatmul.mubr.f32.gmra.mrb[38].mxu1 %v6389_v23  ;;  %2354 = vmatprep.mubr.f32.mxu0 %v6383_v58  ;;  %v796_v44 = vmul.f32 0.2, %v731_v37  ;;  %v5026_v21 = vpack.c.bf16 %v955_v2, %v947_v10  ;;  %v986_v46 = vld [vmem:[#allocation8 + $0x3e8] sm:$0xff]  ;;  %v988_v34 = vld [vmem:[#allocation8 + $0x3f8] sm:$0xff]  ;;  %v979_v10 = vld [vmem:[#allocation8 + $0x3b0] sm:$0xff] }
 0x23a   :  { %2806 = vmatprep.mubr.f32.mxu1 %v6383_v58  ;;  %4763 = vmatpush1.bf16.msra.mxu0 %v4762_v61  ;;  %7600 = vst [vmem:[#allocation67_spill] sm:$0xff] %v6407_v14  ;;  %v972_v61 = vld [vmem:[#allocation8 + $0x378] sm:$0xff]  ;;  %v4776_v51 = vpack.c.bf16 %v986_v46, %v978_v47  ;;  %v987_v2 = vld [vmem:[#allocation8 + $0x3f0] sm:$0xff]  ;;  %v6645_v23 = vld [vmem:[#allocation8 + $0x1b60] sm:$0xff] }
 0x23b   :  { %5019 = vmatpush1.bf16.msra.mxu1 %v5018_v11  ;;  %4765 = vmatprep.subr.bf16.mxu0 %v4764_v60  ;;  %v6411_v11 = vmax.f32 %v717_v36, %v779_v7  ;;  %v787_v60 = vmul.f32 0.2, %v723_v39  ;;  %v5028_v36 = vpack.c.bf16 %v972_v61, %v964_v41  ;;  %v6417_v13 = vmax.f32 %v731_v37, %v796_v44  ;;  %v985_v37 = vld [vmem:[#allocation8 + $0x3e0] sm:$0xff]  ;;  %v996_v50 = vld [vmem:[#allocation8 + $0x438] sm:$0xff] }
 0x23c   :  { %2355 = vmatmul.mubr.f32.gmra.mrb[40].mxu0 %v6401_v35  ;;  %5021 = vmatprep.subr.bf16.mxu1 %v5020_v40  ;;  %v961_v40 = vld [vmem:[#allocation8 + $0x320] sm:$0xff]  ;;  %v1004_v44 = vld [vmem:[#allocation8 + $0x478] sm:$0xff]  ;;  %v4778_v61 = vpack.c.bf16 %v985_v37, %v977_v31  ;;  %v1019_v37 = vld [vmem:[#allocation8 + $0x4f0] sm:$0xff] }
 0x23d   :  { %2807 = vmatmul.mubr.f32.gmra.mrb[40].mxu1 %v6401_v35  ;;  %2360 = vmatprep.mubr.f32.mxu0 %v6395_v27  ;;  %7601 = vst [vmem:[#allocation68_spill] sm:$0xff] %v6411_v11  ;;  %7602 = vst [vmem:[#allocation69_spill] sm:$0xff] %v6417_v13  ;;  %v6421_v7 = vmax.f32 %v723_v39, %v787_v60  ;;  %v1002_v39 = vld [vmem:[#allocation8 + $0x468] sm:$0xff]  ;;  %v5034_v60 = vpack.c.bf16 %v987_v2, %v979_v10  ;;  %v1012_v47 = vld [vmem:[#allocation8 + $0x4b8] sm:$0xff] }
 0x23e   :  { %2812 = vmatprep.mubr.f32.mxu1 %v6395_v27  ;;  %4767 = vmatpush1.bf16.msra.mxu0 %v4766_v15  ;;  %v795_v15 = vmul.f32 0.2, %v729_v8  ;;  %v1020_v46 = vld [vmem:[#allocation8 + $0x4f8] sm:$0xff]  ;;  %v1026_v10 = vld [vmem:[#allocation8 + $0x528] sm:$0xff]  ;;  %v6618_v27 = vld [vmem:[#allocation8 + $0x1af0] sm:$0xff] }
 0x23f   :  { %5023 = vmatpush1.bf16.msra.mxu1 %v5022_v28  ;;  %4769 = vmatprep.subr.bf16.mxu0 %v4768_v30  ;;  %7603 = vst [vmem:[#allocation70_spill] sm:$0xff] %v6421_v7  ;;  %v4774_v28 = vpack.c.bf16 %v969_v43, %v961_v40  ;;  %v5030_v30 = vpack.c.bf16 %v971_v56, %v963_v57  ;;  %v995_v40 = vld [vmem:[#allocation8 + $0x430] sm:$0xff]  ;;  %v1018_v56 = vld [vmem:[#allocation8 + $0x4e8] sm:$0xff]  ;;  %v1028_v2 = vld [vmem:[#allocation8 + $0x538] sm:$0xff] }
 0x240   :  { %2361 = vmatmul.mubr.f32.gmra.mrb[42].mxu0 %v6411_v11  ;;  %5025 = vmatprep.subr.bf16.mxu1 %v5024_v0  ;;  %v5032_v0 = vpack.c.bf16 %v988_v34, %v980_v54  ;;  %v6427_v41 = vmax.f32 %v729_v8, %v795_v15  ;;  %v5036_v43 = vpack.c.bf16 %v1004_v44, %v996_v50  ;;  %v1003_v57 = vld [vmem:[#allocation8 + $0x470] sm:$0xff]  ;;  %v7605_v8 = vld [vmem:[#allocation19_spill] sm:$0xff]  ;;  %v6630_v35 = vld [vmem:[#allocation8 + $0x1b38] sm:$0xff] }
 0x241   :  { %2813 = vmatmul.mubr.f32.gmra.mrb[42].mxu1 %v6411_v11  ;;  %2366 = vmatprep.mubr.f32.mxu0 %v6407_v14  ;;  %v5038_v34 = vpack.c.bf16 %v1003_v57, %v995_v40  ;;  %v5040_v31 = vpack.c.bf16 %v1020_v46, %v1012_v47  ;;  %v1042_v40 = vld [vmem:[#allocation8 + $0x5a8] sm:$0xff]  ;;  %v1044_v57 = vld [vmem:[#allocation8 + $0x5b8] sm:$0xff]  ;;  %v1041_v46 = vld [vmem:[#allocation8 + $0x5a0] sm:$0xff] }
 0x242   :  { %2818 = vmatprep.mubr.f32.mxu1 %v6407_v14  ;;  %4771 = vmatpush1.bf16.msra.mxu0 %v4770_v22  ;;  %7604 = vst [vmem:[#allocation71_spill] sm:$0xff] %v6427_v41  ;;  %v4780_v22 = vpack.c.bf16 %v1002_v39, %v994_v53  ;;  %v1036_v53 = vld [vmem:[#allocation8 + $0x578] sm:$0xff]  ;;  %v6589_v11 = vld [vmem:[#allocation8 + $0x1ae8] sm:$0xff] }
 0x243   :  { %5027 = vmatpush1.bf16.msra.mxu1 %v5026_v21  ;;  %4773 = vmatprep.subr.bf16.mxu0 %v4772_v17  ;;  %v993_v21 = vld [vmem:[#allocation8 + $0x420] sm:$0xff]  ;;  %v6632_v58 = vld [vmem:[#allocation8 + $0x1b78] sm:$0xff] }
 0x244   :  { %2367 = vmatmul.mubr.f32.gmra.mrb[44].mxu0 %v6421_v7  ;;  %5029 = vmatprep.subr.bf16.mxu1 %v5028_v36  ;;  %v1001_v17 = vld [vmem:[#allocation8 + $0x460] sm:$0xff]  ;;  %v1010_v36 = vld [vmem:[#allocation8 + $0x4a8] sm:$0xff] }
 0x245   :  { %2819 = vmatmul.mubr.f32.gmra.mrb[44].mxu1 %v6421_v7  ;;  %2372 = vmatprep.mubr.f32.mxu0 %v6417_v13  ;;  %v4782_v54 = vpack.c.bf16 %v1001_v17, %v993_v21  ;;  %v4784_v15 = vpack.c.bf16 %v1018_v56, %v1010_v36  ;;  %v5044_v21 = vpack.c.bf16 %v1036_v53, %v1028_v2  ;;  %v1035_v17 = vld [vmem:[#allocation8 + $0x570] sm:$0xff]  ;;  %v1052_v36 = vld [vmem:[#allocation8 + $0x5f8] sm:$0xff]  ;;  %v1057_v53 = vld [vmem:[#allocation8 + $0x620] sm:$0xff] }
 0x246   :  { %2824 = vmatprep.mubr.f32.mxu1 %v6417_v13  ;;  %4775 = vmatpush1.bf16.msra.mxu0 %v4774_v28  ;;  %v1009_v28 = vld [vmem:[#allocation8 + $0x4a0] sm:$0xff]  ;;  %v6572_v13 = vld [vmem:[#allocation8 + $0x1a30] sm:$0xff] }
 0x247   :  { %5031 = vmatpush1.bf16.msra.mxu1 %v5030_v30  ;;  %4777 = vmatprep.subr.bf16.mxu0 %v4776_v51  ;;  %v1017_v30 = vld [vmem:[#allocation8 + $0x4e0] sm:$0xff]  ;;  %v1011_v51 = vld [vmem:[#allocation8 + $0x4b0] sm:$0xff]  ;;  %7631 = vst [vmem:[#allocation19_spill] sm:$0xff] %v6572_v13 }
 0x248   :  { %2373 = vmatmul.mubr.f32.gmra.mrb[46].mxu0 %v6427_v41  ;;  %5033 = vmatprep.subr.bf16.mxu1 %v5032_v0  ;;  %v1034_v0 = vld [vmem:[#allocation8 + $0x568] sm:$0xff]  ;;  %v4786_v39 = vpack.c.bf16 %v1017_v30, %v1009_v28  ;;  %v5042_v50 = vpack.c.bf16 %v1019_v37, %v1011_v51  ;;  %v1051_v28 = vld [vmem:[#allocation8 + $0x5f0] sm:$0xff]  ;;  %v1068_v37 = vld [vmem:[#allocation8 + $0x678] sm:$0xff] }
 0x249   :  { %2825 = vmatmul.mubr.f32.gmra.mrb[46].mxu1 %v6427_v41  ;;  %2895 = vmatprep.mubr.f32.mxu0 %v7605_v8  ;;  %v4788_v44 = vpack.c.bf16 %v1034_v0, %v1026_v10  ;;  %v1058_v30 = vld [vmem:[#allocation8 + $0x628] sm:$0xff]  ;;  %v6562_v41 = vld [vmem:[#allocation8 + $0x1a78] sm:$0xff]  ;;  %v6574_v7 = vld [vmem:[#allocation8 + $0x1a70] sm:$0xff] }
 0x24a   :  { %4779 = vmatpush1.bf16.msra.mxu0 %v4778_v61  ;;  %3347 = vmatprep.mubr.f32.mxu1 %v7605_v8  ;;  %v1025_v61 = vld [vmem:[#allocation8 + $0x520] sm:$0xff]  ;;  %v1066_v51 = vld [vmem:[#allocation8 + $0x668] sm:$0xff]  ;;  %v6686_v13 = vld [vmem:[#allocation8 + $0x1bb0] sm:$0xff] }
 0x24b   :  { %5035 = vmatpush1.bf16.msra.mxu1 %v5034_v60  ;;  %4781 = vmatprep.subr.bf16.mxu0 %v4780_v22  ;;  %v1033_v60 = vld [vmem:[#allocation8 + $0x560] sm:$0xff]  ;;  %v1027_v22 = vld [vmem:[#allocation8 + $0x530] sm:$0xff]  ;;  %v4796_v2 = vpack.c.bf16 %v1066_v51, %v1058_v30 }
 0x24c   :  { %5037 = vmatprep.subr.bf16.mxu1 %v5036_v43  ;;  %v1050_v43 = vld [vmem:[#allocation8 + $0x5e8] sm:$0xff]  ;;  %v4790_v56 = vpack.c.bf16 %v1033_v60, %v1025_v61  ;;  %v5046_v8 = vpack.c.bf16 %v1035_v17, %v1027_v22  ;;  %v1067_v61 = vld [vmem:[#allocation8 + $0x670] sm:$0xff]  ;;  %v1084_v17 = vld [vmem:[#allocation8 + $0x6f8] sm:$0xff] }
 0x24d   :  { %v4792_v47 = vpack.c.bf16 %v1050_v43, %v1042_v40  ;;  %v1074_v60 = vld [vmem:[#allocation8 + $0x6a8] sm:$0xff] }
 0x24e   :  { %4783 = vmatpush1.bf16.msra.mxu0 %v4782_v54  ;;  %v1049_v54 = vld [vmem:[#allocation8 + $0x5e0] sm:$0xff]  ;;  %v1082_v22 = vld [vmem:[#allocation8 + $0x6e8] sm:$0xff] }
 0x24f   :  { %5039 = vmatpush1.bf16.msra.mxu1 %v5038_v34  ;;  %4785 = vmatprep.subr.bf16.mxu0 %v4784_v15  ;;  %v1043_v34 = vld [vmem:[#allocation8 + $0x5b0] sm:$0xff]  ;;  %v5048_v15 = vpack.c.bf16 %v1052_v36, %v1044_v57  ;;  %v4794_v10 = vpack.c.bf16 %v1049_v54, %v1041_v46  ;;  %v4800_v57 = vpack.c.bf16 %v1082_v22, %v1074_v60  ;;  %v1073_v36 = vld [vmem:[#allocation8 + $0x6a0] sm:$0xff]  ;;  %v1090_v54 = vld [vmem:[#allocation8 + $0x728] sm:$0xff] }
 0x250   :  { %5041 = vmatprep.subr.bf16.mxu1 %v5040_v31  ;;  %v1060_v31 = vld [vmem:[#allocation8 + $0x638] sm:$0xff]  ;;  %v5050_v0 = vpack.c.bf16 %v1051_v28, %v1043_v34  ;;  %v1083_v46 = vld [vmem:[#allocation8 + $0x6f0] sm:$0xff]  ;;  %v1098_v34 = vld [vmem:[#allocation8 + $0x768] sm:$0xff] }
 0x251   :  { %v1100_v28 = vld [vmem:[#allocation8 + $0x778] sm:$0xff] }
 0x252   :  { %4787 = vmatpush1.bf16.msra.mxu0 %v4786_v39  ;;  %v1065_v39 = vld [vmem:[#allocation8 + $0x660] sm:$0xff] }
 0x253   :  { %5043 = vmatpush1.bf16.msra.mxu1 %v5042_v50  ;;  %4789 = vmatprep.subr.bf16.mxu0 %v4788_v44  ;;  %v1059_v50 = vld [vmem:[#allocation8 + $0x630] sm:$0xff]  ;;  %v5052_v44 = vpack.c.bf16 %v1068_v37, %v1060_v31  ;;  %v4798_v40 = vpack.c.bf16 %v1065_v39, %v1057_v53  ;;  %v4804_v31 = vpack.c.bf16 %v1098_v34, %v1090_v54  ;;  %v1089_v37 = vld [vmem:[#allocation8 + $0x720] sm:$0xff]  ;;  %v1106_v39 = vld [vmem:[#allocation8 + $0x7a8] sm:$0xff] }
 0x254   :  { %5045 = vmatprep.subr.bf16.mxu1 %v5044_v21  ;;  %v1076_v21 = vld [vmem:[#allocation8 + $0x6b8] sm:$0xff]  ;;  %v5054_v43 = vpack.c.bf16 %v1067_v61, %v1059_v50  ;;  %v1099_v53 = vld [vmem:[#allocation8 + $0x770] sm:$0xff]  ;;  %v1114_v50 = vld [vmem:[#allocation8 + $0x7e8] sm:$0xff] }
 0x255   :  { %v1116_v61 = vld [vmem:[#allocation8 + $0x7f8] sm:$0xff] }
 0x256   :  { %4791 = vmatpush1.bf16.msra.mxu0 %v4790_v56  ;;  %v1081_v56 = vld [vmem:[#allocation8 + $0x6e0] sm:$0xff] }
 0x257   :  { %5047 = vmatpush1.bf16.msra.mxu1 %v5046_v8  ;;  %4793 = vmatprep.subr.bf16.mxu0 %v4792_v47  ;;  %v1075_v8 = vld [vmem:[#allocation8 + $0x6b0] sm:$0xff]  ;;  %v5056_v47 = vpack.c.bf16 %v1084_v17, %v1076_v21  ;;  %v4802_v30 = vpack.c.bf16 %v1081_v56, %v1073_v36  ;;  %v4808_v21 = vpack.c.bf16 %v1114_v50, %v1106_v39  ;;  %v1105_v17 = vld [vmem:[#allocation8 + $0x7a0] sm:$0xff]  ;;  %v1122_v56 = vld [vmem:[#allocation8 + $0x828] sm:$0xff] }
 0x258   :  { %5049 = vmatprep.subr.bf16.mxu1 %v5048_v15  ;;  %v1092_v15 = vld [vmem:[#allocation8 + $0x738] sm:$0xff]  ;;  %v5058_v51 = vpack.c.bf16 %v1083_v46, %v1075_v8  ;;  %v1115_v36 = vld [vmem:[#allocation8 + $0x7f0] sm:$0xff]  ;;  %v1130_v8 = vld [vmem:[#allocation8 + $0x868] sm:$0xff] }
 0x259   :  { %v1132_v46 = vld [vmem:[#allocation8 + $0x878] sm:$0xff] }
 0x25a   :  { %4795 = vmatpush1.bf16.msra.mxu0 %v4794_v10  ;;  %v1097_v10 = vld [vmem:[#allocation8 + $0x760] sm:$0xff] }
 0x25b   :  { %5051 = vmatpush1.bf16.msra.mxu1 %v5050_v0  ;;  %4797 = vmatprep.subr.bf16.mxu0 %v4796_v2  ;;  %v1091_v0 = vld [vmem:[#allocation8 + $0x730] sm:$0xff]  ;;  %v5060_v2 = vpack.c.bf16 %v1100_v28, %v1092_v15  ;;  %v4806_v60 = vpack.c.bf16 %v1097_v10, %v1089_v37  ;;  %v4812_v15 = vpack.c.bf16 %v1130_v8, %v1122_v56  ;;  %v1138_v10 = vld [vmem:[#allocation8 + $0x8a8] sm:$0xff]  ;;  %v1156_v56 = vld [vmem:[#allocation8 + $0x938] sm:$0xff] }
 0x25c   :  { %5053 = vmatprep.subr.bf16.mxu1 %v5052_v44  ;;  %v1108_v44 = vld [vmem:[#allocation8 + $0x7b8] sm:$0xff]  ;;  %v5062_v22 = vpack.c.bf16 %v1099_v53, %v1091_v0  ;;  %v1131_v37 = vld [vmem:[#allocation8 + $0x870] sm:$0xff]  ;;  %v1146_v0 = vld [vmem:[#allocation8 + $0x8e8] sm:$0xff] }
 0x25d   :  { %v1148_v53 = vld [vmem:[#allocation8 + $0x8f8] sm:$0xff] }
 0x25e   :  { %4799 = vmatpush1.bf16.msra.mxu0 %v4798_v40  ;;  %v1113_v40 = vld [vmem:[#allocation8 + $0x7e0] sm:$0xff]  ;;  %v1164_v8 = vld [vmem:[#allocation8 + $0x978] sm:$0xff] }
 0x25f   :  { %5055 = vmatpush1.bf16.msra.mxu1 %v5054_v43  ;;  %4801 = vmatprep.subr.bf16.mxu0 %v4800_v57  ;;  %v1107_v43 = vld [vmem:[#allocation8 + $0x7b0] sm:$0xff]  ;;  %v5064_v57 = vpack.c.bf16 %v1116_v61, %v1108_v44  ;;  %v4810_v54 = vpack.c.bf16 %v1113_v40, %v1105_v17  ;;  %v4816_v44 = vpack.c.bf16 %v1146_v0, %v1138_v10  ;;  %v1137_v61 = vld [vmem:[#allocation8 + $0x8a0] sm:$0xff]  ;;  %v1178_v10 = vld [vmem:[#allocation8 + $0x9e8] sm:$0xff] }
 0x260   :  { %5057 = vmatprep.subr.bf16.mxu1 %v5056_v47  ;;  %v1124_v47 = vld [vmem:[#allocation8 + $0x838] sm:$0xff]  ;;  %v5066_v34 = vpack.c.bf16 %v1115_v36, %v1107_v43  ;;  %v1147_v40 = vld [vmem:[#allocation8 + $0x8f0] sm:$0xff]  ;;  %v1154_v43 = vld [vmem:[#allocation8 + $0x928] sm:$0xff] }
 0x261   :  { %v5068_v28 = vpack.c.bf16 %v1132_v46, %v1124_v47  ;;  %v7607_v36 = vld [vmem:[#allocation22_spill] sm:$0xff]  ;;  %v7609_v0 = vld [vmem:[#allocation24_spill] sm:$0xff] }
 0x262   :  { %4803 = vmatpush1.bf16.msra.mxu0 %v4802_v30  ;;  %v1121_v30 = vld [vmem:[#allocation8 + $0x820] sm:$0xff]  ;;  %7635 = vst [vmem:[#allocation24_spill] sm:$0xff] %v6589_v11  ;;  %v6752_v11 = vld [vmem:[#allocation8 + $0x1d28] sm:$0xff] }
 0x263   :  { %5059 = vmatpush1.bf16.msra.mxu1 %v5058_v51  ;;  %4805 = vmatprep.subr.bf16.mxu0 %v4804_v31  ;;  %v1129_v51 = vld [vmem:[#allocation8 + $0x860] sm:$0xff]  ;;  %v1123_v31 = vld [vmem:[#allocation8 + $0x830] sm:$0xff] }
 0x264   :  { %5061 = vmatprep.subr.bf16.mxu1 %v5060_v2  ;;  %v1140_v2 = vld [vmem:[#allocation8 + $0x8b8] sm:$0xff]  ;;  %v4814_v39 = vpack.c.bf16 %v1129_v51, %v1121_v30  ;;  %v5070_v50 = vpack.c.bf16 %v1131_v37, %v1123_v31  ;;  %v7608_v30 = vld [vmem:[#allocation21_spill] sm:$0xff]  ;;  %v5076_v51 = vpack.c.bf16 %v1164_v8, %v1156_v56  ;;  %v1170_v37 = vld [vmem:[#allocation8 + $0x9a8] sm:$0xff] }
 0x265   :  { %v5072_v17 = vpack.c.bf16 %v1148_v53, %v1140_v2  ;;  %v1163_v31 = vld [vmem:[#allocation8 + $0x970] sm:$0xff]  ;;  %v1172_v2 = vld [vmem:[#allocation8 + $0x9b8] sm:$0xff] }
 0x266   :  { %4807 = vmatpush1.bf16.msra.mxu0 %v4806_v60  ;;  %v1145_v60 = vld [vmem:[#allocation8 + $0x8e0] sm:$0xff]  ;;  %v1180_v53 = vld [vmem:[#allocation8 + $0x9f8] sm:$0xff] }
 0x267   :  { %5063 = vmatpush1.bf16.msra.mxu1 %v5062_v22  ;;  %4809 = vmatprep.subr.bf16.mxu0 %v4808_v21  ;;  %v1139_v22 = vld [vmem:[#allocation8 + $0x8b0] sm:$0xff]  ;;  %v7606_v21 = vld [vmem:[#allocation20_spill] sm:$0xff]  ;;  %v4818_v47 = vpack.c.bf16 %v1145_v60, %v1137_v61  ;;  %v1169_v61 = vld [vmem:[#allocation8 + $0x9a0] sm:$0xff] }
 0x268   :  { %5065 = vmatprep.subr.bf16.mxu1 %v5064_v57  ;;  %v1162_v57 = vld [vmem:[#allocation8 + $0x968] sm:$0xff]  ;;  %v5074_v46 = vpack.c.bf16 %v1147_v40, %v1139_v22  ;;  %v1177_v60 = vld [vmem:[#allocation8 + $0x9e0] sm:$0xff]  ;;  %v1171_v22 = vld [vmem:[#allocation8 + $0x9b0] sm:$0xff]  ;;  %7632 = vst [vmem:[#allocation20_spill] sm:$0xff] %v6574_v7 }
 0x269   :  { %v1179_v40 = vld [vmem:[#allocation8 + $0x9f0] sm:$0xff]  ;;  %v1188_v56 = vld [vmem:[#allocation8 + $0xa38] sm:$0xff] }
 0x26a   :  { %4811 = vmatpush1.bf16.msra.mxu0 %v4810_v54  ;;  %v4820_v54 = vpack.c.bf16 %v1162_v57, %v1154_v43  ;;  %v1186_v43 = vld [vmem:[#allocation8 + $0xa28] sm:$0xff]  ;;  %v1196_v8 = vld [vmem:[#allocation8 + $0xa78] sm:$0xff]  ;;  %v6688_v7 = vld [vmem:[#allocation8 + $0x1bf0] sm:$0xff] }
 0x26b   :  { %5067 = vmatpush1.bf16.msra.mxu1 %v5066_v34  ;;  %4813 = vmatprep.subr.bf16.mxu0 %v4812_v15  ;;  %v1153_v34 = vld [vmem:[#allocation8 + $0x920] sm:$0xff]  ;;  %v1194_v57 = vld [vmem:[#allocation8 + $0xa68] sm:$0xff] }
 0x26c   :  { %5069 = vmatprep.subr.bf16.mxu1 %v5068_v28  ;;  %v1161_v15 = vld [vmem:[#allocation8 + $0x960] sm:$0xff]  ;;  %v1155_v28 = vld [vmem:[#allocation8 + $0x930] sm:$0xff] }
 0x26d   :  { %2896 = vmatmul.mubr.f32.vlgmr.msra.gmra.mrb[48].mxu0 %v7606_v21 }
 0x26e   :  { %3348 = vmatmul.mubr.f32.vlgmr.msra.gmra.mrb[48].mxu1 %v7606_v21  ;;  %2901 = vmatprep.mubr.f32.mxu0 %v7607_v36  ;;  %v7610_v21 = vld [vmem:[#allocation23_spill] sm:$0xff] }
 0x26f   :  { %4815 = vmatpush1.bf16.msra.mxu0 %v4814_v39  ;;  %3353 = vmatprep.mubr.f32.mxu1 %v7607_v36  ;;  %v4822_v39 = vpack.c.bf16 %v1161_v15, %v1153_v34  ;;  %v7611_v36 = vld [vmem:[#allocation26_spill] sm:$0xff]  ;;  %v1185_v34 = vld [vmem:[#allocation8 + $0xa20] sm:$0xff] }
 0x270   :  { %5071 = vmatpush1.bf16.msra.mxu1 %v5070_v50  ;;  %4817 = vmatprep.subr.bf16.mxu0 %v4816_v44  ;;  %v5078_v50 = vpack.c.bf16 %v1163_v31, %v1155_v28  ;;  %v4824_v44 = vpack.c.bf16 %v1178_v10, %v1170_v37  ;;  %v1193_v15 = vld [vmem:[#allocation8 + $0xa60] sm:$0xff]  ;;  %v1187_v28 = vld [vmem:[#allocation8 + $0xa30] sm:$0xff]  ;;  %v1202_v37 = vld [vmem:[#allocation8 + $0xaa8] sm:$0xff] }
 0x271   :  { %2902 = vmatmul.mubr.f32.gmra.mrb[50].mxu0 %v7608_v30  ;;  %5073 = vmatprep.subr.bf16.mxu1 %v5072_v17  ;;  %v5080_v17 = vpack.c.bf16 %v1180_v53, %v1172_v2  ;;  %v1195_v31 = vld [vmem:[#allocation8 + $0xa70] sm:$0xff]  ;;  %v1210_v10 = vld [vmem:[#allocation8 + $0xae8] sm:$0xff]  ;;  %v1204_v2 = vld [vmem:[#allocation8 + $0xab8] sm:$0xff] }
 0x272   :  { %3354 = vmatmul.mubr.f32.gmra.mrb[50].mxu1 %v7608_v30  ;;  %2907 = vmatprep.mubr.f32.mxu0 %v7609_v0  ;;  %v7612_v30 = vld [vmem:[#allocation25_spill] sm:$0xff]  ;;  %v1212_v53 = vld [vmem:[#allocation8 + $0xaf8] sm:$0xff] }
 0x273   :  { %4819 = vmatpush1.bf16.msra.mxu0 %v4818_v47  ;;  %3359 = vmatprep.mubr.f32.mxu1 %v7609_v0  ;;  %v4826_v47 = vpack.c.bf16 %v1177_v60, %v1169_v61  ;;  %v7613_v0 = vld [vmem:[#allocation29_spill] sm:$0xff]  ;;  %v1201_v61 = vld [vmem:[#allocation8 + $0xaa0] sm:$0xff] }
 0x274   :  { %5075 = vmatpush1.bf16.msra.mxu1 %v5074_v46  ;;  %4821 = vmatprep.subr.bf16.mxu0 %v4820_v54  ;;  %v5082_v46 = vpack.c.bf16 %v1179_v40, %v1171_v22  ;;  %v4828_v54 = vpack.c.bf16 %v1194_v57, %v1186_v43  ;;  %v1209_v60 = vld [vmem:[#allocation8 + $0xae0] sm:$0xff]  ;;  %v1203_v22 = vld [vmem:[#allocation8 + $0xab0] sm:$0xff]  ;;  %v1218_v43 = vld [vmem:[#allocation8 + $0xb28] sm:$0xff] }
 0x275   :  { %2908 = vmatmul.mubr.f32.gmra.mrb[52].mxu0 %v7610_v21  ;;  %5077 = vmatprep.subr.bf16.mxu1 %v5076_v51  ;;  %v5084_v51 = vpack.c.bf16 %v1196_v8, %v1188_v56  ;;  %v1211_v40 = vld [vmem:[#allocation8 + $0xaf0] sm:$0xff]  ;;  %v1226_v57 = vld [vmem:[#allocation8 + $0xb68] sm:$0xff]  ;;  %v1220_v56 = vld [vmem:[#allocation8 + $0xb38] sm:$0xff] }
 0x276   :  { %3360 = vmatmul.mubr.f32.gmra.mrb[52].mxu1 %v7610_v21  ;;  %2913 = vmatprep.mubr.f32.mxu0 %v7611_v36  ;;  %v7614_v21 = vld [vmem:[#allocation28_spill] sm:$0xff]  ;;  %v1228_v8 = vld [vmem:[#allocation8 + $0xb78] sm:$0xff] }
 0x277   :  { %4823 = vmatpush1.bf16.msra.mxu0 %v4822_v39  ;;  %3365 = vmatprep.mubr.f32.mxu1 %v7611_v36  ;;  %v4830_v39 = vpack.c.bf16 %v1193_v15, %v1185_v34  ;;  %v7615_v36 = vld [vmem:[#allocation31_spill] sm:$0xff] }
 0x278   :  { %5079 = vmatpush1.bf16.msra.mxu1 %v5078_v50  ;;  %4825 = vmatprep.subr.bf16.mxu0 %v4824_v44  ;;  %v5086_v50 = vpack.c.bf16 %v1195_v31, %v1187_v28  ;;  %v4832_v44 = vpack.c.bf16 %v1210_v10, %v1202_v37  ;;  %v1217_v34 = vld [vmem:[#allocation8 + $0xb20] sm:$0xff]  ;;  %v1219_v28 = vld [vmem:[#allocation8 + $0xb30] sm:$0xff]  ;;  %v1234_v37 = vld [vmem:[#allocation8 + $0xba8] sm:$0xff] }
 0x279   :  { %2914 = vmatmul.mubr.f32.gmra.mrb[54].mxu0 %v7612_v30  ;;  %5081 = vmatprep.subr.bf16.mxu1 %v5080_v17  ;;  %v5088_v17 = vpack.c.bf16 %v1212_v53, %v1204_v2  ;;  %v1225_v15 = vld [vmem:[#allocation8 + $0xb60] sm:$0xff]  ;;  %v1227_v31 = vld [vmem:[#allocation8 + $0xb70] sm:$0xff]  ;;  %v1242_v10 = vld [vmem:[#allocation8 + $0xbe8] sm:$0xff] }
 0x27a   :  { %3366 = vmatmul.mubr.f32.gmra.mrb[54].mxu1 %v7612_v30  ;;  %2919 = vmatprep.mubr.f32.mxu0 %v7613_v0  ;;  %v7616_v30 = vld [vmem:[#allocation30_spill] sm:$0xff] }
 0x27b   :  { %4827 = vmatpush1.bf16.msra.mxu0 %v4826_v47  ;;  %3371 = vmatprep.mubr.f32.mxu1 %v7613_v0  ;;  %v4834_v47 = vpack.c.bf16 %v1209_v60, %v1201_v61  ;;  %v7617_v0 = vld [vmem:[#allocation33_spill] sm:$0xff]  ;;  %v1236_v2 = vld [vmem:[#allocation8 + $0xbb8] sm:$0xff]  ;;  %v1233_v61 = vld [vmem:[#allocation8 + $0xba0] sm:$0xff]  ;;  %7642 = vst [vmem:[#allocation30_spill] sm:$0xff] %v6618_v27 }
 0x27c   :  { %5083 = vmatpush1.bf16.msra.mxu1 %v5082_v46  ;;  %4829 = vmatprep.subr.bf16.mxu0 %v4828_v54  ;;  %v5090_v46 = vpack.c.bf16 %v1211_v40, %v1203_v22  ;;  %v4836_v54 = vpack.c.bf16 %v1226_v57, %v1218_v43  ;;  %v1244_v53 = vld [vmem:[#allocation8 + $0xbf8] sm:$0xff]  ;;  %v1241_v60 = vld [vmem:[#allocation8 + $0xbe0] sm:$0xff]  ;;  %v1235_v22 = vld [vmem:[#allocation8 + $0xbb0] sm:$0xff] }
 0x27d   :  { %2920 = vmatmul.mubr.f32.gmra.mrb[56].mxu0 %v7614_v21  ;;  %5085 = vmatprep.subr.bf16.mxu1 %v5084_v51  ;;  %v5092_v51 = vpack.c.bf16 %v1228_v8, %v1220_v56  ;;  %v1243_v40 = vld [vmem:[#allocation8 + $0xbf0] sm:$0xff]  ;;  %v1250_v43 = vld [vmem:[#allocation8 + $0xc28] sm:$0xff]  ;;  %v1252_v56 = vld [vmem:[#allocation8 + $0xc38] sm:$0xff] }
 0x27e   :  { %3372 = vmatmul.mubr.f32.gmra.mrb[56].mxu1 %v7614_v21  ;;  %2925 = vmatprep.mubr.f32.mxu0 %v7615_v36  ;;  %v7618_v21 = vld [vmem:[#allocation32_spill] sm:$0xff]  ;;  %v1260_v8 = vld [vmem:[#allocation8 + $0xc78] sm:$0xff] }
 0x27f   :  { %4831 = vmatpush1.bf16.msra.mxu0 %v4830_v39  ;;  %3377 = vmatprep.mubr.f32.mxu1 %v7615_v36  ;;  %v4838_v39 = vpack.c.bf16 %v1225_v15, %v1217_v34  ;;  %v1258_v57 = vld [vmem:[#allocation8 + $0xc68] sm:$0xff]  ;;  %v7619_v36 = vld [vmem:[#allocation35_spill] sm:$0xff]  ;;  %7644 = vst [vmem:[#allocation32_spill] sm:$0xff] %v6630_v35  ;;  %v6732_v27 = vld [vmem:[#allocation8 + $0x1cf8] sm:$0xff] }
 0x280   :  { %5087 = vmatpush1.bf16.msra.mxu1 %v5086_v50  ;;  %4833 = vmatprep.subr.bf16.mxu0 %v4832_v44  ;;  %v5094_v50 = vpack.c.bf16 %v1227_v31, %v1219_v28  ;;  %v4840_v44 = vpack.c.bf16 %v1242_v10, %v1234_v37  ;;  %v1249_v34 = vld [vmem:[#allocation8 + $0xc20] sm:$0xff]  ;;  %v1251_v28 = vld [vmem:[#allocation8 + $0xc30] sm:$0xff]  ;;  %v1266_v37 = vld [vmem:[#allocation8 + $0xca8] sm:$0xff]  ;;  %7645 = vst [vmem:[#allocation35_spill] sm:$0xff] %v6632_v58 }
 0x281   :  { %2926 = vmatmul.mubr.f32.gmra.mrb[58].mxu0 %v7616_v30  ;;  %5089 = vmatprep.subr.bf16.mxu1 %v5088_v17  ;;  %v5096_v17 = vpack.c.bf16 %v1244_v53, %v1236_v2  ;;  %v1257_v15 = vld [vmem:[#allocation8 + $0xc60] sm:$0xff]  ;;  %v1259_v31 = vld [vmem:[#allocation8 + $0xc70] sm:$0xff]  ;;  %v1274_v10 = vld [vmem:[#allocation8 + $0xce8] sm:$0xff] }
 0x282   :  { %3378 = vmatmul.mubr.f32.gmra.mrb[58].mxu1 %v7616_v30  ;;  %2931 = vmatprep.mubr.f32.mxu0 %v7617_v0  ;;  %v7620_v30 = vld [vmem:[#allocation34_spill] sm:$0xff]  ;;  %v6754_v35 = vld [vmem:[#allocation8 + $0x1d68] sm:$0xff] }
 0x283   :  { %4835 = vmatpush1.bf16.msra.mxu0 %v4834_v47  ;;  %3383 = vmatprep.mubr.f32.mxu1 %v7617_v0  ;;  %v4842_v47 = vpack.c.bf16 %v1241_v60, %v1233_v61  ;;  %v7621_v0 = vld [vmem:[#allocation36_spill] sm:$0xff]  ;;  %v1268_v2 = vld [vmem:[#allocation8 + $0xcb8] sm:$0xff]  ;;  %v1265_v61 = vld [vmem:[#allocation8 + $0xca0] sm:$0xff] }
 0x284   :  { %5091 = vmatpush1.bf16.msra.mxu1 %v5090_v46  ;;  %4837 = vmatprep.subr.bf16.mxu0 %v4836_v54  ;;  %v5098_v46 = vpack.c.bf16 %v1243_v40, %v1235_v22  ;;  %v4844_v54 = vpack.c.bf16 %v1258_v57, %v1250_v43  ;;  %v1276_v53 = vld [vmem:[#allocation8 + $0xcf8] sm:$0xff]  ;;  %v1273_v60 = vld [vmem:[#allocation8 + $0xce0] sm:$0xff]  ;;  %v1267_v22 = vld [vmem:[#allocation8 + $0xcb0] sm:$0xff]  ;;  %7648 = vst [vmem:[#allocation36_spill] sm:$0xff] %v6645_v23 }
 0x285   :  { %2932 = vmatmul.mubr.f32.gmra.mrb[60].mxu0 %v7618_v21  ;;  %5093 = vmatprep.subr.bf16.mxu1 %v5092_v51  ;;  %v5100_v51 = vpack.c.bf16 %v1260_v8, %v1252_v56  ;;  %v1282_v40 = vld [vmem:[#allocation8 + $0xd28] sm:$0xff]  ;;  %v1284_v57 = vld [vmem:[#allocation8 + $0xd38] sm:$0xff]  ;;  %v4850_v56 = vpack.c.bf16 %v1273_v60, %v1265_v61  ;;  %v1307_v61 = vld [vmem:[#allocation8 + $0xdf0] sm:$0xff] }
 0x286   :  { %3384 = vmatmul.mubr.f32.gmra.mrb[60].mxu1 %v7618_v21  ;;  %2937 = vmatprep.mubr.f32.mxu0 %v7619_v36  ;;  %v5104_v21 = vpack.c.bf16 %v1276_v53, %v1268_v2  ;;  %v1290_v43 = vld [vmem:[#allocation8 + $0xd68] sm:$0xff]  ;;  %v1297_v53 = vld [vmem:[#allocation8 + $0xda0] sm:$0xff]  ;;  %v6756_v58 = vld [vmem:[#allocation8 + $0x1d38] sm:$0xff] }
 0x287   :  { %4839 = vmatpush1.bf16.msra.mxu0 %v4838_v39  ;;  %3389 = vmatprep.mubr.f32.mxu1 %v7619_v36  ;;  %v4846_v39 = vpack.c.bf16 %v1257_v15, %v1249_v34  ;;  %v1292_v36 = vld [vmem:[#allocation8 + $0xd78] sm:$0xff]  ;;  %v1283_v34 = vld [vmem:[#allocation8 + $0xd30] sm:$0xff]  ;;  %v1314_v60 = vld [vmem:[#allocation8 + $0xe28] sm:$0xff] }
 0x288   :  { %5095 = vmatpush1.bf16.msra.mxu1 %v5094_v50  ;;  %4841 = vmatprep.subr.bf16.mxu0 %v4840_v44  ;;  %v5102_v50 = vpack.c.bf16 %v1259_v31, %v1251_v28  ;;  %v4848_v44 = vpack.c.bf16 %v1274_v10, %v1266_v37  ;;  %v5108_v15 = vpack.c.bf16 %v1292_v36, %v1284_v57  ;;  %v1291_v28 = vld [vmem:[#allocation8 + $0xd70] sm:$0xff]  ;;  %v1300_v31 = vld [vmem:[#allocation8 + $0xdb8] sm:$0xff]  ;;  %v1313_v36 = vld [vmem:[#allocation8 + $0xe20] sm:$0xff] }
 0x289   :  { %2938 = vmatmul.mubr.f32.gmra.mrb[62].mxu0 %v7620_v30  ;;  %5097 = vmatprep.subr.bf16.mxu1 %v5096_v17  ;;  %v1275_v17 = vld [vmem:[#allocation8 + $0xcf0] sm:$0xff]  ;;  %v1308_v37 = vld [vmem:[#allocation8 + $0xdf8] sm:$0xff]  ;;  %v6780_v23 = vld [vmem:[#allocation8 + $0x1de8] sm:$0xff] }
 0x28a   :  { %3390 = vmatmul.mubr.f32.gmra.mrb[62].mxu1 %v7620_v30  ;;  %3008 = vmatprep.mubr.f32.mxu0 %v7621_v0  ;;  %v5106_v8 = vpack.c.bf16 %v1275_v17, %v1267_v22  ;;  %v1298_v30 = vld [vmem:[#allocation8 + $0xda8] sm:$0xff]  ;;  %v1324_v17 = vld [vmem:[#allocation8 + $0xe78] sm:$0xff]  ;;  %7667 = vst [vmem:[#allocation72_spill] sm:$0xff] %v6780_v23 }
 0x28b   :  { %4843 = vmatpush1.bf16.msra.mxu0 %v4842_v47  ;;  %3460 = vmatprep.mubr.f32.mxu1 %v7621_v0  ;;  %v4852_v47 = vpack.c.bf16 %v1290_v43, %v1282_v40  ;;  %v5110_v0 = vpack.c.bf16 %v1291_v28, %v1283_v34  ;;  %v1322_v22 = vld [vmem:[#allocation8 + $0xe68] sm:$0xff]  ;;  %v1340_v28 = vld [vmem:[#allocation8 + $0xef8] sm:$0xff] }
 0x28c   :  { %5099 = vmatpush1.bf16.msra.mxu1 %v5098_v46  ;;  %4845 = vmatprep.subr.bf16.mxu0 %v4844_v54  ;;  %v1281_v46 = vld [vmem:[#allocation8 + $0xd20] sm:$0xff]  ;;  %v4860_v57 = vpack.c.bf16 %v1322_v22, %v1314_v60  ;;  %v1338_v34 = vld [vmem:[#allocation8 + $0xee8] sm:$0xff] }
 0x28d   :  { %5101 = vmatprep.subr.bf16.mxu1 %v5100_v51  ;;  %v1289_v54 = vld [vmem:[#allocation8 + $0xd60] sm:$0xff]  ;;  %v1306_v51 = vld [vmem:[#allocation8 + $0xde8] sm:$0xff] }
 0x28e   :  { %v4854_v10 = vpack.c.bf16 %v1289_v54, %v1281_v46  ;;  %v4856_v2 = vpack.c.bf16 %v1306_v51, %v1298_v30  ;;  %v1323_v46 = vld [vmem:[#allocation8 + $0xe70] sm:$0xff]  ;;  %v1330_v54 = vld [vmem:[#allocation8 + $0xea8] sm:$0xff] }
 0x28f   :  { %4847 = vmatpush1.bf16.msra.mxu0 %v4846_v39  ;;  %v1305_v39 = vld [vmem:[#allocation8 + $0xde0] sm:$0xff] }
 0x290   :  { %5103 = vmatpush1.bf16.msra.mxu1 %v5102_v50  ;;  %4849 = vmatprep.subr.bf16.mxu0 %v4848_v44  ;;  %v1299_v50 = vld [vmem:[#allocation8 + $0xdb0] sm:$0xff]  ;;  %v5112_v44 = vpack.c.bf16 %v1308_v37, %v1300_v31  ;;  %v4858_v40 = vpack.c.bf16 %v1305_v39, %v1297_v53  ;;  %v4864_v31 = vpack.c.bf16 %v1338_v34, %v1330_v54  ;;  %v1329_v37 = vld [vmem:[#allocation8 + $0xea0] sm:$0xff]  ;;  %v1346_v39 = vld [vmem:[#allocation8 + $0xf28] sm:$0xff] }
 0x291   :  { %5105 = vmatprep.subr.bf16.mxu1 %v5104_v21  ;;  %v1316_v21 = vld [vmem:[#allocation8 + $0xe38] sm:$0xff]  ;;  %v5114_v43 = vpack.c.bf16 %v1307_v61, %v1299_v50  ;;  %v1339_v53 = vld [vmem:[#allocation8 + $0xef0] sm:$0xff]  ;;  %v1354_v50 = vld [vmem:[#allocation8 + $0xf68] sm:$0xff] }
 0x292   :  { %v1356_v61 = vld [vmem:[#allocation8 + $0xf78] sm:$0xff] }
 0x293   :  { %4851 = vmatpush1.bf16.msra.mxu0 %v4850_v56  ;;  %v1321_v56 = vld [vmem:[#allocation8 + $0xe60] sm:$0xff] }
 0x294   :  { %5107 = vmatpush1.bf16.msra.mxu1 %v5106_v8  ;;  %4853 = vmatprep.subr.bf16.mxu0 %v4852_v47  ;;  %v1315_v8 = vld [vmem:[#allocation8 + $0xe30] sm:$0xff]  ;;  %v5116_v47 = vpack.c.bf16 %v1324_v17, %v1316_v21  ;;  %v4862_v30 = vpack.c.bf16 %v1321_v56, %v1313_v36  ;;  %v4868_v21 = vpack.c.bf16 %v1354_v50, %v1346_v39  ;;  %v1345_v17 = vld [vmem:[#allocation8 + $0xf20] sm:$0xff]  ;;  %v1362_v56 = vld [vmem:[#allocation8 + $0xfa8] sm:$0xff] }
 0x295   :  { %5109 = vmatprep.subr.bf16.mxu1 %v5108_v15  ;;  %v1332_v15 = vld [vmem:[#allocation8 + $0xeb8] sm:$0xff]  ;;  %v5118_v51 = vpack.c.bf16 %v1323_v46, %v1315_v8  ;;  %v1355_v36 = vld [vmem:[#allocation8 + $0xf70] sm:$0xff]  ;;  %v1370_v8 = vld [vmem:[#allocation8 + $0xfe8] sm:$0xff] }
 0x296   :  { %v1372_v46 = vld [vmem:[#allocation8 + $0xff8] sm:$0xff] }
 0x297   :  { %4855 = vmatpush1.bf16.msra.mxu0 %v4854_v10  ;;  %v1337_v10 = vld [vmem:[#allocation8 + $0xee0] sm:$0xff] }
 0x298   :  { %5111 = vmatpush1.bf16.msra.mxu1 %v5110_v0  ;;  %4857 = vmatprep.subr.bf16.mxu0 %v4856_v2  ;;  %v1331_v0 = vld [vmem:[#allocation8 + $0xeb0] sm:$0xff]  ;;  %v5120_v2 = vpack.c.bf16 %v1340_v28, %v1332_v15  ;;  %v4866_v60 = vpack.c.bf16 %v1337_v10, %v1329_v37  ;;  %v4872_v15 = vpack.c.bf16 %v1370_v8, %v1362_v56  ;;  %v1361_v28 = vld [vmem:[#allocation8 + $0xfa0] sm:$0xff]  ;;  %v1378_v10 = vld [vmem:[#allocation8 + $0x1028] sm:$0xff] }
 0x299   :  { %5113 = vmatprep.subr.bf16.mxu1 %v5112_v44  ;;  %v1348_v44 = vld [vmem:[#allocation8 + $0xf38] sm:$0xff]  ;;  %v5122_v22 = vpack.c.bf16 %v1339_v53, %v1331_v0  ;;  %v1371_v37 = vld [vmem:[#allocation8 + $0xff0] sm:$0xff]  ;;  %v1386_v0 = vld [vmem:[#allocation8 + $0x1068] sm:$0xff] }
 0x29a   :  { %v1388_v53 = vld [vmem:[#allocation8 + $0x1078] sm:$0xff] }
 0x29b   :  { %4859 = vmatpush1.bf16.msra.mxu0 %v4858_v40  ;;  %v1353_v40 = vld [vmem:[#allocation8 + $0xf60] sm:$0xff] }
 0x29c   :  { %5115 = vmatpush1.bf16.msra.mxu1 %v5114_v43  ;;  %4861 = vmatprep.subr.bf16.mxu0 %v4860_v57  ;;  %v1347_v43 = vld [vmem:[#allocation8 + $0xf30] sm:$0xff]  ;;  %v5124_v57 = vpack.c.bf16 %v1356_v61, %v1348_v44  ;;  %v4870_v54 = vpack.c.bf16 %v1353_v40, %v1345_v17  ;;  %v4876_v44 = vpack.c.bf16 %v1386_v0, %v1378_v10  ;;  %v1394_v40 = vld [vmem:[#allocation8 + $0x10a8] sm:$0xff]  ;;  %v1412_v10 = vld [vmem:[#allocation8 + $0x1138] sm:$0xff] }
 0x29d   :  { %5117 = vmatprep.subr.bf16.mxu1 %v5116_v47  ;;  %v1364_v47 = vld [vmem:[#allocation8 + $0xfb8] sm:$0xff]  ;;  %v5126_v34 = vpack.c.bf16 %v1355_v36, %v1347_v43  ;;  %v1387_v17 = vld [vmem:[#allocation8 + $0x1070] sm:$0xff]  ;;  %v1402_v43 = vld [vmem:[#allocation8 + $0x10e8] sm:$0xff] }
 0x29e   :  { %v1404_v36 = vld [vmem:[#allocation8 + $0x10f8] sm:$0xff] }
 0x29f   :  { %4863 = vmatpush1.bf16.msra.mxu0 %v4862_v30  ;;  %v1369_v30 = vld [vmem:[#allocation8 + $0xfe0] sm:$0xff]  ;;  %v1420_v0 = vld [vmem:[#allocation8 + $0x1178] sm:$0xff] }
 0x2a0   :  { %5119 = vmatpush1.bf16.msra.mxu1 %v5118_v51  ;;  %4865 = vmatprep.subr.bf16.mxu0 %v4864_v31  ;;  %v1363_v51 = vld [vmem:[#allocation8 + $0xfb0] sm:$0xff]  ;;  %v5128_v31 = vpack.c.bf16 %v1372_v46, %v1364_v47  ;;  %v4874_v39 = vpack.c.bf16 %v1369_v30, %v1361_v28  ;;  %v4880_v47 = vpack.c.bf16 %v1402_v43, %v1394_v40  ;;  %v1393_v46 = vld [vmem:[#allocation8 + $0x10a0] sm:$0xff]  ;;  %v1434_v40 = vld [vmem:[#allocation8 + $0x11e8] sm:$0xff] }
 0x2a1   :  { %5121 = vmatprep.subr.bf16.mxu1 %v5120_v2  ;;  %v1380_v2 = vld [vmem:[#allocation8 + $0x1038] sm:$0xff]  ;;  %v5130_v50 = vpack.c.bf16 %v1371_v37, %v1363_v51  ;;  %v1403_v30 = vld [vmem:[#allocation8 + $0x10f0] sm:$0xff]  ;;  %v1410_v51 = vld [vmem:[#allocation8 + $0x1128] sm:$0xff] }
 0x2a2   :  { %v5132_v61 = vpack.c.bf16 %v1388_v53, %v1380_v2  ;;  %v7623_v37 = vld [vmem:[#allocation43_spill] sm:$0xff]  ;;  %v7625_v43 = vld [vmem:[#allocation45_spill] sm:$0xff] }
 0x2a3   :  { %4867 = vmatpush1.bf16.msra.mxu0 %v4866_v60  ;;  %v1377_v60 = vld [vmem:[#allocation8 + $0x1020] sm:$0xff]  ;;  %7650 = vst [vmem:[#allocation43_spill] sm:$0xff] %v6649_v38  ;;  %v6776_v38 = vld [vmem:[#allocation8 + $0x1d70] sm:$0xff] }
 0x2a4   :  { %5123 = vmatpush1.bf16.msra.mxu1 %v5122_v22  ;;  %4869 = vmatprep.subr.bf16.mxu0 %v4868_v21  ;;  %v1385_v22 = vld [vmem:[#allocation8 + $0x1060] sm:$0xff]  ;;  %v1379_v21 = vld [vmem:[#allocation8 + $0x1030] sm:$0xff] }
 0x2a5   :  { %5125 = vmatprep.subr.bf16.mxu1 %v5124_v57  ;;  %v1396_v57 = vld [vmem:[#allocation8 + $0x10b8] sm:$0xff]  ;;  %v4878_v56 = vpack.c.bf16 %v1385_v22, %v1377_v60  ;;  %v5134_v8 = vpack.c.bf16 %v1387_v17, %v1379_v21  ;;  %v7624_v60 = vld [vmem:[#allocation44_spill] sm:$0xff]  ;;  %v5140_v22 = vpack.c.bf16 %v1420_v0, %v1412_v10  ;;  %v1419_v21 = vld [vmem:[#allocation8 + $0x1170] sm:$0xff] }
 0x2a6   :  { %v5136_v28 = vpack.c.bf16 %v1404_v36, %v1396_v57  ;;  %v1426_v17 = vld [vmem:[#allocation8 + $0x11a8] sm:$0xff]  ;;  %v1428_v57 = vld [vmem:[#allocation8 + $0x11b8] sm:$0xff] }
 0x2a7   :  { %4871 = vmatpush1.bf16.msra.mxu0 %v4870_v54  ;;  %v1401_v54 = vld [vmem:[#allocation8 + $0x10e0] sm:$0xff]  ;;  %v1436_v36 = vld [vmem:[#allocation8 + $0x11f8] sm:$0xff] }
 0x2a8   :  { %5127 = vmatpush1.bf16.msra.mxu1 %v5126_v34  ;;  %4873 = vmatprep.subr.bf16.mxu0 %v4872_v15  ;;  %v1395_v34 = vld [vmem:[#allocation8 + $0x10b0] sm:$0xff]  ;;  %v7622_v15 = vld [vmem:[#allocation42_spill] sm:$0xff]  ;;  %v4882_v2 = vpack.c.bf16 %v1401_v54, %v1393_v46  ;;  %v1425_v46 = vld [vmem:[#allocation8 + $0x11a0] sm:$0xff] }
 0x2a9   :  { %5129 = vmatprep.subr.bf16.mxu1 %v5128_v31  ;;  %v1418_v31 = vld [vmem:[#allocation8 + $0x1168] sm:$0xff]  ;;  %v5138_v53 = vpack.c.bf16 %v1403_v30, %v1395_v34  ;;  %v1433_v54 = vld [vmem:[#allocation8 + $0x11e0] sm:$0xff]  ;;  %v1427_v34 = vld [vmem:[#allocation8 + $0x11b0] sm:$0xff]  ;;  %7649 = vst [vmem:[#allocation42_spill] sm:$0xff] %v6647_v25 }
 0x2aa   :  { %v1435_v30 = vld [vmem:[#allocation8 + $0x11f0] sm:$0xff]  ;;  %v1444_v10 = vld [vmem:[#allocation8 + $0x1238] sm:$0xff] }
 0x2ab   :  { %4875 = vmatpush1.bf16.msra.mxu0 %v4874_v39  ;;  %v4884_v39 = vpack.c.bf16 %v1418_v31, %v1410_v51  ;;  %v1442_v51 = vld [vmem:[#allocation8 + $0x1228] sm:$0xff]  ;;  %v1452_v0 = vld [vmem:[#allocation8 + $0x1278] sm:$0xff]  ;;  %v6774_v25 = vld [vmem:[#allocation8 + $0x1d30] sm:$0xff] }
 0x2ac   :  { %5131 = vmatpush1.bf16.msra.mxu1 %v5130_v50  ;;  %4877 = vmatprep.subr.bf16.mxu0 %v4876_v44  ;;  %v1409_v50 = vld [vmem:[#allocation8 + $0x1120] sm:$0xff]  ;;  %v1450_v31 = vld [vmem:[#allocation8 + $0x1268] sm:$0xff] }
 0x2ad   :  { %5133 = vmatprep.subr.bf16.mxu1 %v5132_v61  ;;  %v1417_v44 = vld [vmem:[#allocation8 + $0x1160] sm:$0xff]  ;;  %v1411_v61 = vld [vmem:[#allocation8 + $0x1130] sm:$0xff] }
 0x2ae   :  { %3009 = vmatmul.mubr.f32.vlgmr.msra.gmra.mrb[48].mxu0 %v7622_v15 }
 0x2af   :  { %3461 = vmatmul.mubr.f32.vlgmr.msra.gmra.mrb[48].mxu1 %v7622_v15  ;;  %3014 = vmatprep.mubr.f32.mxu0 %v7623_v37  ;;  %v7626_v15 = vld [vmem:[#allocation46_spill] sm:$0xff] }
 0x2b0   :  { %4879 = vmatpush1.bf16.msra.mxu0 %v4878_v56  ;;  %3466 = vmatprep.mubr.f32.mxu1 %v7623_v37  ;;  %v4886_v56 = vpack.c.bf16 %v1417_v44, %v1409_v50  ;;  %v7627_v37 = vld [vmem:[#allocation47_spill] sm:$0xff]  ;;  %7655 = vst [vmem:[#allocation46_spill] sm:$0xff] %v6671_v42 }
 0x2b1   :  { %5135 = vmatpush1.bf16.msra.mxu1 %v5134_v8  ;;  %4881 = vmatprep.subr.bf16.mxu0 %v4880_v47  ;;  %v5142_v8 = vpack.c.bf16 %v1419_v21, %v1411_v61  ;;  %v4888_v47 = vpack.c.bf16 %v1434_v40, %v1426_v17  ;;  %v1441_v50 = vld [vmem:[#allocation8 + $0x1220] sm:$0xff]  ;;  %v1443_v61 = vld [vmem:[#allocation8 + $0x1230] sm:$0xff]  ;;  %v1458_v17 = vld [vmem:[#allocation8 + $0x12a8] sm:$0xff]  ;;  %7656 = vst [vmem:[#allocation47_spill] sm:$0xff] %v6673_v12 }
 0x2b2   :  { %3015 = vmatmul.mubr.f32.gmra.mrb[50].mxu0 %v7624_v60  ;;  %5137 = vmatprep.subr.bf16.mxu1 %v5136_v28  ;;  %v5144_v28 = vpack.c.bf16 %v1436_v36, %v1428_v57  ;;  %v1449_v44 = vld [vmem:[#allocation8 + $0x1260] sm:$0xff]  ;;  %v1451_v21 = vld [vmem:[#allocation8 + $0x1270] sm:$0xff]  ;;  %v1466_v40 = vld [vmem:[#allocation8 + $0x12e8] sm:$0xff] }
 0x2b3   :  { %3467 = vmatmul.mubr.f32.gmra.mrb[50].mxu1 %v7624_v60  ;;  %3020 = vmatprep.mubr.f32.mxu0 %v7625_v43  ;;  %v7628_v60 = vld [vmem:[#allocation48_spill] sm:$0xff]  ;;  %v1460_v57 = vld [vmem:[#allocation8 + $0x12b8] sm:$0xff]  ;;  %v6798_v42 = vld [vmem:[#allocation8 + $0x1da0] sm:$0xff] }
 0x2b4   :  { %4883 = vmatpush1.bf16.msra.mxu0 %v4882_v2  ;;  %3472 = vmatprep.mubr.f32.mxu1 %v7625_v43  ;;  %v4890_v2 = vpack.c.bf16 %v1433_v54, %v1425_v46  ;;  %v7629_v43 = vld [vmem:[#allocation50_spill] sm:$0xff]  ;;  %v1457_v46 = vld [vmem:[#allocation8 + $0x12a0] sm:$0xff]  ;;  %7672 = vst [vmem:[#allocation75_spill] sm:$0xff] %v6798_v42 }
 0x2b5   :  { %5139 = vmatpush1.bf16.msra.mxu1 %v5138_v53  ;;  %4885 = vmatprep.subr.bf16.mxu0 %v4884_v39  ;;  %v5146_v53 = vpack.c.bf16 %v1435_v30, %v1427_v34  ;;  %v4892_v39 = vpack.c.bf16 %v1450_v31, %v1442_v51  ;;  %v1468_v36 = vld [vmem:[#allocation8 + $0x12f8] sm:$0xff]  ;;  %v1465_v54 = vld [vmem:[#allocation8 + $0x12e0] sm:$0xff]  ;;  %v1459_v34 = vld [vmem:[#allocation8 + $0x12b0] sm:$0xff] }
 0x2b6   :  { %3021 = vmatmul.mubr.f32.gmra.mrb[52].mxu0 %v7626_v15  ;;  %5141 = vmatprep.subr.bf16.mxu1 %v5140_v22  ;;  %v5148_v22 = vpack.c.bf16 %v1452_v0, %v1444_v10  ;;  %v1467_v30 = vld [vmem:[#allocation8 + $0x12f0] sm:$0xff]  ;;  %v1474_v51 = vld [vmem:[#allocation8 + $0x1328] sm:$0xff]  ;;  %v1484_v10 = vld [vmem:[#allocation8 + $0x1378] sm:$0xff]  ;;  %v4898_v0 = vpack.c.bf16 %v1465_v54, %v1457_v46 }
 0x2b7   :  { %3473 = vmatmul.mubr.f32.gmra.mrb[52].mxu1 %v7626_v15  ;;  %3026 = vmatprep.mubr.f32.mxu0 %v7627_v37  ;;  %v7630_v15 = vld [vmem:[#allocation52_spill] sm:$0xff]  ;;  %v6800_v12 = vld [vmem:[#allocation8 + $0x1de0] sm:$0xff] }
 0x2b8   :  { %4887 = vmatpush1.bf16.msra.mxu0 %v4886_v56  ;;  %3478 = vmatprep.mubr.f32.mxu1 %v7627_v37  ;;  %v4894_v56 = vpack.c.bf16 %v1449_v44, %v1441_v50  ;;  %v1482_v31 = vld [vmem:[#allocation8 + $0x1368] sm:$0xff]  ;;  %v1476_v37 = vld [vmem:[#allocation8 + $0x1338] sm:$0xff]  ;;  %v1481_v50 = vld [vmem:[#allocation8 + $0x1360] sm:$0xff]  ;;  %7673 = vst [vmem:[#allocation76_spill] sm:$0xff] %v6800_v12 }
 0x2b9   :  { %5143 = vmatpush1.bf16.msra.mxu1 %v5142_v8  ;;  %4889 = vmatprep.subr.bf16.mxu0 %v4888_v47  ;;  %v5150_v8 = vpack.c.bf16 %v1451_v21, %v1443_v61  ;;  %v4896_v47 = vpack.c.bf16 %v1466_v40, %v1458_v17  ;;  %v1475_v44 = vld [vmem:[#allocation8 + $0x1330] sm:$0xff]  ;;  %v5156_v61 = vpack.c.bf16 %v1484_v10, %v1476_v37  ;;  %v1498_v21 = vld [vmem:[#allocation8 + $0x13e8] sm:$0xff]  ;;  %v1500_v17 = vld [vmem:[#allocation8 + $0x13f8] sm:$0xff] }
 0x2ba   :  { %3027 = vmatmul.mubr.f32.gmra.mrb[54].mxu0 %v7628_v60  ;;  %5145 = vmatprep.subr.bf16.mxu1 %v5144_v28  ;;  %v5152_v28 = vpack.c.bf16 %v1468_v36, %v1460_v57  ;;  %v1489_v36 = vld [vmem:[#allocation8 + $0x13a0] sm:$0xff]  ;;  %v1506_v46 = vld [vmem:[#allocation8 + $0x1428] sm:$0xff]  ;;  %v1507_v37 = vld [vmem:[#allocation8 + $0x1430] sm:$0xff] }
 0x2bb   :  { %3479 = vmatmul.mubr.f32.gmra.mrb[54].mxu1 %v7628_v60  ;;  %3032 = vmatprep.mubr.f32.mxu0 %v7629_v43  ;;  %v1483_v60 = vld [vmem:[#allocation8 + $0x1370] sm:$0xff]  ;;  %v1514_v54 = vld [vmem:[#allocation8 + $0x1468] sm:$0xff] }
 0x2bc   :  { %4891 = vmatpush1.bf16.msra.mxu0 %v4890_v2  ;;  %3484 = vmatprep.mubr.f32.mxu1 %v7629_v43  ;;  %v5154_v2 = vpack.c.bf16 %v1467_v30, %v1459_v34  ;;  %v5158_v43 = vpack.c.bf16 %v1483_v60, %v1475_v44  ;;  %v1516_v34 = vld [vmem:[#allocation8 + $0x1478] sm:$0xff]  ;;  %v4908_v30 = vpack.c.bf16 %v1514_v54, %v1506_v46  ;;  %v1529_v60 = vld [vmem:[#allocation8 + $0x14e0] sm:$0xff]  ;;  %v1547_v46 = vld [vmem:[#allocation8 + $0x1570] sm:$0xff] }
 0x2bd   :  { %5147 = vmatpush1.bf16.msra.mxu1 %v5146_v53  ;;  %4893 = vmatprep.subr.bf16.mxu0 %v4892_v39  ;;  %v4900_v53 = vpack.c.bf16 %v1482_v31, %v1474_v51  ;;  %v1473_v39 = vld [vmem:[#allocation8 + $0x1320] sm:$0xff]  ;;  %v1554_v54 = vld [vmem:[#allocation8 + $0x15a8] sm:$0xff] }
 0x2be   :  { %3033 = vmatmul.mubr.f32.gmra.mrb[56].mxu0 %v7630_v15  ;;  %5149 = vmatprep.subr.bf16.mxu1 %v5148_v22  ;;  %v1490_v22 = vld [vmem:[#allocation8 + $0x13a8] sm:$0xff]  ;;  %v4902_v40 = vpack.c.bf16 %v1481_v50, %v1473_v39  ;;  %v1505_v51 = vld [vmem:[#allocation8 + $0x1420] sm:$0xff] }
 0x2bf   :  { %3485 = vmatmul.mubr.f32.gmra.mrb[56].mxu1 %v7630_v15  ;;  %3038 = vmatprep.mubr.f32.mxu0 %v6175_v4  ;;  %v4904_v57 = vpack.c.bf16 %v1498_v21, %v1490_v22  ;;  %v1513_v31 = vld [vmem:[#allocation8 + $0x1460] sm:$0xff]  ;;  %v1523_v22 = vld [vmem:[#allocation8 + $0x14b0] sm:$0xff] }
 0x2c0   :  { %4895 = vmatpush1.bf16.msra.mxu0 %v4894_v56  ;;  %3490 = vmatprep.mubr.f32.mxu1 %v6175_v4  ;;  %v1492_v4 = vld [vmem:[#allocation8 + $0x13b8] sm:$0xff]  ;;  %v1497_v56 = vld [vmem:[#allocation8 + $0x13e0] sm:$0xff]  ;;  %v4910_v39 = vpack.c.bf16 %v1513_v31, %v1505_v51 }
 0x2c1   :  { %5151 = vmatpush1.bf16.msra.mxu1 %v5150_v8  ;;  %4897 = vmatprep.subr.bf16.mxu0 %v4896_v47  ;;  %v1491_v8 = vld [vmem:[#allocation8 + $0x13b0] sm:$0xff]  ;;  %v5160_v47 = vpack.c.bf16 %v1500_v17, %v1492_v4  ;;  %v4906_v15 = vpack.c.bf16 %v1497_v56, %v1489_v36  ;;  %v1538_v17 = vld [vmem:[#allocation8 + $0x1528] sm:$0xff]  ;;  %v1537_v56 = vld [vmem:[#allocation8 + $0x1520] sm:$0xff] }
 0x2c2   :  { %3039 = vmatmul.mubr.f32.gmra.mrb[58].mxu0 %v6189_v48  ;;  %5153 = vmatprep.subr.bf16.mxu1 %v5152_v28  ;;  %v1531_v4 = vld [vmem:[#allocation8 + $0x14f0] sm:$0xff]  ;;  %v1553_v31 = vld [vmem:[#allocation8 + $0x15a0] sm:$0xff] }
 0x2c3   :  { %3491 = vmatmul.mubr.f32.gmra.mrb[58].mxu1 %v6189_v48  ;;  %3044 = vmatprep.mubr.f32.mxu0 %v6197_v19  ;;  %v1499_v48 = vld [vmem:[#allocation8 + $0x13f0] sm:$0xff] }
 0x2c4   :  { %4899 = vmatpush1.bf16.msra.mxu0 %v4898_v0  ;;  %3496 = vmatprep.mubr.f32.mxu1 %v6197_v19  ;;  %v1508_v19 = vld [vmem:[#allocation8 + $0x1438] sm:$0xff]  ;;  %v5162_v28 = vpack.c.bf16 %v1499_v48, %v1491_v8  ;;  %v1522_v0 = vld [vmem:[#allocation8 + $0x14a8] sm:$0xff]  ;;  %v1545_v8 = vld [vmem:[#allocation8 + $0x1560] sm:$0xff] }
 0x2c5   :  { %5155 = vmatpush1.bf16.msra.mxu1 %v5154_v2  ;;  %4901 = vmatprep.subr.bf16.mxu0 %v4900_v53  ;;  %v5164_v10 = vpack.c.bf16 %v1516_v34, %v1508_v19  ;;  %v1530_v2 = vld [vmem:[#allocation8 + $0x14e8] sm:$0xff]  ;;  %v1532_v53 = vld [vmem:[#allocation8 + $0x14f8] sm:$0xff] }
 0x2c6   :  { %3045 = vmatmul.mubr.f32.gmra.mrb[60].mxu0 %v6205_v29  ;;  %5157 = vmatprep.subr.bf16.mxu1 %v5156_v61  ;;  %v4912_v44 = vpack.c.bf16 %v1530_v2, %v1522_v0  ;;  %v1521_v61 = vld [vmem:[#allocation8 + $0x14a0] sm:$0xff]  ;;  %v1562_v19 = vld [vmem:[#allocation8 + $0x15e8] sm:$0xff]  ;;  %v1556_v34 = vld [vmem:[#allocation8 + $0x15b8] sm:$0xff] }
 0x2c7   :  { %3497 = vmatmul.mubr.f32.gmra.mrb[60].mxu1 %v6205_v29  ;;  %3050 = vmatprep.mubr.f32.mxu0 %v6209_v24  ;;  %v1515_v29 = vld [vmem:[#allocation8 + $0x1470] sm:$0xff]  ;;  %v4920_v51 = vpack.c.bf16 %v1562_v19, %v1554_v54  ;;  %v1570_v2 = vld [vmem:[#allocation8 + $0x1628] sm:$0xff] }
 0x2c8   :  { %4903 = vmatpush1.bf16.msra.mxu0 %v4902_v40  ;;  %3502 = vmatprep.mubr.f32.mxu1 %v6209_v24  ;;  %v1524_v24 = vld [vmem:[#allocation8 + $0x14b8] sm:$0xff]  ;;  %v5166_v50 = vpack.c.bf16 %v1515_v29, %v1507_v37  ;;  %v1561_v37 = vld [vmem:[#allocation8 + $0x15e0] sm:$0xff]  ;;  %v1563_v0 = vld [vmem:[#allocation8 + $0x15f0] sm:$0xff] }
 0x2c9   :  { %5159 = vmatpush1.bf16.msra.mxu1 %v5158_v43  ;;  %4905 = vmatprep.subr.bf16.mxu0 %v4904_v57  ;;  %v5168_v21 = vpack.c.bf16 %v1532_v53, %v1524_v24  ;;  %v1540_v40 = vld [vmem:[#allocation8 + $0x1538] sm:$0xff]  ;;  %v4914_v57 = vpack.c.bf16 %v1529_v60, %v1521_v61  ;;  %v1578_v24 = vld [vmem:[#allocation8 + $0x1668] sm:$0xff]  ;;  %v1569_v60 = vld [vmem:[#allocation8 + $0x1620] sm:$0xff] }
 0x2ca   :  { %3051 = vmatmul.mubr.f32.gmra.mrb[62].mxu0 %v6213_v55  ;;  %5161 = vmatprep.subr.bf16.mxu1 %v5160_v47  ;;  %v1548_v43 = vld [vmem:[#allocation8 + $0x1578] sm:$0xff]  ;;  %v1539_v47 = vld [vmem:[#allocation8 + $0x1530] sm:$0xff]  ;;  %v4924_v61 = vpack.c.bf16 %v1578_v24, %v1570_v2  ;;  %v1602_v19 = vld [vmem:[#allocation8 + $0x1728] sm:$0xff] }
 0x2cb   :  { %3503 = vmatmul.mubr.f32.gmra.mrb[62].mxu1 %v6213_v55  ;;  %3121 = vmatprep.mubr.f32.mxu0 %v6217_v3  ;;  %v1546_v55 = vld [vmem:[#allocation8 + $0x1568] sm:$0xff]  ;;  %v5172_v48 = vpack.c.bf16 %v1548_v43, %v1540_v40  ;;  %v1572_v53 = vld [vmem:[#allocation8 + $0x1638] sm:$0xff]  ;;  %v1595_v54 = vld [vmem:[#allocation8 + $0x16f0] sm:$0xff] }
 0x2cc   :  { %4907 = vmatpush1.bf16.msra.mxu0 %v4906_v15  ;;  %3573 = vmatprep.mubr.f32.mxu1 %v6217_v3  ;;  %v5170_v3 = vpack.c.bf16 %v1531_v4, %v1523_v22  ;;  %v4916_v36 = vpack.c.bf16 %v1546_v55, %v1538_v17  ;;  %v1564_v15 = vld [vmem:[#allocation8 + $0x15f8] sm:$0xff]  ;;  %v1577_v22 = vld [vmem:[#allocation8 + $0x1660] sm:$0xff]  ;;  %v1579_v17 = vld [vmem:[#allocation8 + $0x1670] sm:$0xff] }
 0x2cd   :  { %5163 = vmatpush1.bf16.msra.mxu1 %v5162_v28  ;;  %4909 = vmatprep.subr.bf16.mxu0 %v4908_v30  ;;  %v4918_v28 = vpack.c.bf16 %v1545_v8, %v1537_v56  ;;  %v5174_v30 = vpack.c.bf16 %v1547_v46, %v1539_v47  ;;  %v5176_v29 = vpack.c.bf16 %v1564_v15, %v1556_v34  ;;  %v1586_v55 = vld [vmem:[#allocation8 + $0x16a8] sm:$0xff]  ;;  %v1588_v43 = vld [vmem:[#allocation8 + $0x16b8] sm:$0xff]  ;;  %v1585_v8 = vld [vmem:[#allocation8 + $0x16a0] sm:$0xff] }
 0x2ce   :  { %5165 = vmatprep.subr.bf16.mxu1 %v5164_v10  ;;  %v1555_v10 = vld [vmem:[#allocation8 + $0x15b0] sm:$0xff]  ;;  %v1594_v40 = vld [vmem:[#allocation8 + $0x16e8] sm:$0xff]  ;;  %v1593_v47 = vld [vmem:[#allocation8 + $0x16e0] sm:$0xff] }
 0x2cf   :  { %v4928_v56 = vpack.c.bf16 %v1594_v40, %v1586_v55  ;;  %v1610_v34 = vld [vmem:[#allocation8 + $0x1768] sm:$0xff]  ;;  %v1604_v15 = vld [vmem:[#allocation8 + $0x1738] sm:$0xff]  ;;  %v1611_v2 = vld [vmem:[#allocation8 + $0x1770] sm:$0xff] }
 0x2d0   :  { %4911 = vmatpush1.bf16.msra.mxu0 %v4910_v39  ;;  %v1580_v39 = vld [vmem:[#allocation8 + $0x1678] sm:$0xff]  ;;  %v1618_v24 = vld [vmem:[#allocation8 + $0x17a8] sm:$0xff]  ;;  %v1627_v55 = vld [vmem:[#allocation8 + $0x17f0] sm:$0xff] }
 0x2d1   :  { %5167 = vmatpush1.bf16.msra.mxu1 %v5166_v50  ;;  %4913 = vmatprep.subr.bf16.mxu0 %v4912_v44  ;;  %v4922_v50 = vpack.c.bf16 %v1561_v37, %v1553_v31  ;;  %v5178_v44 = vpack.c.bf16 %v1563_v0, %v1555_v10  ;;  %v5180_v4 = vpack.c.bf16 %v1580_v39, %v1572_v53  ;;  %v1601_v37 = vld [vmem:[#allocation8 + $0x1720] sm:$0xff]  ;;  %v1626_v53 = vld [vmem:[#allocation8 + $0x17e8] sm:$0xff]  ;;  %v1620_v39 = vld [vmem:[#allocation8 + $0x17b8] sm:$0xff] }
 0x2d2   :  { %5169 = vmatprep.subr.bf16.mxu1 %v5168_v21  ;;  %v1571_v21 = vld [vmem:[#allocation8 + $0x1630] sm:$0xff]  ;;  %v4932_v31 = vpack.c.bf16 %v1610_v34, %v1602_v19  ;;  %v1609_v10 = vld [vmem:[#allocation8 + $0x1760] sm:$0xff]  ;;  %v1634_v40 = vld [vmem:[#allocation8 + $0x1828] sm:$0xff] }
 0x2d3   :  { %v6506_v19 = vld [vmem:[#allocation8 + $0x18a8] sm:$0xff] }
 0x2d4   :  { %4915 = vmatpush1.bf16.msra.mxu0 %v4914_v57  ;;  %v1596_v57 = vld [vmem:[#allocation8 + $0x16f8] sm:$0xff]  ;;  %v6508_v34 = vld [vmem:[#allocation8 + $0x18e8] sm:$0xff] }
 0x2d5   :  { %5171 = vmatpush1.bf16.msra.mxu1 %v5170_v3  ;;  %4917 = vmatprep.subr.bf16.mxu0 %v4916_v36  ;;  %v4926_v3 = vpack.c.bf16 %v1577_v22, %v1569_v60  ;;  %v5182_v36 = vpack.c.bf16 %v1579_v17, %v1571_v21  ;;  %v5184_v46 = vpack.c.bf16 %v1596_v57, %v1588_v43  ;;  %v1617_v22 = vld [vmem:[#allocation8 + $0x17a0] sm:$0xff]  ;;  %v1642_v43 = vld [vmem:[#allocation8 + $0x1868] sm:$0xff]  ;;  %v1636_v57 = vld [vmem:[#allocation8 + $0x1838] sm:$0xff] }
 0x2d6   :  { %5173 = vmatprep.subr.bf16.mxu1 %v5172_v48  ;;  %v1587_v48 = vld [vmem:[#allocation8 + $0x16b0] sm:$0xff]  ;;  %v4936_v60 = vpack.c.bf16 %v1626_v53, %v1618_v24  ;;  %v1625_v21 = vld [vmem:[#allocation8 + $0x17e0] sm:$0xff]  ;;  %v6528_v24 = vld [vmem:[#allocation8 + $0x1978] sm:$0xff] }
 0x2d7   :  { %v6530_v53 = vld [vmem:[#allocation8 + $0x1920] sm:$0xff] }
 0x2d8   :  { %4919 = vmatpush1.bf16.msra.mxu0 %v4918_v28  ;;  %v1612_v28 = vld [vmem:[#allocation8 + $0x1778] sm:$0xff] }
 0x2d9   :  { %5175 = vmatpush1.bf16.msra.mxu1 %v5174_v30  ;;  %4921 = vmatprep.subr.bf16.mxu0 %v4920_v51  ;;  %v4930_v30 = vpack.c.bf16 %v1593_v47, %v1585_v8  ;;  %v5186_v51 = vpack.c.bf16 %v1595_v54, %v1587_v48  ;;  %v5188_v0 = vpack.c.bf16 %v1612_v28, %v1604_v15  ;;  %v6500_v8 = vld [vmem:[#allocation8 + $0x1860] sm:$0xff]  ;;  %v6504_v54 = vld [vmem:[#allocation8 + $0x1870] sm:$0xff]  ;;  %v6510_v28 = vld [vmem:[#allocation8 + $0x18b8] sm:$0xff] }
 0x2da   :  { %5177 = vmatprep.subr.bf16.mxu1 %v5176_v29  ;;  %v1603_v29 = vld [vmem:[#allocation8 + $0x1730] sm:$0xff]  ;;  %v4940_v48 = vpack.c.bf16 %v1642_v43, %v1634_v40 }
 0x2db   :  { %v6552_v40 = vld [vmem:[#allocation8 + $0x19b0] sm:$0xff] }
 0x2dc   :  { %4923 = vmatpush1.bf16.msra.mxu0 %v4922_v50  ;;  %v1628_v50 = vld [vmem:[#allocation8 + $0x17f8] sm:$0xff]  ;;  %v6554_v43 = vld [vmem:[#allocation8 + $0x19f0] sm:$0xff] }
 0x2dd   :  { %5179 = vmatpush1.bf16.msra.mxu1 %v5178_v44  ;;  %4925 = vmatprep.subr.bf16.mxu0 %v4924_v61  ;;  %v4934_v44 = vpack.c.bf16 %v1609_v10, %v1601_v37  ;;  %v5190_v61 = vpack.c.bf16 %v1611_v2, %v1603_v29  ;;  %v5192_v17 = vpack.c.bf16 %v1628_v50, %v1620_v39  ;;  %v6518_v37 = vld [vmem:[#allocation8 + $0x18b0] sm:$0xff]  ;;  %v6522_v29 = vld [vmem:[#allocation8 + $0x1928] sm:$0xff]  ;;  %v6526_v2 = vld [vmem:[#allocation8 + $0x1938] sm:$0xff] }
 0x2de   :  { %5181 = vmatprep.subr.bf16.mxu1 %v5180_v4  ;;  %v1619_v4 = vld [vmem:[#allocation8 + $0x17b0] sm:$0xff]  ;;  %v6532_v39 = vld [vmem:[#allocation8 + $0x1960] sm:$0xff] }
 0x2df   :  { %v5194_v47 = vpack.c.bf16 %v1627_v55, %v1619_v4  ;;  %v6520_v10 = vld [vmem:[#allocation8 + $0x18f0] sm:$0xff]  ;;  %v6546_v4 = vld [vmem:[#allocation8 + $0x19a0] sm:$0xff] }
 0x2e0   :  { %4927 = vmatpush1.bf16.msra.mxu0 %v4926_v3  ;;  %v1644_v3 = vld [vmem:[#allocation8 + $0x1878] sm:$0xff]  ;;  %v6534_v50 = vld [vmem:[#allocation8 + $0x1930] sm:$0xff] }
 0x2e1   :  { %5183 = vmatpush1.bf16.msra.mxu1 %v5182_v36  ;;  %4929 = vmatprep.subr.bf16.mxu0 %v4928_v56  ;;  %v4938_v36 = vpack.c.bf16 %v1625_v21, %v1617_v22  ;;  %v6498_v56 = vld [vmem:[#allocation8 + $0x1820] sm:$0xff]  ;;  %v5196_v15 = vpack.c.bf16 %v1644_v3, %v1636_v57  ;;  %v6542_v22 = vld [vmem:[#allocation8 + $0x19b8] sm:$0xff]  ;;  %v6556_v57 = vld [vmem:[#allocation8 + $0x1a28] sm:$0xff] }
 0x2e2   :  { %5185 = vmatprep.subr.bf16.mxu1 %v5184_v46  ;;  %v6502_v46 = vld [vmem:[#allocation8 + $0x1830] sm:$0xff]  ;;  %v6544_v21 = vld [vmem:[#allocation8 + $0x19f8] sm:$0xff]  ;;  %v4942_v55 = vpack.c.bf16 %v6500_v8, %v6498_v56  ;;  %v6558_v3 = vld [vmem:[#allocation8 + $0x1a68] sm:$0xff] }
 0x2e3   :  { %v6568_v56 = vld [vmem:[#allocation8 + $0x1a20] sm:$0xff] }
 0x2e4   :  { %4931 = vmatpush1.bf16.msra.mxu0 %v4930_v30  ;;  %v6512_v30 = vld [vmem:[#allocation8 + $0x18f8] sm:$0xff]  ;;  %v6570_v8 = vld [vmem:[#allocation8 + $0x1a60] sm:$0xff] }
 0x2e5   :  { %5187 = vmatpush1.bf16.msra.mxu1 %v5186_v51  ;;  %4933 = vmatprep.subr.bf16.mxu0 %v4932_v31  ;;  %v6514_v51 = vld [vmem:[#allocation8 + $0x18a0] sm:$0xff]  ;;  %v5200_v14 = vpack.c.bf16 %v6512_v30, %v6510_v28  ;;  %v6616_v28 = vld [vmem:[#allocation8 + $0x1ab0] sm:$0xff] }
 0x2e6   :  { %5189 = vmatprep.subr.bf16.mxu1 %v5188_v0  ;;  %v6516_v31 = vld [vmem:[#allocation8 + $0x18e0] sm:$0xff]  ;;  %v6524_v0 = vld [vmem:[#allocation8 + $0x1968] sm:$0xff]  ;;  %7641 = vst [vmem:[#allocation31_spill] sm:$0xff] %v6616_v28  ;;  %v6730_v28 = vld [vmem:[#allocation8 + $0x1cb8] sm:$0xff] }
 0x2e7   :  { %v6612_v30 = vld [vmem:[#allocation8 + $0x1aa0] sm:$0xff] }
 0x2e8   :  { %4935 = vmatpush1.bf16.msra.mxu0 %v4934_v44  ;;  %v6536_v44 = vld [vmem:[#allocation8 + $0x1970] sm:$0xff]  ;;  %7639 = vst [vmem:[#allocation29_spill] sm:$0xff] %v6612_v30  ;;  %v6734_v30 = vld [vmem:[#allocation8 + $0x1ca0] sm:$0xff] }
 0x2e9   :  { %5191 = vmatpush1.bf16.msra.mxu1 %v5190_v61  ;;  %4937 = vmatprep.subr.bf16.mxu0 %v4936_v60  ;;  %v6538_v61 = vld [vmem:[#allocation8 + $0x19a8] sm:$0xff] }
 0x2ea   :  { %5193 = vmatprep.subr.bf16.mxu1 %v5192_v17  ;;  %v6540_v60 = vld [vmem:[#allocation8 + $0x19e8] sm:$0xff]  ;;  %v6548_v17 = vld [vmem:[#allocation8 + $0x19e0] sm:$0xff] }
 0x2ec   :  { %4939 = vmatpush1.bf16.msra.mxu0 %v4938_v36  ;;  %v6560_v36 = vld [vmem:[#allocation8 + $0x1a38] sm:$0xff] }
 0x2ed   :  { %5195 = vmatpush1.bf16.msra.mxu1 %v5194_v47  ;;  %4941 = vmatprep.subr.bf16.mxu0 %v4940_v48  ;;  %v5198_v47 = vpack.c.bf16 %v6504_v54, %v6502_v46  ;;  %v4944_v48 = vpack.c.bf16 %v6508_v34, %v6506_v19  ;;  %v5202_v46 = vpack.c.bf16 %v6520_v10, %v6518_v37  ;;  %v6585_v19 = vld [vmem:[#allocation10] sm:$0xff]  ;;  %v6587_v34 = vld [vmem:[#allocation8 + $0x1aa8] sm:$0xff]  ;;  %v6601_v37 = vld [vmem:[#allocation8 + $0x1ab8] sm:$0xff] }
 0x2ee   :  { %5197 = vmatprep.subr.bf16.mxu1 %v5196_v15  ;;  %v4946_v15 = vpack.c.bf16 %v6516_v31, %v6514_v51  ;;  %v4948_v54 = vpack.c.bf16 %v6524_v0, %v6522_v29  ;;  %7633 = vst [vmem:[#allocation22_spill] sm:$0xff] %v6585_v19  ;;  %7634 = vst [vmem:[#allocation21_spill] sm:$0xff] %v6587_v34  ;;  %v6599_v31 = vld [vmem:[#allocation11] sm:$0xff]  ;;  %v6603_v10 = vld [vmem:[#allocation8 + $0x1af8] sm:$0xff]  ;;  %v6682_v34 = vrot.slane %v6585_v19, %v7658_v45 }
 0x2ef   :  { %3122 = vmatmul.mubr.f32.vlgmr.msra.gmra.mrb[48].mxu0 %v6242_v63  ;;  %7636 = vst [vmem:[#allocation23_spill] sm:$0xff] %v6599_v31  ;;  %7637 = vst [vmem:[#allocation26_spill] sm:$0xff] %v6601_v37  ;;  %v6614_v51 = vld [vmem:[#allocation8 + $0x1ae0] sm:$0xff]  ;;  %v6626_v0 = vld [vmem:[#allocation8 + $0x1b28] sm:$0xff] }
 0x2f0   :  { %3574 = vmatmul.mubr.f32.vlgmr.msra.gmra.mrb[48].mxu1 %v6242_v63  ;;  %3127 = vmatprep.mubr.f32.mxu0 %v6244_v59  ;;  %7638 = vst [vmem:[#allocation25_spill] sm:$0xff] %v6603_v10  ;;  %7640 = vst [vmem:[#allocation28_spill] sm:$0xff] %v6614_v51  ;;  %v6628_v63 = vld [vmem:[#allocation8 + $0x1b68] sm:$0xff]  ;;  %v6708_v37 = vld [vmem:[#allocation8 + $0x1c60] sm:$0xff] }
 0x2f1   :  { %4943 = vmatpush1.bf16.msra.mxu0 %v4942_v55  ;;  %3579 = vmatprep.mubr.f32.mxu1 %v6244_v59  ;;  %7643 = vst [vmem:[#allocation33_spill] sm:$0xff] %v6626_v0  ;;  %v7646_v55 = vld [vmem:[#allocation17_spill] sm:$0xff]  ;;  %v6643_v59 = vld [vmem:[#allocation8 + $0x1b20] sm:$0xff]  ;;  %7659 = vst [vmem:[#allocation50_spill] sm:$0xff] %v6682_v34 }
 0x2f2   :  { %5199 = vmatpush1.bf16.msra.mxu1 %v5198_v47  ;;  %4945 = vmatprep.subr.bf16.mxu0 %v4944_v48  ;;  %v6641_v29 = vrot.slane %v6585_v19, %v7646_v55  ;;  %7647 = vst [vmem:[#allocation34_spill] sm:$0xff] %v6643_v59  ;;  %v7653_v48 = vld [vmem:[#allocation18_spill] sm:$0xff]  ;;  %v6678_v20 = vrot.slane %v6599_v31, %v7646_v55  ;;  %v6710_v10 = vld [vmem:[#allocation8 + $0x1c30] sm:$0xff]  ;;  %v6736_v51 = vld [vmem:[#allocation8 + $0x1ce0] sm:$0xff] }
 0x2f3   :  { %3128 = vmatmul.mubr.f32.gmra.mrb[50].mxu0 %v6248_v62  ;;  %5201 = vmatprep.subr.bf16.mxu1 %v5200_v14  ;;  %v7651_v14 = vld [vmem:[#allocation38_spill] sm:$0xff]  ;;  %v6659_v32 = vrot.slane %v6585_v19, %v7653_v48  ;;  %v6712_v34 = vld [vmem:[#allocation8 + $0x1c70] sm:$0xff]  ;;  %v6762_v0 = vld [vmem:[#allocation8 + $0x1d60] sm:$0xff] }
 0x2f4   :  { %3580 = vmatmul.mubr.f32.gmra.mrb[50].mxu1 %v6248_v62  ;;  %3133 = vmatprep.mubr.f32.mxu0 %v6254_v16  ;;  %v6655_v47 = vrot.slane %v6585_v19, %v7651_v14  ;;  %v6669_v62 = vld [vmem:[#allocation8 + $0x1bf8] sm:$0xff]  ;;  %7657 = vst [vmem:[#allocation48_spill] sm:$0xff] %v6678_v20  ;;  %v6700_v55 = vrot.slane %v6599_v31, %v7651_v14  ;;  %v6706_v20 = vld [vmem:[#allocation8 + $0x1c20] sm:$0xff]  ;;  %v6778_v59 = vld [vmem:[#allocation8 + $0x1da8] sm:$0xff] }
 0x2f5   :  { %7654 = vst [vmem:[#allocation45_spill] sm:$0xff] %v6659_v32  ;;  %4947 = vmatpush1.bf16.msra.mxu0 %v4946_v15  ;;  %3585 = vmatprep.mubr.f32.mxu1 %v6254_v16  ;;  %v6690_v32 = vld [vmem:[#allocation8 + $0x1c28] sm:$0xff]  ;;  %v6694_v16 = vld [vmem:[#allocation8 + $0x1c38] sm:$0xff]  ;;  %v7661_v14 = vpack.c.bf16 %v6528_v24, %v6526_v2  ;;  %v6724_v19 = vrot.slane %v6599_v31, %v7653_v48  ;;  %v6738_v2 = vld [vmem:[#allocation8 + $0x1cb0] sm:$0xff] }
 0x2f6   :  { %7652 = vst [vmem:[#allocation44_spill] sm:$0xff] %v6655_v47  ;;  %v6692_v15 = vld [vmem:[#allocation8 + $0x1c68] sm:$0xff]  ;;  %v6696_v47 = vld [vmem:[#allocation8 + $0x1c78] sm:$0xff]  ;;  %5203 = vmatpush1.bf16.msra.mxu1 %v5202_v46  ;;  %4949 = vmatprep.subr.bf16.mxu0 %v4948_v54  ;;  %7660 = vst [vmem:[#allocation52_spill] sm:$0xff] %v6700_v55  ;;  %v6746_v48 = vrot.slane %v6599_v31, %v7658_v45  ;;  %v7665_v45 = vpack.c.bf16 %v6532_v39, %v6530_v53 }
 0x2f7   :  { %v6714_v46 = vld [vmem:[#allocation8 + $0x1ca8] sm:$0xff]  ;;  %3134 = vmatmul.mubr.f32.gmra.mrb[52].mxu0 %v6260_v49  ;;  %5205 = vmatprep.subr.bf16.mxu1 %v7661_v14  ;;  %7662 = vst [vmem:[#allocation17_spill] sm:$0xff] %v6724_v19  ;;  %7663 = vst [vmem:[#allocation38_spill] sm:$0xff] %v6738_v2  ;;  %v6740_v24 = vld [vmem:[#allocation8 + $0x1cf0] sm:$0xff]  ;;  %v7670_v39 = vpack.c.bf16 %v6540_v60, %v6538_v61 }
 0x2f8   :  { %v6716_v54 = vld [vmem:[#allocation8 + $0x1ce8] sm:$0xff]  ;;  %3586 = vmatmul.mubr.f32.gmra.mrb[52].mxu1 %v6260_v49  ;;  %3139 = vmatprep.mubr.f32.mxu0 %v6266_v9  ;;  %v6758_v19 = vld [vmem:[#allocation8 + $0x1d78] sm:$0xff]  ;;  %v6760_v49 = vld [vmem:[#allocation8 + $0x1d20] sm:$0xff]  ;;  %7666 = vst [vmem:[#allocation27_spill] sm:$0xff] %v6778_v59 }
 0x2f9   :  { %7664 = vst [vmem:[#allocation18_spill] sm:$0xff] %v6760_v49  ;;  %4951 = vmatpush1.bf16.msra.mxu0 %v7665_v45  ;;  %3591 = vmatprep.mubr.f32.mxu1 %v6266_v9  ;;  %v6782_v53 = vld [vmem:[#allocation8 + $0x1db8] sm:$0xff]  ;;  %v7669_v9 = vpack.c.bf16 %v6536_v44, %v6534_v50  ;;  %v7674_v50 = vpack.c.bf16 %v6544_v21, %v6542_v22  ;;  %v6816_v14 = vld [vmem:[#allocation8 + $0x1e28] sm:$0xff]  ;;  %v6842_v31 = vld [vmem:[#allocation8 + $0x1e20] sm:$0xff] }
 0x2fa   :  { %7668 = vst [vmem:[#allocation73_spill] sm:$0xff] %v6782_v53  ;;  %4953 = vmatprep.subr.bf16.mxu0 %v7670_v39  ;;  %v6796_v55 = vld [vmem:[#allocation8 + $0x1df8] sm:$0xff]  ;;  %v6814_v39 = vld [vmem:[#allocation8 + $0x1df0] sm:$0xff]  ;;  %7677 = vst [vmem:[#allocation79_spill] sm:$0xff] %v6816_v14 }
 0x2fb   :  { %5207 = vmatpush1.bf16.msra.mxu1 %v7669_v9  ;;  %7671 = vst [vmem:[#allocation74_spill] sm:$0xff] %v6796_v55  ;;  %3140 = vmatmul.mubr.f32.gmra.mrb[54].mxu0 %v6272_v33  ;;  %v6812_v9 = vld [vmem:[#allocation8 + $0x1db0] sm:$0xff]  ;;  %7676 = vst [vmem:[#allocation78_spill] sm:$0xff] %v6814_v39  ;;  %v6826_v60 = vld [vmem:[#allocation8 + $0x1e68] sm:$0xff] }
 0x2fc   :  { %5209 = vmatprep.subr.bf16.mxu1 %v7674_v50  ;;  %7675 = vst [vmem:[#allocation77_spill] sm:$0xff] %v6812_v9  ;;  %3592 = vmatmul.mubr.f32.gmra.mrb[54].mxu1 %v6272_v33  ;;  %7678 = vst [vmem:[#allocation80_spill] sm:$0xff] %v6826_v60  ;;  %v6828_v61 = vld [vmem:[#allocation8 + $0x1e38] sm:$0xff]  ;;  %v7681_v33 = vpack.c.bf16 %v6548_v17, %v6546_v4  ;;  %v6844_v45 = vld [vmem:[#allocation8 + $0x1e60] sm:$0xff]  ;;  %v7685_v4 = vpack.c.bf16 %v6554_v43, %v6552_v40 }
 0x2fd   :  { %3145 = vmatprep.mubr.f32.mxu0 %v6281_v6  ;;  %7679 = vst [vmem:[#allocation81_spill] sm:$0xff] %v6828_v61  ;;  %v6830_v44 = vld [vmem:[#allocation8 + $0x1e78] sm:$0xff]  ;;  %3597 = vmatprep.mubr.f32.mxu1 %v6281_v6  ;;  %7682 = vst [vmem:[#allocation83_spill] sm:$0xff] %v6842_v31  ;;  %v6846_v2 = vld [vmem:[#allocation8 + $0x1e30] sm:$0xff]  ;;  %v7686_v6 = vpack.c.bf16 %v6558_v3, %v6556_v57  ;;  %v7690_v40 = vpack.c.bf16 %v6562_v41, %v6560_v36 }
 0x2fe   :  { %7680 = vst [vmem:[#allocation82_spill] sm:$0xff] %v6830_v44  ;;  %4955 = vmatpush1.bf16.msra.mxu0 %v7681_v33  ;;  %7683 = vst [vmem:[#allocation84_spill] sm:$0xff] %v6844_v45  ;;  %v6860_v21 = vld [vmem:[#allocation8 + $0x1e70] sm:$0xff]  ;;  %v6862_v22 = vld [vmem:[#allocation8 + $0x1ea8] sm:$0xff] }
 0x2ff   :  { %7684 = vst [vmem:[#allocation85_spill] sm:$0xff] %v6846_v2  ;;  %5211 = vmatpush1.bf16.msra.mxu1 %v7685_v4  ;;  %4957 = vmatprep.subr.bf16.mxu0 %v7686_v6  ;;  %7687 = vst [vmem:[#allocation86_spill] sm:$0xff] %v6860_v21  ;;  %v6864_v49 = vld [vmem:[#allocation8 + $0x1ee8] sm:$0xff]  ;;  %v2332_v43 = vpop.f32.mrb[32].mxu0  ;;  %v6876_v6 = vld [vmem:[#allocation8 + $0x1eb8] sm:$0xff] }
 0x300   :  { %7688 = vst [vmem:[#allocation87_spill] sm:$0xff] %v6862_v22  ;;  %7689 = vst [vmem:[#allocation88_spill] sm:$0xff] %v6864_v49  ;;  %3146 = vmatmul.mubr.f32.gmra.mrb[56].mxu0 %v6287_v18  ;;  %5213 = vmatprep.subr.bf16.mxu1 %v7690_v40  ;;  %v6878_v50 = vld [vmem:[#allocation8 + $0x1ef8] sm:$0xff]  ;;  %v6880_v33 = vld [vmem:[#allocation8 + $0x1ea0] sm:$0xff]  ;;  %v5260_v41 = vadd.f32 %v2332_v43, %v6641_v29  ;;  %v2784_v36 = vpop.f32.mrb[32].mxu1  ;;  %v2334_v40 = vpop.f32.mrb[33].mxu0 }
 0x301   :  { %7691 = vst [vmem:[#allocation89_spill] sm:$0xff] %v6876_v6  ;;  %7692 = vst [vmem:[#allocation90_spill] sm:$0xff] %v6878_v50  ;;  %3598 = vmatmul.mubr.f32.gmra.mrb[56].mxu1 %v6287_v18  ;;  %3151 = vmatprep.mubr.f32.mxu0 %v6297_v5  ;;  %v6889_v57 = vld [vmem:[#allocation8 + $0x1ee0] sm:$0xff]  ;;  %v6891_v17 = vld [vmem:[#allocation8 + $0x1eb0] sm:$0xff]  ;;  %v7697_v18 = vpack.c.bf16 %v6570_v8, %v6568_v56  ;;  %v2786_v3 = vpop.f32.mrb[33].mxu1 }
 0x302   :  { %7693 = vst [vmem:[#allocation91_spill] sm:$0xff] %v6880_v33  ;;  %7694 = vst [vmem:[#allocation92_spill] sm:$0xff] %v6889_v57  ;;  %v6893_v14 = vld [vmem:[#allocation8 + $0x1ef0] sm:$0xff]  ;;  %3603 = vmatprep.mubr.f32.mxu1 %v6297_v5  ;;  %v7698_v43 = vld [vmem:[#allocation44_spill] sm:$0xff]  ;;  %v3735_v56 = vmul.f32 0.2, %v5260_v41 }
 0x303   :  { %7695 = vst [vmem:[#allocation93_spill] sm:$0xff] %v6891_v17  ;;  %7696 = vst [vmem:[#allocation94_spill] sm:$0xff] %v6893_v14  ;;  %4959 = vmatpush1.bf16.msra.mxu0 %v7697_v18  ;;  %v5276_v60 = vadd.f32 %v2784_v36, %v7698_v43  ;;  %v7699_v9 = vld [vmem:[#allocation45_spill] sm:$0xff]  ;;  %v6903_v31 = vld [vmem:[#allocation8 + $0x1f28] sm:$0xff] }
 0x304   :  { %v5261_v39 = vadd.f32 %v2334_v40, %v7699_v9  ;;  %7700 = vst [vmem:[#allocation44_spill] sm:$0xff] %v6903_v31  ;;  %v6905_v45 = vld [vmem:[#allocation8 + $0x1f68] sm:$0xff]  ;;  %v7703_v44 = vld [vmem:[#allocation19_spill] sm:$0xff]  ;;  %v7705_v8 = vld [vmem:[#allocation50_spill] sm:$0xff]  ;;  %v2790_v6 = vpop.f32.mrb[34].mxu1 }
 0x305   :  { %7701 = vst [vmem:[#allocation45_spill] sm:$0xff] %v6905_v45  ;;  %v7702_v61 = vld [vmem:[#allocation20_spill] sm:$0xff]  ;;  %v5277_v18 = vadd.f32 %v2786_v3, %v7705_v8  ;;  %v7707_v12 = vld [vmem:[#allocation21_spill] sm:$0xff]  ;;  %v3737_v2 = vmul.f32 0.2, %v5276_v60  ;;  %v7709_v53 = vld [vmem:[#allocation55_spill] sm:$0xff] }
 0x306   :  { %v7704_v42 = vpack.c.bf16 %v7702_v61, %v7703_v44  ;;  %v7706_v5 = vld [vmem:[#allocation24_spill] sm:$0xff]  ;;  %v3736_v21 = vmul.f32 0.2, %v5261_v39  ;;  %3152 = vmatmul.mubr.f32.gmra.mrb[58].mxu0 %v7709_v53  ;;  %v7710_v55 = vld [vmem:[#allocation25_spill] sm:$0xff]  ;;  %v7711_v44 = vld [vmem:[#allocation26_spill] sm:$0xff]  ;;  %v2338_v61 = vpop.f32.mrb[34].mxu0  ;;  %3604 = vmatmul.mubr.f32.gmra.mrb[58].mxu1 %v7709_v53 }
 0x307   :  { %v7708_v36 = vpack.c.bf16 %v7706_v5, %v7707_v12  ;;  %v3799_v5 = vmax.f32 %v5260_v41, %v3735_v56  ;;  %v7713_v4 = vld [vmem:[#allocation56_spill] sm:$0xff]  ;;  %v5262_v40 = vadd.f32 %v2338_v61, %v6641_v29  ;;  %v2340_v50 = vpop.f32.mrb[35].mxu0  ;;  %v7715_v3 = vld [vmem:[#allocation29_spill] sm:$0xff]  ;;  %v5278_v41 = vadd.f32 %v2790_v6, %v7698_v43  ;;  %v2792_v53 = vpop.f32.mrb[35].mxu1  ;;  %v7718_v61 = vld [vmem:[#allocation30_spill] sm:$0xff] }
 0x308   :  { %5215 = vmatpush1.bf16.msra.mxu1 %v7704_v42  ;;  %v7712_v42 = vpack.c.bf16 %v7710_v55, %v7711_v44  ;;  %3157 = vmatprep.mubr.f32.mxu0 %v7713_v4  ;;  %v3801_v44 = vmax.f32 %v5276_v60, %v3737_v2  ;;  %v7714_v22 = vld [vmem:[#allocation28_spill] sm:$0xff]  ;;  %v7719_v14 = vld [vmem:[#allocation31_spill] sm:$0xff]  ;;  %v5263_v2 = vadd.f32 %v2340_v50, %v7699_v9  ;;  %v7721_v60 = vld [vmem:[#allocation33_spill] sm:$0xff] }
 0x309   :  { %4961 = vmatprep.subr.bf16.mxu0 %v7708_v36  ;;  %v3738_v36 = vmul.f32 0.2, %v5277_v18  ;;  %v7716_v33 = vpack.c.bf16 %v7714_v22, %v7715_v3  ;;  %3609 = vmatprep.mubr.f32.mxu1 %v7713_v4  ;;  %v7717_v56 = vld [vmem:[#allocation48_spill] sm:$0xff]  ;;  %v7720_v57 = vpack.c.bf16 %v7718_v61, %v7719_v14  ;;  %v3743_v49 = vmul.f32 0.2, %v5262_v40  ;;  %v7731_v59 = vld [vmem:[#allocation34_spill] sm:$0xff] }
 0x30a   :  { %5217 = vmatprep.subr.bf16.mxu1 %v7712_v42  ;;  %v3800_v42 = vmax.f32 %v5261_v39, %v3736_v21  ;;  %v3905_v12 = vmul.f32 %v7717_v56, %v3799_v5  ;;  %v7722_v39 = vpack.c.bf16 %v6628_v63, %v7721_v60  ;;  %v7723_v22 = vld [vmem:[#allocation52_spill] sm:$0xff]  ;;  %v3745_v6 = vmul.f32 0.2, %v5278_v41  ;;  %v7725_v5 = vld [vmem:[#allocation57_spill] sm:$0xff]  ;;  %v7729_v63 = vld [vmem:[#allocation58_spill] sm:$0xff] }
 0x30b   :  { %4963 = vmatpush1.bf16.msra.mxu0 %v7716_v33  ;;  %v3802_v17 = vmax.f32 %v5277_v18, %v3738_v36  ;;  %v3907_v21 = vmul.f32 %v7723_v22, %v3801_v44  ;;  %v7724_v33 = vld [vmem:[#allocation17_spill] sm:$0xff]  ;;  %v5279_v3 = vadd.f32 %v2792_v53, %v7705_v8  ;;  %v7726_v18 = vld [vmem:[#allocation35_spill] sm:$0xff]  ;;  %v7727_v36 = vld [vmem:[#allocation32_spill] sm:$0xff]  ;;  %v3807_v61 = vmax.f32 %v5262_v40, %v3743_v49 }
 0x30c   :  { %5219 = vmatpush1.bf16.msra.mxu1 %v7720_v57  ;;  %4965 = vmatprep.subr.bf16.mxu0 %v7722_v39  ;;  %v3906_v4 = vmul.f32 %v7724_v33, %v3800_v42  ;;  %v7728_v14 = vpack.c.bf16 %v7726_v18, %v7727_v36  ;;  %v2344_v57 = vpop.f32.mrb[36].mxu0  ;;  %v3744_v55 = vmul.f32 0.2, %v5263_v2  ;;  %v2796_v42 = vpop.f32.mrb[36].mxu1  ;;  %v3809_v39 = vmax.f32 %v5278_v41, %v3745_v6  ;;  %v7730_v45 = vld [vmem:[#allocation36_spill] sm:$0xff]  ;;  %v7733_v36 = vld [vmem:[#allocation43_spill] sm:$0xff] }
 0x30d   :  { %3158 = vmatmul.mubr.f32.gmra.mrb[60].mxu0 %v7725_v5  ;;  %v3908_v50 = vmul.f32 %v6746_v48, %v3802_v17  ;;  %3610 = vmatmul.mubr.f32.gmra.mrb[60].mxu1 %v7725_v5  ;;  %v5264_v44 = vadd.f32 %v2344_v57, %v6641_v29  ;;  %v2346_v60 = vpop.f32.mrb[37].mxu0  ;;  %v3746_v31 = vmul.f32 0.2, %v5279_v3  ;;  %v7732_v18 = vpack.c.bf16 %v7730_v45, %v7731_v59  ;;  %v2798_v17 = vpop.f32.mrb[37].mxu1 }
 0x30e   :  { %5221 = vmatprep.subr.bf16.mxu1 %v7728_v14  ;;  %3163 = vmatprep.mubr.f32.mxu0 %v7729_v63  ;;  %v3969_v53 = vadd.f32 %v3906_v4, %v3905_v12  ;;  %v5280_v49 = vadd.f32 %v2796_v42, %v7698_v43  ;;  %v3913_v40 = vmul.f32 %v7717_v56, %v3807_v61  ;;  %v7734_v14 = vld [vmem:[#allocation42_spill] sm:$0xff] }
 0x30f   :  { %4967 = vmatpush1.bf16.msra.mxu0 %v7732_v18  ;;  %3615 = vmatprep.mubr.f32.mxu1 %v7729_v63  ;;  %v3808_v5 = vmax.f32 %v5263_v2, %v3744_v55  ;;  %v7735_v57 = vpack.c.bf16 %v7733_v36, %v7734_v14  ;;  %v3751_v23 = vmul.f32 0.2, %v5264_v44  ;;  %v5265_v12 = vadd.f32 %v2346_v60, %v7699_v9  ;;  %v7737_v63 = vld [vmem:[#allocation59_spill] sm:$0xff]  ;;  %v2350_v2 = vpop.f32.mrb[38].mxu0 }
 0x310   :  { %v7736_v41 = vpack.c.bf16 %v6665_v52, %v6663_v1  ;;  %v3970_v59 = vadd.f32 %v3969_v53, %v3907_v21  ;;  %v3915_v45 = vmul.f32 %v7723_v22, %v3809_v39  ;;  %v3810_v4 = vmax.f32 %v5279_v3, %v3746_v31  ;;  %v7739_v52 = vld [vmem:[#allocation60_spill] sm:$0xff]  ;;  %v2802_v1 = vpop.f32.mrb[38].mxu1  ;;  %v2352_v31 = vpop.f32.mrb[39].mxu0 }
 0x311   :  { %5223 = vmatpush1.bf16.msra.mxu1 %v7735_v57  ;;  %v3753_v6 = vmul.f32 0.2, %v5280_v49  ;;  %3164 = vmatmul.mubr.f32.gmra.mrb[62].mxu0 %v7737_v63  ;;  %v7738_v55 = vpack.c.bf16 %v6669_v62, %v6667_v26  ;;  %v3914_v61 = vmul.f32 %v7724_v33, %v3808_v5  ;;  %v3815_v42 = vmax.f32 %v5264_v44, %v3751_v23  ;;  %v7740_v26 = vld [vmem:[#allocation47_spill] sm:$0xff]  ;;  %v7741_v62 = vld [vmem:[#allocation46_spill] sm:$0xff]  ;;  %v2804_v23 = vpop.f32.mrb[39].mxu1 }
 0x312   :  { %4969 = vmatprep.subr.bf16.mxu0 %v7736_v41  ;;  %v3752_v60 = vmul.f32 0.2, %v5265_v12  ;;  %v5281_v18 = vadd.f32 %v2798_v17, %v7705_v8  ;;  %3616 = vmatmul.mubr.f32.gmra.mrb[62].mxu1 %v7737_v63  ;;  %v6977_v21 = vadd.f32 %v3970_v59, %v3908_v50  ;;  %v3916_v3 = vmul.f32 %v6746_v48, %v3810_v4  ;;  %v2356_v59 = vpop.f32.mrb[40].mxu0 }
 0x313   :  { %5225 = vmatprep.subr.bf16.mxu1 %v7738_v55  ;;  %3234 = vmatprep.mubr.f32.mxu0 %v7739_v52  ;;  %v3817_v53 = vmax.f32 %v5280_v49, %v3753_v6  ;;  %v7742_v39 = vpack.c.bf16 %v7740_v26, %v7741_v62  ;;  %v3978_v44 = vadd.f32 %v3914_v61, %v3913_v40  ;;  %v2358_v6 = vpop.f32.mrb[41].mxu0 }
 0x314   :  { %3686 = vmatprep.mubr.f32.mxu1 %v7739_v52  ;;  %v3921_v17 = vmul.f32 %v7717_v56, %v3815_v42  ;;  %v3816_v5 = vmax.f32 %v5265_v12, %v3752_v60  ;;  %v3754_v36 = vmul.f32 0.2, %v5281_v18  ;;  %v7743_v14 = vpack.c.bf16 %v6688_v7, %v6686_v13  ;;  %v2362_v26 = vpop.f32.mrb[42].mxu0 }
 0x315   :  { %4971 = vmatpush1.bf16.msra.mxu0 %v7742_v39  ;;  %v7744_v50 = vpack.c.bf16 %v6692_v15, %v6690_v32  ;;  %v3923_v49 = vmul.f32 %v7723_v22, %v3817_v53  ;;  %v5266_v57 = vadd.f32 %v2350_v2, %v6641_v29  ;;  %v5282_v41 = vadd.f32 %v2802_v1, %v7698_v43  ;;  %v2808_v15 = vpop.f32.mrb[40].mxu1 }
 0x316   :  { %5227 = vmatpush1.bf16.msra.mxu1 %v7743_v14  ;;  %v5267_v40 = vadd.f32 %v2352_v31, %v7699_v9  ;;  %v7745_v12 = vpack.c.bf16 %v6696_v47, %v6694_v16  ;;  %v3979_v4 = vadd.f32 %v3978_v44, %v3915_v45  ;;  %v3922_v13 = vmul.f32 %v7724_v33, %v3816_v5  ;;  %v2810_v52 = vpop.f32.mrb[41].mxu1  ;;  %v2364_v44 = vpop.f32.mrb[43].mxu0 }
 0x317   :  { %4973 = vmatprep.subr.bf16.mxu0 %v7744_v50  ;;  %v3818_v7 = vmax.f32 %v5281_v18, %v3754_v36  ;;  %v5283_v32 = vadd.f32 %v2804_v23, %v7705_v8  ;;  %v3759_v63 = vmul.f32 0.2, %v5266_v57  ;;  %v3761_v55 = vmul.f32 0.2, %v5282_v41 }
 0x318   :  { %5229 = vmatprep.subr.bf16.mxu1 %v7745_v12  ;;  %v3760_v2 = vmul.f32 0.2, %v5267_v40  ;;  %v7746_v61 = vpack.c.bf16 %v6708_v37, %v6706_v20  ;;  %v5268_v42 = vadd.f32 %v2356_v59, %v6641_v29  ;;  %v7004_v47 = vadd.f32 %v3979_v4, %v3916_v3 }
 0x319   :  { %v3987_v16 = vadd.f32 %v3922_v13, %v3921_v17  ;;  %v3924_v45 = vmul.f32 %v6746_v48, %v3818_v7  ;;  %v3762_v60 = vmul.f32 0.2, %v5283_v32  ;;  %v7747_v18 = vpack.c.bf16 %v6712_v34, %v6710_v10  ;;  %v2814_v10 = vpop.f32.mrb[42].mxu1  ;;  %v2368_v13 = vpop.f32.mrb[44].mxu0 }
 0x31a   :  { %4975 = vmatpush1.bf16.msra.mxu0 %v7746_v61  ;;  %v7748_v1 = vpack.c.bf16 %v6716_v54, %v6714_v46  ;;  %v3823_v31 = vmax.f32 %v5266_v57, %v3759_v63  ;;  %v3825_v20 = vmax.f32 %v5282_v41, %v3761_v55  ;;  %v3824_v37 = vmax.f32 %v5267_v40, %v3760_v2  ;;  %v7751_v57 = vld [vmem:[#allocation38_spill] sm:$0xff] }
 0x31b   :  { %5231 = vmatpush1.bf16.msra.mxu1 %v7747_v18  ;;  %v3767_v53 = vmul.f32 0.2, %v5268_v42  ;;  %v7749_v3 = vpack.c.bf16 %v6732_v27, %v6730_v28  ;;  %v3988_v62 = vadd.f32 %v3987_v16, %v3923_v49  ;;  %v3826_v39 = vmax.f32 %v5283_v32, %v3762_v60  ;;  %v2816_v28 = vpop.f32.mrb[43].mxu1  ;;  %v7755_v61 = vld [vmem:[#allocation18_spill] sm:$0xff] }
 0x31c   :  { %4977 = vmatprep.subr.bf16.mxu0 %v7748_v1  ;;  %v5284_v23 = vadd.f32 %v2808_v15, %v7698_v43  ;;  %v5269_v34 = vadd.f32 %v2358_v6, %v7699_v9  ;;  %v3929_v46 = vmul.f32 %v7717_v56, %v3823_v31  ;;  %v3931_v54 = vmul.f32 %v7723_v22, %v3825_v20  ;;  %v7759_v1 = vld [vmem:[#allocation27_spill] sm:$0xff]  ;;  %v7053_v20 = vld [vmem:[#allocation8 + $0x1f38] sm:$0xff] }
 0x31d   :  { %5233 = vmatprep.subr.bf16.mxu1 %v7749_v3  ;;  %v3930_v17 = vmul.f32 %v7724_v33, %v3824_v37  ;;  %v3831_v5 = vmax.f32 %v5268_v42, %v3767_v53  ;;  %v7750_v27 = vpack.c.bf16 %v6736_v51, %v6734_v30  ;;  %v7024_v36 = vadd.f32 %v3988_v62, %v3924_v45  ;;  %v7055_v37 = vld [vmem:[#allocation8 + $0x1f78] sm:$0xff] }
 0x31e   :  { %v3932_v14 = vmul.f32 %v6746_v48, %v3826_v39  ;;  %v3769_v50 = vmul.f32 0.2, %v5284_v23  ;;  %v3768_v49 = vmul.f32 0.2, %v5269_v34  ;;  %v7752_v41 = vpack.c.bf16 %v6740_v24, %v7751_v57  ;;  %v7761_v62 = vld [vmem:[#allocation74_spill] sm:$0xff]  ;;  %v7762_v39 = vld [vmem:[#allocation73_spill] sm:$0xff] }
 0x31f   :  { %4979 = vmatpush1.bf16.msra.mxu0 %v7750_v27  ;;  %v7753_v40 = vpack.c.bf16 %v6754_v35, %v6752_v11  ;;  %v3996_v12 = vadd.f32 %v3930_v17, %v3929_v46  ;;  %v3937_v59 = vmul.f32 %v7717_v56, %v3831_v5  ;;  %v5285_v30 = vadd.f32 %v2810_v52, %v7705_v8  ;;  %v2820_v35 = vpop.f32.mrb[44].mxu1  ;;  %v2370_v11 = vpop.f32.mrb[45].mxu0  ;;  %v7758_v52 = vld [vmem:[#allocation72_spill] sm:$0xff] }
 0x320   :  { %5235 = vmatpush1.bf16.msra.mxu1 %v7752_v41  ;;  %v5270_v51 = vadd.f32 %v2362_v26, %v6641_v29  ;;  %v7754_v4 = vpack.c.bf16 %v6758_v19, %v6756_v58  ;;  %v3833_v7 = vmax.f32 %v5284_v23, %v3769_v50  ;;  %v3832_v32 = vmax.f32 %v5269_v34, %v3768_v49  ;;  %v2822_v58 = vpop.f32.mrb[45].mxu1  ;;  %v2374_v34 = vpop.f32.mrb[46].mxu0 }
 0x321   :  { %4981 = vmatprep.subr.bf16.mxu0 %v7753_v40  ;;  %v5286_v24 = vadd.f32 %v2814_v10, %v7698_v43  ;;  %v5271_v15 = vadd.f32 %v2364_v44, %v7699_v9  ;;  %v3997_v6 = vadd.f32 %v3996_v12, %v3931_v54  ;;  %v3770_v63 = vmul.f32 0.2, %v5285_v30  ;;  %v2826_v46 = vpop.f32.mrb[46].mxu1  ;;  %v2376_v54 = vpop.f32.mrb[47].mxu0 }
 0x322   :  { %5237 = vmatprep.subr.bf16.mxu1 %v7754_v4  ;;  %v3775_v55 = vmul.f32 0.2, %v5270_v51  ;;  %v5287_v2 = vadd.f32 %v2816_v28, %v7705_v8  ;;  %v7756_v42 = vpack.c.bf16 %v6762_v0, %v7755_v61  ;;  %v3939_v19 = vmul.f32 %v7723_v22, %v3833_v7  ;;  %v7764_v28 = vld [vmem:[#allocation76_spill] sm:$0xff]  ;;  %v2828_v49 = vpop.f32.mrb[47].mxu1  ;;  %v7771_v7 = vld [vmem:[#allocation79_spill] sm:$0xff]  ;;  %v7773_v61 = vld [vmem:[#allocation82_spill] sm:$0xff] }
 0x323   :  { %v3938_v16 = vmul.f32 %v7724_v33, %v3832_v32  ;;  %v3777_v45 = vmul.f32 0.2, %v5286_v24  ;;  %v3776_v60 = vmul.f32 0.2, %v5271_v15  ;;  %v7757_v18 = vpack.c.bf16 %v6776_v38, %v6774_v25 }
 0x324   :  { %4983 = vmatpush1.bf16.msra.mxu0 %v7756_v42  ;;  %v7760_v31 = vpack.c.bf16 %v7758_v52, %v7759_v1  ;;  %v7057_v0 = vadd.f32 %v3997_v6, %v3932_v14  ;;  %v3834_v53 = vmax.f32 %v5285_v30, %v3770_v63  ;;  %v3839_v3 = vmax.f32 %v5270_v51, %v3775_v55  ;;  %v7765_v14 = vld [vmem:[#allocation75_spill] sm:$0xff]  ;;  %v7767_v30 = vld [vmem:[#allocation78_spill] sm:$0xff]  ;;  %v7768_v51 = vld [vmem:[#allocation77_spill] sm:$0xff] }
 0x325   :  { %5239 = vmatpush1.bf16.msra.mxu1 %v7757_v18  ;;  %v3778_v26 = vmul.f32 0.2, %v5287_v2  ;;  %v7763_v23 = vpack.c.bf16 %v7761_v62, %v7762_v39  ;;  %v4005_v25 = vadd.f32 %v3938_v16, %v3937_v59  ;;  %v3841_v38 = vmax.f32 %v5286_v24, %v3777_v45  ;;  %v1857_v24 = vld [vmem:[#allocation8 + $0x1f20] sm:$0xff]  ;;  %v7779_v39 = vld [vmem:[#allocation86_spill] sm:$0xff] }
 0x326   :  { %4985 = vmatprep.subr.bf16.mxu0 %v7760_v31  ;;  %v3840_v10 = vmax.f32 %v5271_v15, %v3776_v60  ;;  %v5272_v44 = vadd.f32 %v2368_v13, %v6641_v29  ;;  %v3940_v17 = vmul.f32 %v6746_v48, %v3834_v53  ;;  %v3945_v5 = vmul.f32 %v7717_v56, %v3839_v3  ;;  %v7770_v13 = vld [vmem:[#allocation80_spill] sm:$0xff]  ;;  %v1865_v15 = vld [vmem:[#allocation8 + $0x1f60] sm:$0xff] }
 0x327   :  { %5241 = vmatprep.subr.bf16.mxu1 %v7763_v23  ;;  %v5288_v27 = vadd.f32 %v2820_v35, %v7698_v43  ;;  %v7766_v50 = vpack.c.bf16 %v7764_v28, %v7765_v14  ;;  %v5252_v57 = vpack.c.bf16 %v7055_v37, %v7053_v20  ;;  %v4006_v41 = vadd.f32 %v4005_v25, %v3939_v19  ;;  %v7776_v31 = vld [vmem:[#allocation84_spill] sm:$0xff]  ;;  %v7777_v20 = vld [vmem:[#allocation83_spill] sm:$0xff]  ;;  %v7780_v23 = vld [vmem:[#allocation85_spill] sm:$0xff] }
 0x328   :  { %v3946_v40 = vmul.f32 %v7724_v33, %v3840_v10  ;;  %v3842_v12 = vmax.f32 %v5287_v2, %v3778_v26  ;;  %v3783_v59 = vmul.f32 0.2, %v5272_v44  ;;  %v7769_v4 = vpack.c.bf16 %v7767_v30, %v7768_v51  ;;  %v7774_v2 = vld [vmem:[#allocation81_spill] sm:$0xff]  ;;  %v1874_v10 = vld [vmem:[#allocation8 + $0x1fa8] sm:$0xff]  ;;  %v7785_v14 = vld [vmem:[#allocation90_spill] sm:$0xff] }
 0x329   :  { %4987 = vmatpush1.bf16.msra.mxu0 %v7766_v50  ;;  %v7772_v32 = vpack.c.bf16 %v7770_v13, %v7771_v7  ;;  %v3947_v35 = vmul.f32 %v7723_v22, %v3841_v38  ;;  %v3785_v6 = vmul.f32 0.2, %v5288_v27  ;;  %v5273_v63 = vadd.f32 %v2370_v11, %v7699_v9  ;;  %v7786_v50 = vld [vmem:[#allocation89_spill] sm:$0xff]  ;;  %v1884_v30 = vld [vmem:[#allocation8 + $0x1ff8] sm:$0xff]  ;;  %v7788_v13 = vld [vmem:[#allocation92_spill] sm:$0xff] }
 0x32a   :  { %5243 = vmatpush1.bf16.msra.mxu1 %v7769_v4  ;;  %v5289_v55 = vadd.f32 %v2822_v58, %v7705_v8  ;;  %v7775_v42 = vpack.c.bf16 %v7773_v61, %v7774_v2  ;;  %v7084_v19 = vadd.f32 %v4006_v41, %v3940_v17  ;;  %v4014_v16 = vadd.f32 %v3946_v40, %v3945_v5  ;;  %v1859_v58 = vld [vmem:[#allocation8 + $0x1f30] sm:$0xff]  ;;  %v7789_v7 = vld [vmem:[#allocation91_spill] sm:$0xff]  ;;  %v7791_v61 = vld [vmem:[#allocation94_spill] sm:$0xff] }
 0x32b   :  { %4989 = vmatprep.subr.bf16.mxu0 %v7772_v32  ;;  %v3847_v45 = vmax.f32 %v5272_v44, %v3783_v59  ;;  %v5274_v60 = vadd.f32 %v2374_v34, %v6641_v29  ;;  %v3784_v18 = vmul.f32 0.2, %v5273_v63  ;;  %v5290_v1 = vadd.f32 %v2826_v46, %v7698_v43  ;;  %v7782_v29 = vld [vmem:[#allocation88_spill] sm:$0xff]  ;;  %v7783_v34 = vld [vmem:[#allocation87_spill] sm:$0xff]  ;;  %v1867_v43 = vld [vmem:[#allocation8 + $0x1f70] sm:$0xff] }
 0x32c   :  { %5245 = vmatprep.subr.bf16.mxu1 %v7775_v42  ;;  %v3786_v52 = vmul.f32 0.2, %v5289_v55  ;;  %v7778_v37 = vpack.c.bf16 %v7776_v31, %v7777_v20  ;;  %v4998_v11 = vpack.c.bf16 %v1865_v15, %v1857_v24  ;;  %v3948_v53 = vmul.f32 %v6746_v48, %v3842_v12  ;;  %v1882_v44 = vld [vmem:[#allocation8 + $0x1fe8] sm:$0xff]  ;;  %v1876_v59 = vld [vmem:[#allocation8 + $0x1fb8] sm:$0xff]  ;;  %v7792_v2 = vld [vmem:[#allocation93_spill] sm:$0xff] }
 0x32d   :  { %v4015_v3 = vadd.f32 %v4014_v16, %v3947_v35  ;;  %v3791_v26 = vmul.f32 0.2, %v5274_v60  ;;  %v5275_v62 = vadd.f32 %v2376_v54, %v7699_v9  ;;  %v7781_v25 = vpack.c.bf16 %v7779_v39, %v7780_v23  ;;  %v1875_v31 = vld [vmem:[#allocation8 + $0x1fb0] sm:$0xff] }
 0x32e   :  { %4991 = vmatpush1.bf16.msra.mxu0 %v7778_v37  ;;  %v7784_v38 = vpack.c.bf16 %v7782_v29, %v7783_v34  ;;  %v3953_v46 = vmul.f32 %v7717_v56, %v3847_v45  ;;  %v3849_v17 = vmax.f32 %v5288_v27, %v3785_v6  ;;  %v3848_v5 = vmax.f32 %v5273_v63, %v3784_v18  ;;  %v1881_v45 = vld [vmem:[#allocation8 + $0x1fe0] sm:$0xff]  ;;  %v7802_v34 = vld [vmem:[#allocation62_spill] sm:$0xff] }
 0x32f   :  { %5247 = vmatpush1.bf16.msra.mxu1 %v7781_v25  ;;  %v3793_v28 = vmul.f32 0.2, %v5290_v1  ;;  %v7787_v41 = vpack.c.bf16 %v7785_v14, %v7786_v50  ;;  %v7103_v9 = vadd.f32 %v4015_v3, %v3948_v53  ;;  %v3855_v54 = vmax.f32 %v5274_v60, %v3791_v26  ;;  %v7797_v25 = vld [vmem:[#allocation37_spill] sm:$0xff]  ;;  %v7800_v29 = vld [vmem:[#allocation39_spill] sm:$0xff] }
 0x330   :  { %4993 = vmatprep.subr.bf16.mxu0 %v7784_v38  ;;  %v3792_v40 = vmul.f32 0.2, %v5275_v62  ;;  %v5291_v12 = vadd.f32 %v2828_v49, %v7705_v8  ;;  %v3954_v51 = vmul.f32 %v7724_v33, %v3848_v5  ;;  %v3850_v4 = vmax.f32 %v5289_v55, %v3786_v52  ;;  %v7794_v8 = vld [vmem:[#allocation45_spill] sm:$0xff]  ;;  %v7795_v49 = vld [vmem:[#allocation44_spill] sm:$0xff]  ;;  %v1873_v55 = vld [vmem:[#allocation8 + $0x1fa0] sm:$0xff] }
 0x331   :  { %5249 = vmatprep.subr.bf16.mxu1 %v7787_v41  ;;  %v7790_v27 = vpack.c.bf16 %v7788_v13, %v7789_v7  ;;  %v5254_v32 = vpack.c.bf16 %v1867_v43, %v1859_v58  ;;  %v5000_v24 = vpack.c.bf16 %v1882_v44, %v1874_v10  ;;  %v3961_v15 = vmul.f32 %v7717_v56, %v3855_v54  ;;  %v1883_v56 = vld [vmem:[#allocation8 + $0x1ff0] sm:$0xff]  ;;  %v7804_v43 = vld [vmem:[#allocation64_spill] sm:$0xff]  ;;  %v7805_v10 = vld [vmem:[#allocation66_spill] sm:$0xff] }
 0x332   :  { %v3857_v35 = vmax.f32 %v5290_v1, %v3793_v28  ;;  %v3856_v6 = vmax.f32 %v5275_v62, %v3792_v40  ;;  %v3794_v63 = vmul.f32 0.2, %v5291_v12  ;;  %v7793_v42 = vpack.c.bf16 %v7791_v61, %v7792_v2  ;;  %v7803_v38 = vld [vmem:[#allocation65_spill] sm:$0xff]  ;;  %v7809_v5 = vld [vmem:[#allocation70_spill] sm:$0xff]  ;;  %v7811_v14 = vld [vmem:[#allocation71_spill] sm:$0xff] }
 0x333   :  { %4995 = vmatpush1.bf16.msra.mxu0 %v7790_v27  ;;  %v7796_v16 = vpack.c.bf16 %v7794_v8, %v7795_v49  ;;  %v3955_v60 = vmul.f32 %v7723_v22, %v3849_v17  ;;  %v4023_v18 = vadd.f32 %v3954_v51, %v3953_v46  ;;  %v5256_v52 = vpack.c.bf16 %v1884_v30, %v1876_v59  ;;  %v7806_v44 = vld [vmem:[#allocation49_spill] sm:$0xff]  ;;  %v7807_v46 = vld [vmem:[#allocation68_spill] sm:$0xff]  ;;  %v7808_v17 = vld [vmem:[#allocation67_spill] sm:$0xff] }
 0x334   :  { %5251 = vmatpush1.bf16.msra.mxu1 %v7793_v42  ;;  %v3962_v1 = vmul.f32 %v7724_v33, %v3856_v6  ;;  %v3858_v20 = vmax.f32 %v5291_v12, %v3794_v63  ;;  %v3956_v37 = vmul.f32 %v6746_v48, %v3850_v4  ;;  %v5002_v53 = vpack.c.bf16 %v1881_v45, %v1873_v55  ;;  %v7810_v28 = vld [vmem:[#allocation69_spill] sm:$0xff]  ;;  %v7813_v41 = vld [vmem:[#allocation22_spill] sm:$0xff]  ;;  %v7815_v59 = vld [vmem:[#allocation51_spill] sm:$0xff] }
 0x335   :  { %4997 = vmatprep.subr.bf16.mxu0 %v7796_v16  ;;  %5253 = vmatprep.subr.bf16.mxu1 %v5252_v57  ;;  %v4024_v58 = vadd.f32 %v4023_v18, %v3955_v60  ;;  %v3963_v3 = vmul.f32 %v7723_v22, %v3857_v35  ;;  %v5258_v62 = vpack.c.bf16 %v1883_v56, %v1875_v31  ;;  %v7799_v22 = vld [vmem:[#allocation41_spill] sm:$0xff]  ;;  %v7816_v51 = vld [vmem:[#allocation54_spill] sm:$0xff]  ;;  %v7817_v49 = vld [vmem:[#allocation23_spill] sm:$0xff] }
 0x336   :  { %v4032_v26 = vadd.f32 %v3962_v1, %v3961_v15  ;;  %v3964_v57 = vmul.f32 %v6746_v48, %v3858_v20  ;;  %v7801_v48 = vld [vmem:[#allocation63_spill] sm:$0xff]  ;;  %v7812_v50 = vld [vmem:[#allocation53_spill] sm:$0xff]  ;;  %v7166_v30 = vrot.slane %v7813_v41, %v7815_v59  ;;  %v7170_v4 = vrot.slane %v7813_v41, %v7816_v51 }
 0x337   :  { %4999 = vmatpush1.bf16.msra.mxu0 %v4998_v11  ;;  %v7121_v39 = vadd.f32 %v4024_v58, %v3956_v37  ;;  %v7798_v11 = vld [vmem:[#allocation40_spill] sm:$0xff]  ;;  %v7158_v54 = vrot.slane %v7813_v41, %v7812_v50  ;;  %v7814_v40 = vld [vmem:[#allocation61_spill] sm:$0xff]  ;;  %v7178_v16 = vrot.slane %v7817_v49, %v7812_v50 }
 0x338   :  { %5255 = vmatpush1.bf16.msra.mxu1 %v5254_v32  ;;  %5001 = vmatprep.subr.bf16.mxu0 %v5000_v24  ;;  %v4033_v23 = vadd.f32 %v4032_v26, %v3963_v3  ;;  %v7162_v12 = vrot.slane %v7813_v41, %v7814_v40  ;;  %v7189_v37 = vrot.slane %v7817_v49, %v7814_v40 }
 0x339   :  { %5257 = vmatprep.subr.bf16.mxu1 %v5256_v52  ;;  %v7183_v52 = vrot.slane %v7817_v49, %v7815_v59 }
 0x33a   :  { %v7124_v33 = vadd.f32 %v4033_v23, %v3964_v57 }
 0x33b   :  { %5003 = vmatpush1.bf16.msra.mxu0 %v5002_v53  ;;  %v7196_v53 = vrot.slane %v7817_v49, %v7816_v51 }
 0x33c   :  { %5259 = vmatpush1.bf16.msra.mxu1 %v5258_v62 }
 0x33e   :  { %3235 = vmatmul.mubr.f32.vlgmr.msra.gmra.mrb[48].mxu0 %v7797_v25 }
 0x33f   :  { %3687 = vmatmul.mubr.f32.vlgmr.msra.gmra.mrb[48].mxu1 %v7797_v25  ;;  %3240 = vmatprep.mubr.f32.mxu0 %v7798_v11 }
 0x340   :  { %3692 = vmatprep.mubr.f32.mxu1 %v7798_v11 }
 0x342   :  { %3241 = vmatmul.mubr.f32.gmra.mrb[50].mxu0 %v7799_v22 }
 0x343   :  { %3693 = vmatmul.mubr.f32.gmra.mrb[50].mxu1 %v7799_v22  ;;  %3246 = vmatprep.mubr.f32.mxu0 %v7800_v29 }
 0x344   :  { %3698 = vmatprep.mubr.f32.mxu1 %v7800_v29 }
 0x346   :  { %3247 = vmatmul.mubr.f32.gmra.mrb[52].mxu0 %v7801_v48 }
 0x347   :  { %3699 = vmatmul.mubr.f32.gmra.mrb[52].mxu1 %v7801_v48  ;;  %3252 = vmatprep.mubr.f32.mxu0 %v7802_v34 }
 0x348   :  { %3704 = vmatprep.mubr.f32.mxu1 %v7802_v34 }
 0x34a   :  { %3253 = vmatmul.mubr.f32.gmra.mrb[54].mxu0 %v7803_v38 }
 0x34b   :  { %3705 = vmatmul.mubr.f32.gmra.mrb[54].mxu1 %v7803_v38  ;;  %3258 = vmatprep.mubr.f32.mxu0 %v7804_v43 }
 0x34c   :  { %3710 = vmatprep.mubr.f32.mxu1 %v7804_v43 }
 0x34e   :  { %3259 = vmatmul.mubr.f32.gmra.mrb[56].mxu0 %v7805_v10 }
 0x34f   :  { %3711 = vmatmul.mubr.f32.gmra.mrb[56].mxu1 %v7805_v10  ;;  %3264 = vmatprep.mubr.f32.mxu0 %v7806_v44 }
 0x350   :  { %3716 = vmatprep.mubr.f32.mxu1 %v7806_v44 }
 0x352   :  { %3265 = vmatmul.mubr.f32.gmra.mrb[58].mxu0 %v7807_v46 }
 0x353   :  { %3717 = vmatmul.mubr.f32.gmra.mrb[58].mxu1 %v7807_v46  ;;  %3270 = vmatprep.mubr.f32.mxu0 %v7808_v17 }
 0x354   :  { %3722 = vmatprep.mubr.f32.mxu1 %v7808_v17 }
 0x356   :  { %3271 = vmatmul.mubr.f32.gmra.mrb[60].mxu0 %v7809_v5 }
 0x357   :  { %3723 = vmatmul.mubr.f32.gmra.mrb[60].mxu1 %v7809_v5  ;;  %3276 = vmatprep.mubr.f32.mxu0 %v7810_v28 }
 0x358   :  { %3728 = vmatprep.mubr.f32.mxu1 %v7810_v28 }
 0x35a   :  { %3277 = vmatmul.mubr.f32.gmra.mrb[62].mxu0 %v7811_v14 }
 0x35b   :  { %3729 = vmatmul.mubr.f32.gmra.mrb[62].mxu1 %v7811_v14 }
 0x411   :  { %v3236_v13 = vpop.f32.mrb[48].mxu0 }
 0x412   :  { %v5292_v7 = vadd.f32 %v3236_v13, %v7158_v54  ;;  %v3688_v27 = vpop.f32.mrb[48].mxu1  ;;  %v3238_v32 = vpop.f32.mrb[49].mxu0 }
 0x413   :  { %v5308_v24 = vadd.f32 %v3688_v27, %v7162_v12  ;;  %v5293_v15 = vadd.f32 %v3238_v32, %v7166_v30  ;;  %v3690_v35 = vpop.f32.mrb[49].mxu1 }
 0x414   :  { %v3739_v6 = vmul.f32 0.2, %v5292_v7  ;;  %v5309_v63 = vadd.f32 %v3690_v35, %v7170_v4 }
 0x415   :  { %v3741_v61 = vmul.f32 0.2, %v5308_v24  ;;  %v3740_v2 = vmul.f32 0.2, %v5293_v15  ;;  %v3242_v42 = vpop.f32.mrb[50].mxu0 }
 0x416   :  { %v3803_v8 = vmax.f32 %v5292_v7, %v3739_v6  ;;  %v3742_v55 = vmul.f32 0.2, %v5309_v63  ;;  %v5294_v45 = vadd.f32 %v3242_v42, %v7158_v54  ;;  %v3694_v60 = vpop.f32.mrb[50].mxu1  ;;  %v3244_v18 = vpop.f32.mrb[51].mxu0 }
 0x417   :  { %v5310_v31 = vadd.f32 %v3694_v60, %v7162_v12  ;;  %v5295_v56 = vadd.f32 %v3244_v18, %v7166_v30  ;;  %v3696_v1 = vpop.f32.mrb[51].mxu1  ;;  %v3805_v3 = vmax.f32 %v5308_v24, %v3741_v61  ;;  %v3804_v26 = vmax.f32 %v5293_v15, %v3740_v2 }
 0x418   :  { %v3747_v20 = vmul.f32 0.2, %v5294_v45  ;;  %v7192_v58 = vadd.f32 %v3696_v1, %v7170_v4  ;;  %v3909_v25 = vmul.f32 %v7178_v16, %v3803_v8  ;;  %v3806_v11 = vmax.f32 %v5309_v63, %v3742_v55 }
 0x419   :  { %v3749_v62 = vmul.f32 0.2, %v5310_v31  ;;  %v3748_v57 = vmul.f32 0.2, %v5295_v56  ;;  %v3248_v23 = vpop.f32.mrb[52].mxu0  ;;  %v3910_v50 = vmul.f32 %v7183_v52, %v3804_v26  ;;  %v3911_v51 = vmul.f32 %v7189_v37, %v3805_v3 }
 0x41a   :  { %v3811_v22 = vmax.f32 %v5294_v45, %v3747_v20  ;;  %v5296_v29 = vadd.f32 %v3248_v23, %v7158_v54  ;;  %v3700_v48 = vpop.f32.mrb[52].mxu1  ;;  %v3250_v34 = vpop.f32.mrb[53].mxu0  ;;  %v3750_v43 = vmul.f32 0.2, %v7192_v58  ;;  %v3912_v15 = vmul.f32 %v7196_v53, %v3806_v11 }
 0x41b   :  { %v3813_v38 = vmax.f32 %v5310_v31, %v3749_v62  ;;  %v7202_v10 = vadd.f32 %v3700_v48, %v7162_v12  ;;  %v5297_v44 = vadd.f32 %v3250_v34, %v7166_v30  ;;  %v3702_v46 = vpop.f32.mrb[53].mxu1  ;;  %v3812_v5 = vmax.f32 %v5295_v56, %v3748_v57 }
 0x41c   :  { %v3917_v17 = vmul.f32 %v7178_v16, %v3811_v22  ;;  %v3755_v28 = vmul.f32 0.2, %v5296_v29  ;;  %v7207_v14 = vadd.f32 %v3702_v46, %v7170_v4  ;;  %v3814_v6 = vmax.f32 %v7192_v58, %v3750_v43 }
 0x41d   :  { %v7211_v41 = vmul.f32 0.2, %v7202_v10  ;;  %v3756_v40 = vmul.f32 0.2, %v5297_v44  ;;  %v3254_v59 = vpop.f32.mrb[54].mxu0  ;;  %v7220_v35 = vmul.f32 %v7189_v37, %v3813_v38  ;;  %v3972_v31 = vadd.f32 %v6977_v21, %v3909_v25 }
 0x41e   :  { %v7215_v13 = vadd.f32 %v7004_v47, %v3917_v17  ;;  %v3819_v7 = vmax.f32 %v5296_v29, %v3755_v28  ;;  %v5298_v27 = vadd.f32 %v3254_v59, %v7158_v54  ;;  %v3706_v32 = vpop.f32.mrb[54].mxu1  ;;  %v3256_v24 = vpop.f32.mrb[55].mxu0  ;;  %v3918_v47 = vmul.f32 %v7183_v52, %v3812_v5 }
 0x41f   :  { %v5314_v63 = vadd.f32 %v3706_v32, %v7162_v12  ;;  %v7225_v61 = vadd.f32 %v3256_v24, %v7166_v30  ;;  %v3708_v2 = vpop.f32.mrb[55].mxu1  ;;  %v7229_v42 = vmul.f32 0.2, %v7207_v14  ;;  %v3821_v55 = vmax.f32 %v7202_v10, %v7211_v41 }
 0x420   :  { %v3763_v8 = vmul.f32 0.2, %v5298_v27  ;;  %v7232_v49 = vadd.f32 %v3708_v2, %v7170_v4  ;;  %v3820_v45 = vmax.f32 %v5297_v44, %v3756_v40  ;;  %v7238_v56 = vmul.f32 %v7178_v16, %v3819_v7 }
 0x421   :  { %v3765_v60 = vmul.f32 0.2, %v5314_v63  ;;  %v3260_v18 = vpop.f32.mrb[56].mxu0  ;;  %v3764_v20 = vmul.f32 0.2, %v7225_v61  ;;  %v3822_v21 = vmax.f32 %v7207_v14, %v7229_v42  ;;  %v3920_v46 = vmul.f32 %v7196_v53, %v3814_v6 }
 0x422   :  { %v3827_v1 = vmax.f32 %v5298_v27, %v3763_v8  ;;  %v5300_v58 = vadd.f32 %v3260_v18, %v7158_v54  ;;  %v3712_v3 = vpop.f32.mrb[56].mxu1  ;;  %v3262_v26 = vpop.f32.mrb[57].mxu0  ;;  %v7243_v57 = vmul.f32 0.2, %v7232_v49  ;;  %v7254_v34 = vmul.f32 %v7183_v52, %v3820_v45 }
 0x423   :  { %v3829_v62 = vmax.f32 %v5314_v63, %v3765_v60  ;;  %v5316_v23 = vadd.f32 %v3712_v3, %v7162_v12  ;;  %v5301_v11 = vadd.f32 %v3262_v26, %v7166_v30  ;;  %v3714_v22 = vpop.f32.mrb[57].mxu1  ;;  %v3828_v5 = vmax.f32 %v7225_v61, %v3764_v20 }
 0x424   :  { %v3933_v25 = vmul.f32 %v7178_v16, %v3827_v1  ;;  %v3771_v29 = vmul.f32 0.2, %v5300_v58  ;;  %v7251_v48 = vadd.f32 %v3714_v22, %v7170_v4  ;;  %v3973_v40 = vadd.f32 %v3972_v31, %v3910_v50 }
 0x425   :  { %v3773_v38 = vmul.f32 0.2, %v5316_v23  ;;  %v3772_v43 = vmul.f32 0.2, %v5301_v11  ;;  %v3266_v44 = vpop.f32.mrb[58].mxu0  ;;  %v7262_v27 = vmul.f32 %v7189_v37, %v3829_v62  ;;  %v3830_v32 = vmax.f32 %v7232_v49, %v7243_v57 }
 0x426   :  { %v7258_v17 = vadd.f32 %v7057_v0, %v3933_v25  ;;  %v3835_v28 = vmax.f32 %v5300_v58, %v3771_v29  ;;  %v3718_v59 = vpop.f32.mrb[58].mxu1  ;;  %v3268_v7 = vpop.f32.mrb[59].mxu0  ;;  %v5302_v24 = vadd.f32 %v3266_v44, %v7158_v54  ;;  %v7270_v2 = vmul.f32 0.2, %v7251_v48 }
 0x427   :  { %v5318_v63 = vadd.f32 %v3718_v59, %v7162_v12  ;;  %v3720_v6 = vpop.f32.mrb[59].mxu1  ;;  %v3974_v61 = vadd.f32 %v3973_v40, %v3911_v51  ;;  %v5303_v50 = vadd.f32 %v3268_v7, %v7166_v30  ;;  %v3837_v8 = vmax.f32 %v5316_v23, %v3773_v38 }
 0x428   :  { %v3941_v0 = vmul.f32 %v7178_v16, %v3835_v28  ;;  %v3836_v45 = vmax.f32 %v5301_v11, %v3772_v43  ;;  %v3779_v60 = vmul.f32 0.2, %v5302_v24  ;;  %v7275_v3 = vadd.f32 %v3720_v6, %v7170_v4 }
 0x429   :  { %v3781_v18 = vmul.f32 0.2, %v5318_v63  ;;  %v3272_v31 = vpop.f32.mrb[60].mxu0  ;;  %v3975_v20 = vadd.f32 %v3974_v61, %v3912_v15  ;;  %v3780_v58 = vmul.f32 0.2, %v5303_v50  ;;  %v3982_v51 = vadd.f32 %v7215_v13, %v3918_v47 }
 0x42a   :  { %v4008_v1 = vadd.f32 %v7084_v19, %v3941_v0  ;;  %v3724_v26 = vpop.f32.mrb[60].mxu1  ;;  %v3274_v62 = vpop.f32.mrb[61].mxu0  ;;  %v3843_v22 = vmax.f32 %v5302_v24, %v3779_v60  ;;  %v5304_v29 = vadd.f32 %v3272_v31, %v7158_v54  ;;  %v7280_v38 = vmul.f32 0.2, %v7275_v3 }
 0x42b   :  { %v3845_v25 = vmax.f32 %v5318_v63, %v3781_v18  ;;  %v3726_v23 = vpop.f32.mrb[61].mxu1  ;;  %3976 = vadd.xlane.f32.xlu0 %v3975_v20  ;;  %v3844_v11 = vmax.f32 %v5303_v50, %v3780_v58  ;;  %v5320_v19 = vadd.f32 %v3724_v26, %v7162_v12  ;;  %v5305_v15 = vadd.f32 %v3274_v62, %v7166_v30 }
 0x42c   :  { %v3934_v43 = vmul.f32 %v7183_v52, %v3828_v5  ;;  %v3949_v44 = vmul.f32 %v7178_v16, %v3843_v22  ;;  %v3983_v28 = vadd.f32 %v3982_v51, %v7220_v35  ;;  %v3787_v40 = vmul.f32 0.2, %v5304_v29 }
 0x42d   :  { %v3278_v13 = vpop.f32.mrb[62].mxu0  ;;  %v3943_v47 = vmul.f32 %v7189_v37, %v3837_v8  ;;  %v3838_v59 = vmax.f32 %v7251_v48, %v7270_v2  ;;  %v3789_v7 = vmul.f32 0.2, %v5320_v19  ;;  %v3788_v24 = vmul.f32 0.2, %v5305_v15 }
 0x42e   :  { %v3730_v63 = vpop.f32.mrb[62].mxu1  ;;  %v3280_v6 = vpop.f32.mrb[63].mxu0  ;;  %v3942_v0 = vmul.f32 %v7183_v52, %v3836_v45  ;;  %v4017_v61 = vadd.f32 %v7103_v9, %v3949_v44  ;;  %v3984_v5 = vadd.f32 %v3983_v28, %v3920_v46  ;;  %v3851_v50 = vmax.f32 %v5304_v29, %v3787_v40 }
 0x42f   :  { %v3732_v60 = vpop.f32.mrb[63].mxu1  ;;  %v3951_v35 = vmul.f32 %v7189_v37, %v3845_v25  ;;  %v3950_v18 = vmul.f32 %v7183_v52, %v3844_v11  ;;  %v3846_v8 = vmax.f32 %v7275_v3, %v7280_v38  ;;  %v5321_v48 = vadd.f32 %v3726_v23, %v7170_v4 }
 0x430   :  { %3985 = vadd.xlane.f32.xlu0 %v3984_v5  ;;  %v3957_v2 = vmul.f32 %v7178_v16, %v3851_v50  ;;  %v3852_v31 = vmax.f32 %v5305_v15, %v3788_v24  ;;  %v3990_v45 = vadd.f32 %v7024_v36, %v7238_v56  ;;  %v5306_v9 = vadd.f32 %v3278_v13, %v7158_v54 }
 0x431   :  { %v3853_v46 = vmax.f32 %v5320_v19, %v3789_v7  ;;  %v3927_v20 = vmul.f32 %v7189_v37, %v3821_v55  ;;  %v5322_v58 = vadd.f32 %v3730_v63, %v7162_v12  ;;  %v5307_v3 = vadd.f32 %v3280_v6, %v7166_v30 }
 0x432   :  { %v4026_v26 = vadd.f32 %v7121_v39, %v3957_v2  ;;  %v3928_v62 = vmul.f32 %v7196_v53, %v3822_v21  ;;  %v3991_v36 = vadd.f32 %v3990_v45, %v7254_v34  ;;  %v3795_v54 = vmul.f32 0.2, %v5306_v9 }
 0x433   :  { %v3790_v56 = vmul.f32 0.2, %v5321_v48  ;;  %v3797_v22 = vmul.f32 0.2, %v5322_v58  ;;  %v3796_v25 = vmul.f32 0.2, %v5307_v3  ;;  %v5323_v10 = vadd.f32 %v3732_v60, %v7170_v4 }
 0x434   :  { %v3958_v41 = vmul.f32 %v7183_v52, %v3852_v31  ;;  %v3992_v12 = vadd.f32 %v3991_v36, %v3927_v20  ;;  %v3859_v55 = vmax.f32 %v5306_v9, %v3795_v54  ;;  %v4000_v30 = vadd.f32 %v7258_v17, %v3934_v43 }
 0x435   :  { %v3860_v39 = vmax.f32 %v5307_v3, %v3796_v25  ;;  %v3798_v51 = vmul.f32 0.2, %v5323_v10  ;;  %v3936_v14 = vmul.f32 %v7196_v53, %v3830_v32  ;;  %v4009_v42 = vadd.f32 %v4008_v1, %v3942_v0 }
 0x436   :  { %v3993_v21 = vadd.f32 %v3992_v12, %v3928_v62  ;;  %v3965_v34 = vmul.f32 %v7178_v16, %v3859_v55  ;;  %v3861_v29 = vmax.f32 %v5322_v58, %v3797_v22  ;;  %v4001_v4 = vadd.f32 %v4000_v30, %v7262_v27 }
 0x437   :  { %v3854_v23 = vmax.f32 %v5321_v48, %v3790_v56  ;;  %v3966_v11 = vmul.f32 %v7183_v52, %v3860_v39  ;;  %v3944_v38 = vmul.f32 %v7196_v53, %v3838_v59  ;;  %v4010_v17 = vadd.f32 %v4009_v42, %v3943_v47 }
 0x438   :  { %3994 = vadd.xlane.f32.xlu1 %v3993_v21  ;;  %v4035_v19 = vadd.f32 %v7124_v33, %v3965_v34  ;;  %v3862_v15 = vmax.f32 %v5323_v10, %v3798_v51  ;;  %v4002_v49 = vadd.f32 %v4001_v4, %v3936_v14  ;;  %v4018_v57 = vadd.f32 %v4017_v61, %v3950_v18 }
 0x439   :  { %v3959_v32 = vmul.f32 %v7189_v37, %v3853_v46  ;;  %v4011_v1 = vadd.f32 %v4010_v17, %v3944_v38  ;;  %v4027_v43 = vadd.f32 %v4026_v26, %v3958_v41  ;;  %v3967_v16 = vmul.f32 %v7189_v37, %v3861_v29 }
 0x43a   :  { %v3952_v27 = vmul.f32 %v7196_v53, %v3846_v8  ;;  %v4019_v44 = vadd.f32 %v4018_v57, %v3951_v35  ;;  %v4036_v28 = vadd.f32 %v4035_v19, %v3966_v11  ;;  %v3960_v52 = vmul.f32 %v7196_v53, %v3854_v23 }
 0x43b   :  { %4012 = vadd.xlane.f32.xlu0 %v4011_v1  ;;  %v4028_v40 = vadd.f32 %v4027_v43, %v3959_v32  ;;  %v3968_v33 = vmul.f32 %v7196_v53, %v3862_v15  ;;  %v4042_v37 = vstv %s7371_s6 }
 0x43c   :  { %4003 = vadd.xlane.f32.xlu1 %v4002_v49  ;;  %v4020_v13 = vadd.f32 %v4019_v44, %v3952_v27  ;;  %v4037_v47 = vadd.f32 %v4036_v28, %v3967_v16 }
 0x43d   :  { %v4029_v59 = vadd.f32 %v4028_v40, %v3960_v52 }
 0x43e   :  { %v4038_v7 = vadd.f32 %v4037_v47, %v3968_v33 }
 0x43f   :  { %4030 = vadd.xlane.f32.xlu0 %v4029_v59 }
 0x440   :  { %4021 = vadd.xlane.f32.xlu1 %v4020_v13 }
 0x444   :  { %4039 = vadd.xlane.f32.xlu1 %v4038_v7 }
 0x4b8   :  { %v3977_v24 = vpop.xlane.xlu0 %3976 }
 0x4b9   :  { %v4043_v63 = vadd.f32 %v4042_v37, %v3977_v24 }
 0x4bb   :  { %v4051_v6 = vsub.f32 0.0, %v4043_v63 }
 0x4bd   :  { %v4059_v0 = vmul.f32 1.442695, %v4051_v6  ;;  %v3986_v61 = vpop.xlane.xlu0 %3985 }
 0x4be   :  { %v4044_v5 = vadd.f32 %v4042_v37, %v3986_v61 }
 0x4bf   :  { %5527 = vpow2.f32 %v4059_v0 }
 0x4c0   :  { %v4052_v50 = vsub.f32 0.0, %v4044_v5 }
 0x4c2   :  { %v4061_v60 = vmul.f32 1.442695, %v4052_v50 }
 0x4c4   :  { %5529 = vpow2.f32 %v4061_v60 }
 0x4c5   :  { %v3995_v53 = vpop.xlane.xlu1 %3994 }
 0x4c6   :  { %v4045_v35 = vadd.f32 %v4042_v37, %v3995_v53 }
 0x4c8   :  { %v4053_v18 = vsub.f32 0.0, %v4045_v35  ;;  %v4013_v8 = vpop.xlane.xlu0 %4012 }
 0x4c9   :  { %v5528_v48 = vpop.eup %5527  ;;  %v4004_v2 = vpop.xlane.xlu1 %4003  ;;  %v4047_v31 = vadd.f32 %v4042_v37, %v4013_v8 }
 0x4ca   :  { %v4075_v45 = vadd.f32 1.0, %v5528_v48  ;;  %v4063_v9 = vmul.f32 1.442695, %v4053_v18  ;;  %v4046_v46 = vadd.f32 %v4042_v37, %v4004_v2 }
 0x4cb   :  { %v4055_v20 = vsub.f32 0.0, %v4047_v31 }
 0x4cc   :  { %5531 = vrcp.f32 %v4075_v45  ;;  %v4054_v58 = vsub.f32 0.0, %v4046_v46  ;;  %v4031_v3 = vpop.xlane.xlu0 %4030 }
 0x4cd   :  { %5533 = vpow2.f32 %v4063_v9  ;;  %v4067_v26 = vmul.f32 1.442695, %v4055_v20  ;;  %v4022_v62 = vpop.xlane.xlu1 %4021  ;;  %v4049_v36 = vadd.f32 %v4042_v37, %v4031_v3 }
 0x4ce   :  { %v5530_v54 = vpop.eup %5529  ;;  %v4065_v56 = vmul.f32 1.442695, %v4054_v58  ;;  %v4048_v22 = vadd.f32 %v4042_v37, %v4022_v62 }
 0x4cf   :  { %v4076_v25 = vadd.f32 1.0, %v5530_v54  ;;  %5535 = vpow2.f32 %v4067_v26  ;;  %v4057_v10 = vsub.f32 0.0, %v4049_v36 }
 0x4d0   :  { %5537 = vpow2.f32 %v4065_v56  ;;  %v4056_v41 = vsub.f32 0.0, %v4048_v22 }
 0x4d1   :  { %5539 = vrcp.f32 %v4076_v25  ;;  %v4071_v12 = vmul.f32 1.442695, %v4057_v10  ;;  %v4040_v55 = vpop.xlane.xlu1 %4039 }
 0x4d2   :  { %v4069_v30 = vmul.f32 1.442695, %v4056_v41  ;;  %v4050_v39 = vadd.f32 %v4042_v37, %v4040_v55 }
 0x4d3   :  { %5541 = vpow2.f32 %v4071_v12 }
 0x4d4   :  { %5543 = vpow2.f32 %v4069_v30  ;;  %v4058_v51 = vsub.f32 0.0, %v4050_v39 }
 0x4d6   :  { %v5532_v14 = vpop.eup %5531  ;;  %v4073_v42 = vmul.f32 1.442695, %v4058_v51 }
 0x4d7   :  { %v5534_v21 = vpop.eup %5533  ;;  %4092 = vst.msk [vmem:[%s7372_s7] sm:$0xff] %vm4091_vm0, %v5532_v14 }
 0x4d8   :  { %v4077_v34 = vadd.f32 1.0, %v5534_v21  ;;  %5545 = vpow2.f32 %v4073_v42 }
 0x4d9   :  { %v5536_v29 = vpop.eup %5535 }
 0x4da   :  { %v5538_v4 = vpop.eup %5537  ;;  %5547 = vrcp.f32 %v4077_v34  ;;  %v4079_v23 = vadd.f32 1.0, %v5536_v29 }
 0x4db   :  { %v5540_v11 = vpop.eup %5539  ;;  %v4078_v38 = vadd.f32 1.0, %v5538_v4 }
 0x4dc   :  { %4093 = vst.msk [vmem:[%s7372_s7 + $0x8] sm:$0xff] %vm4091_vm0, %v5540_v11  ;;  %5549 = vrcp.f32 %v4079_v23 }
 0x4dd   :  { %v5542_v17 = vpop.eup %5541  ;;  %5551 = vrcp.f32 %v4078_v38 }
 0x4de   :  { %v5544_v19 = vpop.eup %5543  ;;  %v4081_v15 = vadd.f32 1.0, %v5542_v17 }
 0x4df   :  { %v4080_v49 = vadd.f32 1.0, %v5544_v19 }
 0x4e0   :  { %5553 = vrcp.f32 %v4081_v15 }
 0x4e1   :  { %5555 = vrcp.f32 %v4080_v49 }
 0x4e2   :  { %v5546_v57 = vpop.eup %5545 }
 0x4e3   :  { %v4082_v32 = vadd.f32 1.0, %v5546_v57 }
 0x4e4   :  { %v5548_v1 = vpop.eup %5547 }
 0x4e5   :  { %4094 = vst.msk [vmem:[%s7372_s7 + $0x10] sm:$0xff] %vm4091_vm0, %v5548_v1  ;;  %5557 = vrcp.f32 %v4082_v32 }
 0x4e6   :  { %v5550_v43 = vpop.eup %5549 }
 0x4e7   :  { %v5552_v16 = vpop.eup %5551  ;;  %4096 = vst.msk [vmem:[%s7372_s7 + $0x20] sm:$0xff] %vm4091_vm0, %v5550_v43 }
 0x4e8   :  { %4095 = vst.msk [vmem:[%s7372_s7 + $0x18] sm:$0xff] %vm4091_vm0, %v5552_v16 }
 0x4ea   :  { %v5554_v27 = vpop.eup %5553 }
 0x4eb   :  { %v5556_v44 = vpop.eup %5555  ;;  %4098 = vst.msk [vmem:[%s7372_s7 + $0x30] sm:$0xff] %vm4091_vm0, %v5554_v27 }
 0x4ec   :  { %4097 = vst.msk [vmem:[%s7372_s7 + $0x28] sm:$0xff] %vm4091_vm0, %v5556_v44 }
 0x4ef   :  { %v5558_v28 = vpop.eup %5557 }
 0x4f0   :  { %4099 = vst.msk [vmem:[%s7372_s7 + $0x38] sm:$0xff] %vm4091_vm0, %v5558_v28 }
 0x4f1   :  { %4104 = vsyncpa [#allocation4], 1 }
 0x4f2   :  { %4105 = vsyncpa [#allocation6], 1 }
 0x4f3   :  { %4106 = vsyncpa [#allocation9], 1 }
 0x4f4   :  { %4107 = vsyncpa [#allocation12], 1 }

</bundles_post_ra>
